<compile_context>
chip_gen: v7x
topology: tpu7x:2x2x1
jax: 0.10.0
libtpu: 0.0.40
codegen_flags: <defaults>
</compile_context>

<pallas_src>
import functools
import math

import jax
import jax.numpy as jnp
from jax.experimental import pallas as pl
from jax.experimental.pallas import tpu as pltpu

_LN_EPS = 1e-5
_MLP_ROW_TILE = 512          # target MLP row tile (review: 512-1024 on 128 MiB parts)


@functools.lru_cache(maxsize=1)
def _vmem_limit_bytes():
    """Generation-aware scoped-VMEM request (None -> compiler default)."""
    try:
        kind = jax.devices()[0].device_kind.lower()
    except Exception:
        return None
    if "v5" in kind or "v6" in kind:
        return 100 * 1024 * 1024       # 128 MiB physical VMEM: use most of it
    if "v7" in kind or "v4" in kind:
        return 48 * 1024 * 1024        # v7x: 64 MiB physical, leave headroom
    return None


def _const_spec(shape):
    """BlockSpec for a weight that is identical at every grid step: constant index map and
    (when supported) single buffering so it is not double-buffered in VMEM."""
    ndim = len(shape)
    index_map = lambda n: (0,) * ndim
    try:
        return pl.BlockSpec(shape, index_map, pipeline_mode=pl.Buffered(1))
    except Exception:  # older jax without pipeline_mode / Buffered
        return pl.BlockSpec(shape, index_map)


# --------------------------- fused attention kernel ---------------------------
# One grid step = block_rows independent sequences:
#   out = base + OutProj( MHA( LN( base ) , extra message k/v token ) )
# where base = [message_fc](x).  All projections are full-width matmuls over the flattened
# (block_rows*Lq, D) rows; heads are lane slices; single out-proj at the end.

def _fused_attn_kernel(*refs, n_head, has_pre, has_extra):
    idx = 0
    x_ref = refs[idx]; idx += 1
    extra_ref = None
    if has_extra:
        extra_ref = refs[idx]; idx += 1
    pre_w_ref = pre_b_ref = None
    if has_pre:
        pre_w_ref, pre_b_ref = refs[idx], refs[idx + 1]; idx += 2
    g_ref, bln_ref, wqkv_ref, bqkv_ref, wo_ref, bo_ref, o_ref = refs[idx:]

    f32 = jnp.float32
    cdt = wqkv_ref.dtype                      # MXU operand dtype = weight storage dtype
    Nb, Lq, D = x_ref.shape
    H = n_head
    dh = D // H
    scale = 1.0 / math.sqrt(dh)

    g = g_ref[...].astype(f32)
    bln = bln_ref[...].astype(f32)

    def _ln(t):                               # fp32 LayerNorm stats, eps=1e-5
        mu = jnp.mean(t, axis=-1, keepdims=True)
        var = jnp.mean((t - mu) ** 2, axis=-1, keepdims=True)
        return (t - mu) * jax.lax.rsqrt(var + _LN_EPS) * g + bln

    x = x_ref[...].reshape(Nb * Lq, D)        # storage dtype
    if has_pre:                               # message_fc fused in (f32 residual base)
        base = (jnp.dot(x.astype(cdt), pre_w_ref[...], preferred_element_type=f32)
                + pre_b_ref[...].astype(f32))
    else:
        base = x.astype(f32)

    xn = _ln(base)                            # (Nb*Lq, D) f32

    # Full-width packed QKV projection (one matmul for all heads / all rows).
    bqkv = bqkv_ref[...].astype(f32)
    qkv = (jnp.dot(xn.astype(cdt), wqkv_ref[...], preferred_element_type=f32) + bqkv)
    q = (qkv[:, :D] * scale).reshape(Nb, Lq, D)
    k = qkv[:, D:2 * D].reshape(Nb, Lq, D)
    v = qkv[:, 2 * D:].reshape(Nb, Lq, D)

    if has_extra:
        # Message token: LN + its K/V for ALL heads with one matmul (hoisted out of head loop)
        en = _ln(extra_ref[...].reshape(Nb, D).astype(f32))            # (Nb, D)
        ekv = (jnp.dot(en.astype(cdt), wqkv_ref[...], preferred_element_type=f32) + bqkv)
        ek = ekv[:, D:2 * D].reshape(Nb, 1, D)
        ev = ekv[:, 2 * D:].reshape(Nb, 1, D)

    heads = []
    for h in range(H):                        # heads = lane slices of the packed activation
        sl = slice(h * dh, (h + 1) * dh)
        qh = q[:, :, sl]                      # (Nb, Lq, dh) f32 (already scaled)
        kh = k[:, :, sl]
        vh = v[:, :, sl]
        s = jnp.einsum('bqd,bkd->bqk', qh.astype(cdt), kh.astype(cdt),
                       preferred_element_type=f32)                       # (Nb, Lq, Lq)
        if has_extra:
            # extra message token = one more key/value column (two-block softmax, shared max)
            se = jnp.sum(qh * ek[:, :, sl], axis=-1, keepdims=True)      # (Nb, Lq, 1)
            m = jnp.maximum(jnp.max(s, axis=-1, keepdims=True), se)
            p = jnp.exp(s - m)
            pe = jnp.exp(se - m)
            denom = jnp.sum(p, axis=-1, keepdims=True) + pe
            num = jnp.einsum('bqk,bkd->bqd', p.astype(cdt), vh.astype(cdt),
                             preferred_element_type=f32)
            num = num + pe * ev[:, :, sl]
        else:
            m = jnp.max(s, axis=-1, keepdims=True)
            p = jnp.exp(s - m)
            denom = jnp.sum(p, axis=-1, keepdims=True)
            num = jnp.einsum('bqk,bkd->bqd', p.astype(cdt), vh.astype(cdt),
                             preferred_element_type=f32)
        heads.append(num * pl.reciprocal(denom, approx=True))            # EUP reciprocal

    # head merge (lane concat) + ONE full-width out-projection + fused residual
    o = jnp.concatenate(heads, axis=-1).reshape(Nb * Lq, D)
    y = (jnp.dot(o.astype(cdt), wo_ref[...], preferred_element_type=f32)
         + bo_ref[...].astype(f32))
    o_ref[...] = (base + y).reshape(Nb, Lq, D).astype(o_ref.dtype)


def fused_attn_block(x, ln_g, ln_b, w_qkv, b_qkv, w_o, b_o, *, n_head,
                     pre_w=None, pre_b=None, extra=None, block_rows=1,
                     alias_input=False, vmem_limit=None):
    """Grid over groups of `block_rows` sequences; lane-dense (block_rows, Lq, D) blocks;
    weights VMEM-resident with constant index maps (single-buffered where supported)."""
    N, Lq, D = x.shape
    assert N % block_rows == 0 and D % n_head == 0
    has_pre = pre_w is not None
    has_extra = extra is not None
    grid = (N // block_rows,)
    row_map = lambda n: (n, 0, 0)

    inputs = [x]
    in_specs = [pl.BlockSpec((block_rows, Lq, D), row_map)]
    if has_extra:
        inputs.append(extra)
        in_specs.append(pl.BlockSpec((block_rows, 1, D), row_map))
    if has_pre:
        inputs += [pre_w, pre_b]
        in_specs += [_const_spec(pre_w.shape), _const_spec(pre_b.shape)]
    inputs += [ln_g, ln_b, w_qkv, b_qkv, w_o, b_o]
    in_specs += [_const_spec(a.shape) for a in (ln_g, ln_b, w_qkv, b_qkv, w_o, b_o)]

    kernel = functools.partial(_fused_attn_kernel, n_head=n_head,
                               has_pre=has_pre, has_extra=has_extra)
    return pl.pallas_call(
        kernel,
        grid=grid,
        in_specs=in_specs,
        out_specs=pl.BlockSpec((block_rows, Lq, D), row_map),
        out_shape=jax.ShapeDtypeStruct((N, Lq, D), x.dtype),
        input_output_aliases={0: 0} if alias_input else {},
        compiler_params=pltpu.CompilerParams(
            dimension_semantics=("parallel",),
            vmem_limit_bytes=vmem_limit),
    )(*inputs)


# ------------------------------ fused MLP kernel -------------------------------

def _fused_mlp_kernel(x_ref, g_ref, b_ref, w1_ref, b1_ref, w2_ref, b2_ref, o_ref):
    f32 = jnp.float32
    cdt = w1_ref.dtype
    x = x_ref[...].astype(f32)
    mu = jnp.mean(x, axis=-1, keepdims=True)
    var = jnp.mean((x - mu) ** 2, axis=-1, keepdims=True)
    xn = ((x - mu) * jax.lax.rsqrt(var + _LN_EPS) * g_ref[...].astype(f32)
          + b_ref[...].astype(f32))
    h = (jnp.dot(xn.astype(cdt), w1_ref[...], preferred_element_type=f32)
         + b1_ref[...].astype(f32))
    h = h * jax.nn.sigmoid(1.702 * h)                        # QuickGELU (EUP)
    y = (jnp.dot(h.astype(cdt), w2_ref[...], preferred_element_type=f32)
         + b2_ref[...].astype(f32))
    o_ref[...] = (x + y).astype(o_ref.dtype)


def fused_mlp_block(x2d, ln_g, ln_b, w1_t, b1, w2_t, b2, *, vmem_limit=None):
    M, D = x2d.shape
    # Row tile need not divide M: cdiv grid + masked tail block (MLP is purely row-wise).
    tm = M if M <= _MLP_ROW_TILE else _MLP_ROW_TILE
    grid = (pl.cdiv(M, tm),)
    return pl.pallas_call(
        _fused_mlp_kernel,
        grid=grid,
        in_specs=[pl.BlockSpec((tm, D), lambda i: (i, 0)),
                  _const_spec(ln_g.shape), _const_spec(ln_b.shape),
                  _const_spec(w1_t.shape), _const_spec(b1.shape),
                  _const_spec(w2_t.shape), _const_spec(b2.shape)],
        out_specs=pl.BlockSpec((tm, D), lambda i: (i, 0)),
        out_shape=jax.ShapeDtypeStruct((M, D), x2d.dtype),
        input_output_aliases={0: 0},
        compiler_params=pltpu.CompilerParams(
            dimension_semantics=("parallel",),
            vmem_limit_bytes=vmem_limit),
    )(x2d, ln_g, ln_b, w1_t, b1, w2_t, b2)


# ------------------------------ param preparation -------------------------------

def prepare_params(p, dtype=None):
    """One-time host-side layout prep: weights transposed to (in, out); packed QKV kept
    packed (single full-width matmul); biases/LN params as (1, n) rows.  `dtype` (e.g.
    jnp.bfloat16) sets the MXU operand dtype for the big weights."""
    cvt = (lambda a: a) if dtype is None else (lambda a: a.astype(dtype))
    row = lambda a: a.reshape(1, -1)
    return {
        "msg_fc_w_t": cvt(p["msg_fc_w"].T), "msg_fc_b": row(p["msg_fc_b"]),
        "msg_ln_g": row(p["msg_ln_g"]), "msg_ln_b": row(p["msg_ln_b"]),
        "msg_wqkv_t": cvt(p["msg_attn_wqkv"].T), "msg_bqkv": row(p["msg_attn_bqkv"]),
        "msg_wo_t": cvt(p["msg_attn_wo"].T), "msg_bo": row(p["msg_attn_bo"]),
        "ln1_g": row(p["ln1_g"]), "ln1_b": row(p["ln1_b"]),
        "attn_wqkv_t": cvt(p["attn_wqkv"].T), "attn_bqkv": row(p["attn_bqkv"]),
        "attn_wo_t": cvt(p["attn_wo"].T), "attn_bo": row(p["attn_bo"]),
        "ln2_g": row(p["ln2_g"]), "ln2_b": row(p["ln2_b"]),
        "mlp_w1_t": cvt(p["mlp_fc_w"].T), "mlp_fc_b": row(p["mlp_fc_b"]),
        "mlp_w2_t": cvt(p["mlp_proj_w"].T), "mlp_proj_b": row(p["mlp_proj_b"]),
    }


# --------------------------------- full block -----------------------------------

@functools.partial(jax.jit, static_argnums=(2, 3))
def cross_frame_attention_block(x, kp, T, n_head):
    L, BT, D = x.shape
    B = BT // T
    vmem = _vmem_limit_bytes()

    # message path: CLS row of every frame (no transpose needed: x[0] is already (BT, D)).
    # All batches in ONE grid step -> fc/LN/QKV/out-proj over B*T rows in full-width matmuls.
    cls = x[0].reshape(B, T, D)
    msg = fused_attn_block(
        cls, kp["msg_ln_g"], kp["msg_ln_b"],
        kp["msg_wqkv_t"], kp["msg_bqkv"], kp["msg_wo_t"], kp["msg_bo"],
        n_head=n_head, pre_w=kp["msg_fc_w_t"], pre_b=kp["msg_fc_b"],
        block_rows=B, vmem_limit=vmem)                               # (B, T, D)

    # main path: fused ln_1 + self-attn over L (+ message kv token) + residual.
    # 2 sequences per grid step when possible (even grid for v7x, bigger matmul M).
    xt = jnp.transpose(x, (1, 0, 2))                                 # (BT, L, D)
    nb = 2 if BT % 2 == 0 else 1
    y = fused_attn_block(
        xt, kp["ln1_g"], kp["ln1_b"],
        kp["attn_wqkv_t"], kp["attn_bqkv"], kp["attn_wo_t"], kp["attn_bo"],
        n_head=n_head, extra=msg.reshape(BT, 1, D),
        block_rows=nb, alias_input=True, vmem_limit=vmem)            # (BT, L, D)

    # mlp path: fused ln_2 + MLP(QuickGELU) + residual, 512-row tiles (masked tail).
    y = fused_mlp_block(
        y.reshape(BT * L, D), kp["ln2_g"], kp["ln2_b"],
        kp["mlp_w1_t"], kp["mlp_fc_b"], kp["mlp_w2_t"], kp["mlp_proj_b"],
        vmem_limit=vmem).reshape(BT, L, D)

    return jnp.transpose(y, (1, 0, 2))                               # back to (L, B*T, D)


# ----------------------------- pure-JAX reference --------------------------------

def _ref_linear(x, w, b):
    return x @ w.T + b


def _ref_ln(x, g, b):
    mu = x.mean(-1, keepdims=True)
    var = ((x - mu) ** 2).mean(-1, keepdims=True)
    return (x - mu) / jnp.sqrt(var + _LN_EPS) * g + b


def _ref_mha(x, wqkv, bqkv, wo, bo, h):
    L, N, D = x.shape
    dh = D // h
    qkv = _ref_linear(x, wqkv, bqkv)
    q, k, v = jnp.split(qkv, 3, axis=-1)

    def sh(t):
        return t.reshape(L, N, h, dh).transpose(1, 2, 0, 3)      # (N, h, L, dh)

    q, k, v = sh(q), sh(k), sh(v)
    s = jnp.einsum('nhld,nhmd->nhlm', q, k) / math.sqrt(dh)
    pw = jax.nn.softmax(s, axis=-1)
    o = jnp.einsum('nhlm,nhmd->nhld', pw, v).transpose(2, 0, 1, 3).reshape(L, N, D)
    return _ref_linear(o, wo, bo)


def ref_block(x, p, T, h):
    L, BT, D = x.shape
    B = BT // T
    xv = x.reshape(L, B, T, D)
    msg = _ref_linear(xv[0], p["msg_fc_w"], p["msg_fc_b"])       # (B, T, D)
    msg = jnp.transpose(msg, (1, 0, 2))                          # (T, B, D)
    msg_ln = _ref_ln(msg, p["msg_ln_g"], p["msg_ln_b"])
    msg = msg + _ref_mha(msg_ln, p["msg_attn_wqkv"], p["msg_attn_bqkv"],
                         p["msg_attn_wo"], p["msg_attn_bo"], h)
    msg = jnp.transpose(msg, (1, 0, 2))[None]                    # (1, B, T, D)
    xcat = jnp.concatenate([xv, msg], axis=0).reshape(L + 1, B * T, D)
    xcat = xcat + _ref_mha(_ref_ln(xcat, p["ln1_g"], p["ln1_b"]),
                           p["attn_wqkv"], p["attn_bqkv"],
                           p["attn_wo"], p["attn_bo"], h)
    xo = xcat[:L]
    hdn = _ref_linear(_ref_ln(xo, p["ln2_g"], p["ln2_b"]), p["mlp_fc_w"], p["mlp_fc_b"])
    hdn = hdn * jax.nn.sigmoid(1.702 * hdn)
    return xo + _ref_linear(hdn, p["mlp_proj_w"], p["mlp_proj_b"])


# ------------------------------------- main ---------------------------------------

if __name__ == "__main__":
    L, B, T, D, H = 8, 2, 2, 32, 4          # seq, batch, frames, d_model, n_head

    key = jax.random.PRNGKey(0)
    keys = jax.random.split(key, 16)

    def nrm(k, shape):
        return (0.02 * jax.random.normal(k, shape)).astype(jnp.float32)

    params = {
        "msg_fc_w": nrm(keys[0], (D, D)),        "msg_fc_b": nrm(keys[1], (D,)),
        "msg_ln_g": jnp.ones((D,), jnp.float32), "msg_ln_b": jnp.zeros((D,), jnp.float32),
        "msg_attn_wqkv": nrm(keys[2], (3 * D, D)), "msg_attn_bqkv": nrm(keys[3], (3 * D,)),
        "msg_attn_wo": nrm(keys[4], (D, D)),     "msg_attn_bo": nrm(keys[5], (D,)),
        "ln1_g": jnp.ones((D,), jnp.float32),    "ln1_b": jnp.zeros((D,), jnp.float32),
        "attn_wqkv": nrm(keys[6], (3 * D, D)),   "attn_bqkv": nrm(keys[7], (3 * D,)),
        "attn_wo": nrm(keys[8], (D, D)),         "attn_bo": nrm(keys[9], (D,)),
        "ln2_g": jnp.ones((D,), jnp.float32),    "ln2_b": jnp.zeros((D,), jnp.float32),
        "mlp_fc_w": nrm(keys[10], (4 * D, D)),   "mlp_fc_b": nrm(keys[11], (4 * D,)),
        "mlp_proj_w": nrm(keys[12], (D, 4 * D)), "mlp_proj_b": nrm(keys[13], (D,)),
    }

    x = jax.random.normal(keys[14], (L, B * T, D), dtype=jnp.float32)

    kp = prepare_params(params)               # one-time weight layout prep (fp32 demo;
                                              # pass dtype=jnp.bfloat16 for bf16 MXU paths)
    out = cross_frame_attention_block(x, kp, T, H)
    out = jax.block_until_ready(out)

    with jax.default_matmul_precision("float32"):
        ref = ref_block(x, params, T, H)

    assert out.shape == (L, B * T, D), out.shape
    err = float(jnp.max(jnp.abs(out - ref)))
    # tolerance loosened slightly vs fp32-exact because the softmax uses the EUP approximate
    # reciprocal (pl.reciprocal(approx=True)) per the perf review.
    assert jnp.allclose(out, ref, atol=5e-3, rtol=5e-3), err

    print("KERNEL_OK")
</pallas_src>

<mosaic_0001>
module attributes {stable_mosaic.version = 11 : i64} {
  func.func @_fused_attn_kernel(%arg0: i32, %arg1: memref<2x8x32xf32, #tpu.memory_space<vmem>>, %arg2: memref<2x1x32xf32, #tpu.memory_space<vmem>>, %arg3: memref<1x32xf32, #tpu.memory_space<vmem>>, %arg4: memref<1x32xf32, #tpu.memory_space<vmem>>, %arg5: memref<32x96xf32, #tpu.memory_space<vmem>>, %arg6: memref<1x96xf32, #tpu.memory_space<vmem>>, %arg7: memref<32x32xf32, #tpu.memory_space<vmem>>, %arg8: memref<1x32xf32, #tpu.memory_space<vmem>>, %arg9: memref<2x8x32xf32, #tpu.memory_space<vmem>>) attributes {dimension_semantics = [#tpu.dimension_semantics<parallel>], iteration_bounds = array<i64: 2>, scalar_prefetch = 0 : i64, scratch_operands = 0 : i64, tpu.core_type = #tpu.core_type<tc>, window_params = [{transform_indices = @transform_0, window_bounds = array<i64: 2, 8, 32>}, {transform_indices = @transform_1, window_bounds = array<i64: 2, 1, 32>}, {pipeline_mode = #tpu.pipeline_mode<synchronous>, transform_indices = @transform_2, window_bounds = array<i64: 1, 32>}, {pipeline_mode = #tpu.pipeline_mode<synchronous>, transform_indices = @transform_3, window_bounds = array<i64: 1, 32>}, {pipeline_mode = #tpu.pipeline_mode<synchronous>, transform_indices = @transform_4, window_bounds = array<i64: 32, 96>}, {pipeline_mode = #tpu.pipeline_mode<synchronous>, transform_indices = @transform_5, window_bounds = array<i64: 1, 96>}, {pipeline_mode = #tpu.pipeline_mode<synchronous>, transform_indices = @transform_6, window_bounds = array<i64: 32, 32>}, {pipeline_mode = #tpu.pipeline_mode<synchronous>, transform_indices = @transform_7, window_bounds = array<i64: 1, 32>}, {transform_indices = @transform_8, window_bounds = array<i64: 2, 8, 32>}]} {
    %c0 = arith.constant 0 : index
    %c0_0 = arith.constant 0 : index
    %0 = vector.load %arg3[%c0, %c0_0] : memref<1x32xf32, #tpu.memory_space<vmem>>, vector<1x32xf32>
    %c0_1 = arith.constant 0 : index
    %c0_2 = arith.constant 0 : index
    %1 = vector.load %arg4[%c0_1, %c0_2] : memref<1x32xf32, #tpu.memory_space<vmem>>, vector<1x32xf32>
    %c0_3 = arith.constant 0 : index
    %c0_4 = arith.constant 0 : index
    %c0_5 = arith.constant 0 : index
    %2 = vector.load %arg1[%c0_3, %c0_4, %c0_5] : memref<2x8x32xf32, #tpu.memory_space<vmem>>, vector<2x8x32xf32>
    %3 = vector.shape_cast %2 : vector<2x8x32xf32> to vector<16x32xf32>
    %cst = arith.constant dense<0.000000e+00> : vector<16xf32>
    %4 = vector.multi_reduction <add>, %3, %cst [1] : vector<16x32xf32> to vector<16xf32>
    %5 = vector.shape_cast %4 : vector<16xf32> to vector<16x1xf32>
    %cst_6 = arith.constant 3.200000e+01 : f32
    %6 = vector.broadcast %cst_6 : f32 to vector<16x1xf32>
    %7 = arith.divf %5, %6 : vector<16x1xf32>
    %8 = vector.broadcast %7 : vector<16x1xf32> to vector<16x32xf32>
    %9 = arith.subf %3, %8 : vector<16x32xf32>
    %10 = arith.mulf %9, %9 : vector<16x32xf32>
    %cst_7 = arith.constant dense<0.000000e+00> : vector<16xf32>
    %11 = vector.multi_reduction <add>, %10, %cst_7 [1] : vector<16x32xf32> to vector<16xf32>
    %12 = vector.shape_cast %11 : vector<16xf32> to vector<16x1xf32>
    %cst_8 = arith.constant 3.200000e+01 : f32
    %13 = vector.broadcast %cst_8 : f32 to vector<16x1xf32>
    %14 = arith.divf %12, %13 : vector<16x1xf32>
    %15 = vector.broadcast %7 : vector<16x1xf32> to vector<16x32xf32>
    %16 = arith.subf %3, %15 : vector<16x32xf32>
    %cst_9 = arith.constant 9.99999974E-6 : f32
    %17 = vector.broadcast %cst_9 : f32 to vector<16x1xf32>
    %18 = arith.addf %14, %17 : vector<16x1xf32>
    %19 = math.rsqrt %18 : vector<16x1xf32>
    %20 = vector.broadcast %19 : vector<16x1xf32> to vector<16x32xf32>
    %21 = arith.mulf %16, %20 : vector<16x32xf32>
    %22 = vector.broadcast %0 : vector<1x32xf32> to vector<16x32xf32>
    %23 = arith.mulf %21, %22 : vector<16x32xf32>
    %24 = vector.broadcast %1 : vector<1x32xf32> to vector<16x32xf32>
    %25 = arith.addf %23, %24 : vector<16x32xf32>
    %c0_10 = arith.constant 0 : index
    %c0_11 = arith.constant 0 : index
    %26 = vector.load %arg6[%c0_10, %c0_11] : memref<1x96xf32, #tpu.memory_space<vmem>>, vector<1x96xf32>
    %c0_12 = arith.constant 0 : index
    %c0_13 = arith.constant 0 : index
    %27 = vector.load %arg5[%c0_12, %c0_13] : memref<32x96xf32, #tpu.memory_space<vmem>>, vector<32x96xf32>
    %cst_14 = arith.constant dense<0.000000e+00> : vector<16x96xf32>
    %28 = tpu.matmul %25, %27, %cst_14 {dimension_numbers = #tpu.dot_dimension_numbers<[1], [0], [0], [1], [0, 0, 1, 1], [], []>} : vector<16x32xf32>, vector<32x96xf32>, vector<16x96xf32> -> vector<16x96xf32>
    %29 = vector.broadcast %26 : vector<1x96xf32> to vector<16x96xf32>
    %30 = arith.addf %28, %29 : vector<16x96xf32>
    %31 = vector.extract_strided_slice %30 {offsets = [0, 0], sizes = [16, 32], strides = [1, 1]} : vector<16x96xf32> to vector<16x32xf32>
    %cst_15 = arith.constant 0.353553385 : f32
    %32 = vector.broadcast %cst_15 : f32 to vector<16x32xf32>
    %33 = arith.mulf %31, %32 : vector<16x32xf32>
    %34 = vector.shape_cast %33 : vector<16x32xf32> to vector<2x8x32xf32>
    %35 = vector.extract_strided_slice %30 {offsets = [0, 32], sizes = [16, 32], strides = [1, 1]} : vector<16x96xf32> to vector<16x32xf32>
    %36 = vector.shape_cast %35 : vector<16x32xf32> to vector<2x8x32xf32>
    %37 = vector.extract_strided_slice %30 {offsets = [0, 64], sizes = [16, 32], strides = [1, 1]} : vector<16x96xf32> to vector<16x32xf32>
    %38 = vector.shape_cast %37 : vector<16x32xf32> to vector<2x8x32xf32>
    %c0_16 = arith.constant 0 : index
    %c0_17 = arith.constant 0 : index
    %c0_18 = arith.constant 0 : index
    %39 = vector.load %arg2[%c0_16, %c0_17, %c0_18] : memref<2x1x32xf32, #tpu.memory_space<vmem>>, vector<2x1x32xf32>
    %40 = vector.shape_cast %39 : vector<2x1x32xf32> to vector<2x32xf32>
    %cst_19 = arith.constant dense<0.000000e+00> : vector<2xf32>
    %41 = vector.multi_reduction <add>, %40, %cst_19 [1] : vector<2x32xf32> to vector<2xf32>
    %42 = vector.shape_cast %41 : vector<2xf32> to vector<2x1xf32>
    %cst_20 = arith.constant 3.200000e+01 : f32
    %43 = vector.broadcast %cst_20 : f32 to vector<2x1xf32>
    %44 = arith.divf %42, %43 : vector<2x1xf32>
    %45 = vector.broadcast %44 : vector<2x1xf32> to vector<2x32xf32>
    %46 = arith.subf %40, %45 : vector<2x32xf32>
    %47 = arith.mulf %46, %46 : vector<2x32xf32>
    %cst_21 = arith.constant dense<0.000000e+00> : vector<2xf32>
    %48 = vector.multi_reduction <add>, %47, %cst_21 [1] : vector<2x32xf32> to vector<2xf32>
    %49 = vector.shape_cast %48 : vector<2xf32> to vector<2x1xf32>
    %cst_22 = arith.constant 3.200000e+01 : f32
    %50 = vector.broadcast %cst_22 : f32 to vector<2x1xf32>
    %51 = arith.divf %49, %50 : vector<2x1xf32>
    %52 = vector.broadcast %44 : vector<2x1xf32> to vector<2x32xf32>
    %53 = arith.subf %40, %52 : vector<2x32xf32>
    %cst_23 = arith.constant 9.99999974E-6 : f32
    %54 = vector.broadcast %cst_23 : f32 to vector<2x1xf32>
    %55 = arith.addf %51, %54 : vector<2x1xf32>
    %56 = math.rsqrt %55 : vector<2x1xf32>
    %57 = vector.broadcast %56 : vector<2x1xf32> to vector<2x32xf32>
    %58 = arith.mulf %53, %57 : vector<2x32xf32>
    %59 = vector.broadcast %0 : vector<1x32xf32> to vector<2x32xf32>
    %60 = arith.mulf %58, %59 : vector<2x32xf32>
    %61 = vector.broadcast %1 : vector<1x32xf32> to vector<2x32xf32>
    %62 = arith.addf %60, %61 : vector<2x32xf32>
    %c0_24 = arith.constant 0 : index
    %c0_25 = arith.constant 0 : index
    %63 = vector.load %arg5[%c0_24, %c0_25] : memref<32x96xf32, #tpu.memory_space<vmem>>, vector<32x96xf32>
    %cst_26 = arith.constant dense<0.000000e+00> : vector<2x96xf32>
    %64 = tpu.matmul %62, %63, %cst_26 {dimension_numbers = #tpu.dot_dimension_numbers<[1], [0], [0], [1], [0, 0, 1, 1], [], []>} : vector<2x32xf32>, vector<32x96xf32>, vector<2x96xf32> -> vector<2x96xf32>
    %65 = vector.broadcast %26 : vector<1x96xf32> to vector<2x96xf32>
    %66 = arith.addf %64, %65 : vector<2x96xf32>
    %67 = vector.extract_strided_slice %66 {offsets = [0, 32], sizes = [2, 32], strides = [1, 1]} : vector<2x96xf32> to vector<2x32xf32>
    %68 = vector.shape_cast %67 : vector<2x32xf32> to vector<2x1x32xf32>
    %69 = vector.extract_strided_slice %66 {offsets = [0, 64], sizes = [2, 32], strides = [1, 1]} : vector<2x96xf32> to vector<2x32xf32>
    %70 = vector.shape_cast %69 : vector<2x32xf32> to vector<2x1x32xf32>
    %71 = vector.extract_strided_slice %34 {offsets = [0, 0, 0], sizes = [2, 8, 8], strides = [1, 1, 1]} : vector<2x8x32xf32> to vector<2x8x8xf32>
    %72 = vector.extract_strided_slice %36 {offsets = [0, 0, 0], sizes = [2, 8, 8], strides = [1, 1, 1]} : vector<2x8x32xf32> to vector<2x8x8xf32>
    %73 = vector.extract_strided_slice %38 {offsets = [0, 0, 0], sizes = [2, 8, 8], strides = [1, 1, 1]} : vector<2x8x32xf32> to vector<2x8x8xf32>
    "tpu.trace_start"() <{level = 10 : i32, message = "bqd,bkd->bqk"}> : () -> ()
    %cst_27 = arith.constant dense<0.000000e+00> : vector<2x8x8xf32>
    %74 = tpu.matmul %71, %72, %cst_27 {dimension_numbers = #tpu.dot_dimension_numbers<[2], [2], [1], [1], [0, 0, 0, 1, 1, 1], [0], [0]>} : vector<2x8x8xf32>, vector<2x8x8xf32>, vector<2x8x8xf32> -> vector<2x8x8xf32>
    "tpu.trace_stop"() : () -> ()
    %75 = vector.extract_strided_slice %68 {offsets = [0, 0, 0], sizes = [2, 1, 8], strides = [1, 1, 1]} : vector<2x1x32xf32> to vector<2x1x8xf32>
    %76 = vector.broadcast %75 : vector<2x1x8xf32> to vector<2x8x8xf32>
    %77 = arith.mulf %71, %76 : vector<2x8x8xf32>
    %cst_28 = arith.constant dense<0.000000e+00> : vector<2x8xf32>
    %78 = vector.multi_reduction <add>, %77, %cst_28 [2] : vector<2x8x8xf32> to vector<2x8xf32>
    %79 = vector.shape_cast %78 : vector<2x8xf32> to vector<2x8x1xf32>
    %cst_29 = arith.constant dense<0xFF800000> : vector<2x8xf32>
    %80 = vector.multi_reduction <maximumf>, %74, %cst_29 [2] : vector<2x8x8xf32> to vector<2x8xf32>
    %81 = vector.shape_cast %80 : vector<2x8xf32> to vector<2x8x1xf32>
    %82 = arith.maximumf %81, %79 : vector<2x8x1xf32>
    %83 = vector.broadcast %82 : vector<2x8x1xf32> to vector<2x8x8xf32>
    %84 = arith.subf %74, %83 : vector<2x8x8xf32>
    %85 = math.exp %84 : vector<2x8x8xf32>
    %86 = arith.subf %79, %82 : vector<2x8x1xf32>
    %87 = math.exp %86 : vector<2x8x1xf32>
    %cst_30 = arith.constant dense<0.000000e+00> : vector<2x8xf32>
    %88 = vector.multi_reduction <add>, %85, %cst_30 [2] : vector<2x8x8xf32> to vector<2x8xf32>
    %89 = vector.shape_cast %88 : vector<2x8xf32> to vector<2x8x1xf32>
    %90 = arith.addf %89, %87 : vector<2x8x1xf32>
    "tpu.trace_start"() <{level = 10 : i32, message = "bqk,bkd->bqd"}> : () -> ()
    %cst_31 = arith.constant dense<0.000000e+00> : vector<2x8x8xf32>
    %91 = tpu.matmul %85, %73, %cst_31 {dimension_numbers = #tpu.dot_dimension_numbers<[2], [1], [1], [2], [0, 0, 0, 1, 1, 2], [0], [0]>} : vector<2x8x8xf32>, vector<2x8x8xf32>, vector<2x8x8xf32> -> vector<2x8x8xf32>
    "tpu.trace_stop"() : () -> ()
    %92 = vector.extract_strided_slice %70 {offsets = [0, 0, 0], sizes = [2, 1, 8], strides = [1, 1, 1]} : vector<2x1x32xf32> to vector<2x1x8xf32>
    %93 = vector.broadcast %87 : vector<2x8x1xf32> to vector<2x8x8xf32>
    %94 = vector.broadcast %92 : vector<2x1x8xf32> to vector<2x8x8xf32>
    %95 = arith.mulf %93, %94 : vector<2x8x8xf32>
    %96 = arith.addf %91, %95 : vector<2x8x8xf32>
    %97 = tpu.reciprocal %90 {approx = true} : vector<2x8x1xf32> -> vector<2x8x1xf32>
    %98 = vector.broadcast %97 : vector<2x8x1xf32> to vector<2x8x8xf32>
    %99 = arith.mulf %96, %98 : vector<2x8x8xf32>
    %100 = vector.extract_strided_slice %34 {offsets = [0, 0, 8], sizes = [2, 8, 8], strides = [1, 1, 1]} : vector<2x8x32xf32> to vector<2x8x8xf32>
    %101 = vector.extract_strided_slice %36 {offsets = [0, 0, 8], sizes = [2, 8, 8], strides = [1, 1, 1]} : vector<2x8x32xf32> to vector<2x8x8xf32>
    %102 = vector.extract_strided_slice %38 {offsets = [0, 0, 8], sizes = [2, 8, 8], strides = [1, 1, 1]} : vector<2x8x32xf32> to vector<2x8x8xf32>
    "tpu.trace_start"() <{level = 10 : i32, message = "bqd,bkd->bqk"}> : () -> ()
    %cst_32 = arith.constant dense<0.000000e+00> : vector<2x8x8xf32>
    %103 = tpu.matmul %100, %101, %cst_32 {dimension_numbers = #tpu.dot_dimension_numbers<[2], [2], [1], [1], [0, 0, 0, 1, 1, 1], [0], [0]>} : vector<2x8x8xf32>, vector<2x8x8xf32>, vector<2x8x8xf32> -> vector<2x8x8xf32>
    "tpu.trace_stop"() : () -> ()
    %104 = vector.extract_strided_slice %68 {offsets = [0, 0, 8], sizes = [2, 1, 8], strides = [1, 1, 1]} : vector<2x1x32xf32> to vector<2x1x8xf32>
    %105 = vector.broadcast %104 : vector<2x1x8xf32> to vector<2x8x8xf32>
    %106 = arith.mulf %100, %105 : vector<2x8x8xf32>
    %cst_33 = arith.constant dense<0.000000e+00> : vector<2x8xf32>
    %107 = vector.multi_reduction <add>, %106, %cst_33 [2] : vector<2x8x8xf32> to vector<2x8xf32>
    %108 = vector.shape_cast %107 : vector<2x8xf32> to vector<2x8x1xf32>
    %cst_34 = arith.constant dense<0xFF800000> : vector<2x8xf32>
    %109 = vector.multi_reduction <maximumf>, %103, %cst_34 [2] : vector<2x8x8xf32> to vector<2x8xf32>
    %110 = vector.shape_cast %109 : vector<2x8xf32> to vector<2x8x1xf32>
    %111 = arith.maximumf %110, %108 : vector<2x8x1xf32>
    %112 = vector.broadcast %111 : vector<2x8x1xf32> to vector<2x8x8xf32>
    %113 = arith.subf %103, %112 : vector<2x8x8xf32>
    %114 = math.exp %113 : vector<2x8x8xf32>
    %115 = arith.subf %108, %111 : vector<2x8x1xf32>
    %116 = math.exp %115 : vector<2x8x1xf32>
    %cst_35 = arith.constant dense<0.000000e+00> : vector<2x8xf32>
    %117 = vector.multi_reduction <add>, %114, %cst_35 [2] : vector<2x8x8xf32> to vector<2x8xf32>
    %118 = vector.shape_cast %117 : vector<2x8xf32> to vector<2x8x1xf32>
    %119 = arith.addf %118, %116 : vector<2x8x1xf32>
    "tpu.trace_start"() <{level = 10 : i32, message = "bqk,bkd->bqd"}> : () -> ()
    %cst_36 = arith.constant dense<0.000000e+00> : vector<2x8x8xf32>
    %120 = tpu.matmul %114, %102, %cst_36 {dimension_numbers = #tpu.dot_dimension_numbers<[2], [1], [1], [2], [0, 0, 0, 1, 1, 2], [0], [0]>} : vector<2x8x8xf32>, vector<2x8x8xf32>, vector<2x8x8xf32> -> vector<2x8x8xf32>
    "tpu.trace_stop"() : () -> ()
    %121 = vector.extract_strided_slice %70 {offsets = [0, 0, 8], sizes = [2, 1, 8], strides = [1, 1, 1]} : vector<2x1x32xf32> to vector<2x1x8xf32>
    %122 = vector.broadcast %116 : vector<2x8x1xf32> to vector<2x8x8xf32>
    %123 = vector.broadcast %121 : vector<2x1x8xf32> to vector<2x8x8xf32>
    %124 = arith.mulf %122, %123 : vector<2x8x8xf32>
    %125 = arith.addf %120, %124 : vector<2x8x8xf32>
    %126 = tpu.reciprocal %119 {approx = true} : vector<2x8x1xf32> -> vector<2x8x1xf32>
    %127 = vector.broadcast %126 : vector<2x8x1xf32> to vector<2x8x8xf32>
    %128 = arith.mulf %125, %127 : vector<2x8x8xf32>
    %129 = vector.extract_strided_slice %34 {offsets = [0, 0, 16], sizes = [2, 8, 8], strides = [1, 1, 1]} : vector<2x8x32xf32> to vector<2x8x8xf32>
    %130 = vector.extract_strided_slice %36 {offsets = [0, 0, 16], sizes = [2, 8, 8], strides = [1, 1, 1]} : vector<2x8x32xf32> to vector<2x8x8xf32>
    %131 = vector.extract_strided_slice %38 {offsets = [0, 0, 16], sizes = [2, 8, 8], strides = [1, 1, 1]} : vector<2x8x32xf32> to vector<2x8x8xf32>
    "tpu.trace_start"() <{level = 10 : i32, message = "bqd,bkd->bqk"}> : () -> ()
    %cst_37 = arith.constant dense<0.000000e+00> : vector<2x8x8xf32>
    %132 = tpu.matmul %129, %130, %cst_37 {dimension_numbers = #tpu.dot_dimension_numbers<[2], [2], [1], [1], [0, 0, 0, 1, 1, 1], [0], [0]>} : vector<2x8x8xf32>, vector<2x8x8xf32>, vector<2x8x8xf32> -> vector<2x8x8xf32>
    "tpu.trace_stop"() : () -> ()
    %133 = vector.extract_strided_slice %68 {offsets = [0, 0, 16], sizes = [2, 1, 8], strides = [1, 1, 1]} : vector<2x1x32xf32> to vector<2x1x8xf32>
    %134 = vector.broadcast %133 : vector<2x1x8xf32> to vector<2x8x8xf32>
    %135 = arith.mulf %129, %134 : vector<2x8x8xf32>
    %cst_38 = arith.constant dense<0.000000e+00> : vector<2x8xf32>
    %136 = vector.multi_reduction <add>, %135, %cst_38 [2] : vector<2x8x8xf32> to vector<2x8xf32>
    %137 = vector.shape_cast %136 : vector<2x8xf32> to vector<2x8x1xf32>
    %cst_39 = arith.constant dense<0xFF800000> : vector<2x8xf32>
    %138 = vector.multi_reduction <maximumf>, %132, %cst_39 [2] : vector<2x8x8xf32> to vector<2x8xf32>
    %139 = vector.shape_cast %138 : vector<2x8xf32> to vector<2x8x1xf32>
    %140 = arith.maximumf %139, %137 : vector<2x8x1xf32>
    %141 = vector.broadcast %140 : vector<2x8x1xf32> to vector<2x8x8xf32>
    %142 = arith.subf %132, %141 : vector<2x8x8xf32>
    %143 = math.exp %142 : vector<2x8x8xf32>
    %144 = arith.subf %137, %140 : vector<2x8x1xf32>
    %145 = math.exp %144 : vector<2x8x1xf32>
    %cst_40 = arith.constant dense<0.000000e+00> : vector<2x8xf32>
    %146 = vector.multi_reduction <add>, %143, %cst_40 [2] : vector<2x8x8xf32> to vector<2x8xf32>
    %147 = vector.shape_cast %146 : vector<2x8xf32> to vector<2x8x1xf32>
    %148 = arith.addf %147, %145 : vector<2x8x1xf32>
    "tpu.trace_start"() <{level = 10 : i32, message = "bqk,bkd->bqd"}> : () -> ()
    %cst_41 = arith.constant dense<0.000000e+00> : vector<2x8x8xf32>
    %149 = tpu.matmul %143, %131, %cst_41 {dimension_numbers = #tpu.dot_dimension_numbers<[2], [1], [1], [2], [0, 0, 0, 1, 1, 2], [0], [0]>} : vector<2x8x8xf32>, vector<2x8x8xf32>, vector<2x8x8xf32> -> vector<2x8x8xf32>
    "tpu.trace_stop"() : () -> ()
    %150 = vector.extract_strided_slice %70 {offsets = [0, 0, 16], sizes = [2, 1, 8], strides = [1, 1, 1]} : vector<2x1x32xf32> to vector<2x1x8xf32>
    %151 = vector.broadcast %145 : vector<2x8x1xf32> to vector<2x8x8xf32>
    %152 = vector.broadcast %150 : vector<2x1x8xf32> to vector<2x8x8xf32>
    %153 = arith.mulf %151, %152 : vector<2x8x8xf32>
    %154 = arith.addf %149, %153 : vector<2x8x8xf32>
    %155 = tpu.reciprocal %148 {approx = true} : vector<2x8x1xf32> -> vector<2x8x1xf32>
    %156 = vector.broadcast %155 : vector<2x8x1xf32> to vector<2x8x8xf32>
    %157 = arith.mulf %154, %156 : vector<2x8x8xf32>
    %158 = vector.extract_strided_slice %34 {offsets = [0, 0, 24], sizes = [2, 8, 8], strides = [1, 1, 1]} : vector<2x8x32xf32> to vector<2x8x8xf32>
    %159 = vector.extract_strided_slice %36 {offsets = [0, 0, 24], sizes = [2, 8, 8], strides = [1, 1, 1]} : vector<2x8x32xf32> to vector<2x8x8xf32>
    %160 = vector.extract_strided_slice %38 {offsets = [0, 0, 24], sizes = [2, 8, 8], strides = [1, 1, 1]} : vector<2x8x32xf32> to vector<2x8x8xf32>
    "tpu.trace_start"() <{level = 10 : i32, message = "bqd,bkd->bqk"}> : () -> ()
    %cst_42 = arith.constant dense<0.000000e+00> : vector<2x8x8xf32>
    %161 = tpu.matmul %158, %159, %cst_42 {dimension_numbers = #tpu.dot_dimension_numbers<[2], [2], [1], [1], [0, 0, 0, 1, 1, 1], [0], [0]>} : vector<2x8x8xf32>, vector<2x8x8xf32>, vector<2x8x8xf32> -> vector<2x8x8xf32>
    "tpu.trace_stop"() : () -> ()
    %162 = vector.extract_strided_slice %68 {offsets = [0, 0, 24], sizes = [2, 1, 8], strides = [1, 1, 1]} : vector<2x1x32xf32> to vector<2x1x8xf32>
    %163 = vector.broadcast %162 : vector<2x1x8xf32> to vector<2x8x8xf32>
    %164 = arith.mulf %158, %163 : vector<2x8x8xf32>
    %cst_43 = arith.constant dense<0.000000e+00> : vector<2x8xf32>
    %165 = vector.multi_reduction <add>, %164, %cst_43 [2] : vector<2x8x8xf32> to vector<2x8xf32>
    %166 = vector.shape_cast %165 : vector<2x8xf32> to vector<2x8x1xf32>
    %cst_44 = arith.constant dense<0xFF800000> : vector<2x8xf32>
    %167 = vector.multi_reduction <maximumf>, %161, %cst_44 [2] : vector<2x8x8xf32> to vector<2x8xf32>
    %168 = vector.shape_cast %167 : vector<2x8xf32> to vector<2x8x1xf32>
    %169 = arith.maximumf %168, %166 : vector<2x8x1xf32>
    %170 = vector.broadcast %169 : vector<2x8x1xf32> to vector<2x8x8xf32>
    %171 = arith.subf %161, %170 : vector<2x8x8xf32>
    %172 = math.exp %171 : vector<2x8x8xf32>
    %173 = arith.subf %166, %169 : vector<2x8x1xf32>
    %174 = math.exp %173 : vector<2x8x1xf32>
    %cst_45 = arith.constant dense<0.000000e+00> : vector<2x8xf32>
    %175 = vector.multi_reduction <add>, %172, %cst_45 [2] : vector<2x8x8xf32> to vector<2x8xf32>
    %176 = vector.shape_cast %175 : vector<2x8xf32> to vector<2x8x1xf32>
    %177 = arith.addf %176, %174 : vector<2x8x1xf32>
    "tpu.trace_start"() <{level = 10 : i32, message = "bqk,bkd->bqd"}> : () -> ()
    %cst_46 = arith.constant dense<0.000000e+00> : vector<2x8x8xf32>
    %178 = tpu.matmul %172, %160, %cst_46 {dimension_numbers = #tpu.dot_dimension_numbers<[2], [1], [1], [2], [0, 0, 0, 1, 1, 2], [0], [0]>} : vector<2x8x8xf32>, vector<2x8x8xf32>, vector<2x8x8xf32> -> vector<2x8x8xf32>
    "tpu.trace_stop"() : () -> ()
    %179 = vector.extract_strided_slice %70 {offsets = [0, 0, 24], sizes = [2, 1, 8], strides = [1, 1, 1]} : vector<2x1x32xf32> to vector<2x1x8xf32>
    %180 = vector.broadcast %174 : vector<2x8x1xf32> to vector<2x8x8xf32>
    %181 = vector.broadcast %179 : vector<2x1x8xf32> to vector<2x8x8xf32>
    %182 = arith.mulf %180, %181 : vector<2x8x8xf32>
    %183 = arith.addf %178, %182 : vector<2x8x8xf32>
    %184 = tpu.reciprocal %177 {approx = true} : vector<2x8x1xf32> -> vector<2x8x1xf32>
    %185 = vector.broadcast %184 : vector<2x8x1xf32> to vector<2x8x8xf32>
    %186 = arith.mulf %183, %185 : vector<2x8x8xf32>
    %187 = tpu.concatenate %99, %128, %157, %186 in 2 : vector<2x8x8xf32>, vector<2x8x8xf32>, vector<2x8x8xf32>, vector<2x8x8xf32> -> vector<2x8x32xf32>
    %188 = vector.shape_cast %187 : vector<2x8x32xf32> to vector<16x32xf32>
    %c0_47 = arith.constant 0 : index
    %c0_48 = arith.constant 0 : index
    %189 = vector.load %arg7[%c0_47, %c0_48] : memref<32x32xf32, #tpu.memory_space<vmem>>, vector<32x32xf32>
    %cst_49 = arith.constant dense<0.000000e+00> : vector<16x32xf32>
    %190 = tpu.matmul %188, %189, %cst_49 {dimension_numbers = #tpu.dot_dimension_numbers<[1], [0], [0], [1], [0, 0, 1, 1], [], []>} : vector<16x32xf32>, vector<32x32xf32>, vector<16x32xf32> -> vector<16x32xf32>
    %c0_50 = arith.constant 0 : index
    %c0_51 = arith.constant 0 : index
    %191 = vector.load %arg8[%c0_50, %c0_51] : memref<1x32xf32, #tpu.memory_space<vmem>>, vector<1x32xf32>
    %192 = vector.broadcast %191 : vector<1x32xf32> to vector<16x32xf32>
    %193 = arith.addf %190, %192 : vector<16x32xf32>
    %194 = arith.addf %3, %193 : vector<16x32xf32>
    %195 = vector.shape_cast %194 : vector<16x32xf32> to vector<2x8x32xf32>
    %c0_52 = arith.constant 0 : index
    %c0_53 = arith.constant 0 : index
    %c0_54 = arith.constant 0 : index
    %196 = vector.load %arg9[%c0_52, %c0_53, %c0_54] : memref<2x8x32xf32, #tpu.memory_space<vmem>>, vector<2x8x32xf32>
    tpu.vector_store %arg9[%c0_52, %c0_53, %c0_54], %195 {strides = array<i32>} : memref<2x8x32xf32, #tpu.memory_space<vmem>>, vector<2x8x32xf32>,
    return
  }
  func.func @transform_0(%arg0: i32) -> (i32, i32, i32) {
    %c0_i32 = arith.constant 0 : i32
    %c0_i32_0 = arith.constant 0 : i32
    %c0_i32_1 = arith.constant 0 : i32
    return %arg0, %c0_i32, %c0_i32_0 : i32, i32, i32
  }
  func.func @transform_1(%arg0: i32) -> (i32, i32, i32) {
    %c0_i32 = arith.constant 0 : i32
    %c0_i32_0 = arith.constant 0 : i32
    %c0_i32_1 = arith.constant 0 : i32
    return %arg0, %c0_i32, %c0_i32_0 : i32, i32, i32
  }
  func.func @transform_2(%arg0: i32) -> (i32, i32) {
    %c0_i32 = arith.constant 0 : i32
    %c0_i32_0 = arith.constant 0 : i32
    %c0_i32_1 = arith.constant 0 : i32
    return %c0_i32, %c0_i32_0 : i32, i32
  }
  func.func @transform_3(%arg0: i32) -> (i32, i32) {
    %c0_i32 = arith.constant 0 : i32
    %c0_i32_0 = arith.constant 0 : i32
    %c0_i32_1 = arith.constant 0 : i32
    return %c0_i32, %c0_i32_0 : i32, i32
  }
  func.func @transform_4(%arg0: i32) -> (i32, i32) {
    %c0_i32 = arith.constant 0 : i32
    %c0_i32_0 = arith.constant 0 : i32
    %c0_i32_1 = arith.constant 0 : i32
    return %c0_i32, %c0_i32_0 : i32, i32
  }
  func.func @transform_5(%arg0: i32) -> (i32, i32) {
    %c0_i32 = arith.constant 0 : i32
    %c0_i32_0 = arith.constant 0 : i32
    %c0_i32_1 = arith.constant 0 : i32
    return %c0_i32, %c0_i32_0 : i32, i32
  }
  func.func @transform_6(%arg0: i32) -> (i32, i32) {
    %c0_i32 = arith.constant 0 : i32
    %c0_i32_0 = arith.constant 0 : i32
    %c0_i32_1 = arith.constant 0 : i32
    return %c0_i32, %c0_i32_0 : i32, i32
  }
  func.func @transform_7(%arg0: i32) -> (i32, i32) {
    %c0_i32 = arith.constant 0 : i32
    %c0_i32_0 = arith.constant 0 : i32
    %c0_i32_1 = arith.constant 0 : i32
    return %c0_i32, %c0_i32_0 : i32, i32
  }
  func.func @transform_8(%arg0: i32) -> (i32, i32, i32) {
    %c0_i32 = arith.constant 0 : i32
    %c0_i32_0 = arith.constant 0 : i32
    %c0_i32_1 = arith.constant 0 : i32
    return %arg0, %c0_i32, %c0_i32_0 : i32, i32, i32
  }
}

module attributes {stable_mosaic.version = 11 : i64} {
  func.func @_fused_attn_kernel(%arg0: i32, %arg1: memref<2x2x32xf32, #tpu.memory_space<vmem>>, %arg2: memref<32x32xf32, #tpu.memory_space<vmem>>, %arg3: memref<1x32xf32, #tpu.memory_space<vmem>>, %arg4: memref<1x32xf32, #tpu.memory_space<vmem>>, %arg5: memref<1x32xf32, #tpu.memory_space<vmem>>, %arg6: memref<32x96xf32, #tpu.memory_space<vmem>>, %arg7: memref<1x96xf32, #tpu.memory_space<vmem>>, %arg8: memref<32x32xf32, #tpu.memory_space<vmem>>, %arg9: memref<1x32xf32, #tpu.memory_space<vmem>>, %arg10: memref<2x2x32xf32, #tpu.memory_space<vmem>>) attributes {dimension_semantics = [#tpu.dimension_semantics<parallel>], iteration_bounds = array<i64: 1>, scalar_prefetch = 0 : i64, scratch_operands = 0 : i64, tpu.core_type = #tpu.core_type<tc>, window_params = [{transform_indices = @transform_0, window_bounds = array<i64: 2, 2, 32>}, {pipeline_mode = #tpu.pipeline_mode<synchronous>, transform_indices = @transform_1, window_bounds = array<i64: 32, 32>}, {pipeline_mode = #tpu.pipeline_mode<synchronous>, transform_indices = @transform_2, window_bounds = array<i64: 1, 32>}, {pipeline_mode = #tpu.pipeline_mode<synchronous>, transform_indices = @transform_3, window_bounds = array<i64: 1, 32>}, {pipeline_mode = #tpu.pipeline_mode<synchronous>, transform_indices = @transform_4, window_bounds = array<i64: 1, 32>}, {pipeline_mode = #tpu.pipeline_mode<synchronous>, transform_indices = @transform_5, window_bounds = array<i64: 32, 96>}, {pipeline_mode = #tpu.pipeline_mode<synchronous>, transform_indices = @transform_6, window_bounds = array<i64: 1, 96>}, {pipeline_mode = #tpu.pipeline_mode<synchronous>, transform_indices = @transform_7, window_bounds = array<i64: 32, 32>}, {pipeline_mode = #tpu.pipeline_mode<synchronous>, transform_indices = @transform_8, window_bounds = array<i64: 1, 32>}, {transform_indices = @transform_9, window_bounds = array<i64: 2, 2, 32>}]} {
    %c0 = arith.constant 0 : index
    %c0_0 = arith.constant 0 : index
    %0 = vector.load %arg4[%c0, %c0_0] : memref<1x32xf32, #tpu.memory_space<vmem>>, vector<1x32xf32>
    %c0_1 = arith.constant 0 : index
    %c0_2 = arith.constant 0 : index
    %1 = vector.load %arg5[%c0_1, %c0_2] : memref<1x32xf32, #tpu.memory_space<vmem>>, vector<1x32xf32>
    %c0_3 = arith.constant 0 : index
    %c0_4 = arith.constant 0 : index
    %c0_5 = arith.constant 0 : index
    %2 = vector.load %arg1[%c0_3, %c0_4, %c0_5] : memref<2x2x32xf32, #tpu.memory_space<vmem>>, vector<2x2x32xf32>
    %3 = vector.shape_cast %2 : vector<2x2x32xf32> to vector<4x32xf32>
    %c0_6 = arith.constant 0 : index
    %c0_7 = arith.constant 0 : index
    %4 = vector.load %arg2[%c0_6, %c0_7] : memref<32x32xf32, #tpu.memory_space<vmem>>, vector<32x32xf32>
    %cst = arith.constant dense<0.000000e+00> : vector<4x32xf32>
    %5 = tpu.matmul %3, %4, %cst {dimension_numbers = #tpu.dot_dimension_numbers<[1], [0], [0], [1], [0, 0, 1, 1], [], []>} : vector<4x32xf32>, vector<32x32xf32>, vector<4x32xf32> -> vector<4x32xf32>
    %c0_8 = arith.constant 0 : index
    %c0_9 = arith.constant 0 : index
    %6 = vector.load %arg3[%c0_8, %c0_9] : memref<1x32xf32, #tpu.memory_space<vmem>>, vector<1x32xf32>
    %7 = vector.broadcast %6 : vector<1x32xf32> to vector<4x32xf32>
    %8 = arith.addf %5, %7 : vector<4x32xf32>
    %cst_10 = arith.constant dense<0.000000e+00> : vector<4xf32>
    %9 = vector.multi_reduction <add>, %8, %cst_10 [1] : vector<4x32xf32> to vector<4xf32>
    %10 = vector.shape_cast %9 : vector<4xf32> to vector<4x1xf32>
    %cst_11 = arith.constant 3.200000e+01 : f32
    %11 = vector.broadcast %cst_11 : f32 to vector<4x1xf32>
    %12 = arith.divf %10, %11 : vector<4x1xf32>
    %13 = vector.broadcast %12 : vector<4x1xf32> to vector<4x32xf32>
    %14 = arith.subf %8, %13 : vector<4x32xf32>
    %15 = arith.mulf %14, %14 : vector<4x32xf32>
    %cst_12 = arith.constant dense<0.000000e+00> : vector<4xf32>
    %16 = vector.multi_reduction <add>, %15, %cst_12 [1] : vector<4x32xf32> to vector<4xf32>
    %17 = vector.shape_cast %16 : vector<4xf32> to vector<4x1xf32>
    %cst_13 = arith.constant 3.200000e+01 : f32
    %18 = vector.broadcast %cst_13 : f32 to vector<4x1xf32>
    %19 = arith.divf %17, %18 : vector<4x1xf32>
    %20 = vector.broadcast %12 : vector<4x1xf32> to vector<4x32xf32>
    %21 = arith.subf %8, %20 : vector<4x32xf32>
    %cst_14 = arith.constant 9.99999974E-6 : f32
    %22 = vector.broadcast %cst_14 : f32 to vector<4x1xf32>
    %23 = arith.addf %19, %22 : vector<4x1xf32>
    %24 = math.rsqrt %23 : vector<4x1xf32>
    %25 = vector.broadcast %24 : vector<4x1xf32> to vector<4x32xf32>
    %26 = arith.mulf %21, %25 : vector<4x32xf32>
    %27 = vector.broadcast %0 : vector<1x32xf32> to vector<4x32xf32>
    %28 = arith.mulf %26, %27 : vector<4x32xf32>
    %29 = vector.broadcast %1 : vector<1x32xf32> to vector<4x32xf32>
    %30 = arith.addf %28, %29 : vector<4x32xf32>
    %c0_15 = arith.constant 0 : index
    %c0_16 = arith.constant 0 : index
    %31 = vector.load %arg7[%c0_15, %c0_16] : memref<1x96xf32, #tpu.memory_space<vmem>>, vector<1x96xf32>
    %c0_17 = arith.constant 0 : index
    %c0_18 = arith.constant 0 : index
    %32 = vector.load %arg6[%c0_17, %c0_18] : memref<32x96xf32, #tpu.memory_space<vmem>>, vector<32x96xf32>
    %cst_19 = arith.constant dense<0.000000e+00> : vector<4x96xf32>
    %33 = tpu.matmul %30, %32, %cst_19 {dimension_numbers = #tpu.dot_dimension_numbers<[1], [0], [0], [1], [0, 0, 1, 1], [], []>} : vector<4x32xf32>, vector<32x96xf32>, vector<4x96xf32> -> vector<4x96xf32>
    %34 = vector.broadcast %31 : vector<1x96xf32> to vector<4x96xf32>
    %35 = arith.addf %33, %34 : vector<4x96xf32>
    %36 = vector.extract_strided_slice %35 {offsets = [0, 0], sizes = [4, 32], strides = [1, 1]} : vector<4x96xf32> to vector<4x32xf32>
    %cst_20 = arith.constant 0.353553385 : f32
    %37 = vector.broadcast %cst_20 : f32 to vector<4x32xf32>
    %38 = arith.mulf %36, %37 : vector<4x32xf32>
    %39 = vector.shape_cast %38 : vector<4x32xf32> to vector<2x2x32xf32>
    %40 = vector.extract_strided_slice %35 {offsets = [0, 32], sizes = [4, 32], strides = [1, 1]} : vector<4x96xf32> to vector<4x32xf32>
    %41 = vector.shape_cast %40 : vector<4x32xf32> to vector<2x2x32xf32>
    %42 = vector.extract_strided_slice %35 {offsets = [0, 64], sizes = [4, 32], strides = [1, 1]} : vector<4x96xf32> to vector<4x32xf32>
    %43 = vector.shape_cast %42 : vector<4x32xf32> to vector<2x2x32xf32>
    %44 = vector.extract_strided_slice %39 {offsets = [0, 0, 0], sizes = [2, 2, 8], strides = [1, 1, 1]} : vector<2x2x32xf32> to vector<2x2x8xf32>
    %45 = vector.extract_strided_slice %41 {offsets = [0, 0, 0], sizes = [2, 2, 8], strides = [1, 1, 1]} : vector<2x2x32xf32> to vector<2x2x8xf32>
    %46 = vector.extract_strided_slice %43 {offsets = [0, 0, 0], sizes = [2, 2, 8], strides = [1, 1, 1]} : vector<2x2x32xf32> to vector<2x2x8xf32>
    "tpu.trace_start"() <{level = 10 : i32, message = "bqd,bkd->bqk"}> : () -> ()
    %cst_21 = arith.constant dense<0.000000e+00> : vector<2x2x2xf32>
    %47 = tpu.matmul %44, %45, %cst_21 {dimension_numbers = #tpu.dot_dimension_numbers<[2], [2], [1], [1], [0, 0, 0, 1, 1, 1], [0], [0]>} : vector<2x2x8xf32>, vector<2x2x8xf32>, vector<2x2x2xf32> -> vector<2x2x2xf32>
    "tpu.trace_stop"() : () -> ()
    %cst_22 = arith.constant dense<0xFF800000> : vector<2x2xf32>
    %48 = vector.multi_reduction <maximumf>, %47, %cst_22 [2] : vector<2x2x2xf32> to vector<2x2xf32>
    %49 = vector.shape_cast %48 : vector<2x2xf32> to vector<2x2x1xf32>
    %50 = vector.broadcast %49 : vector<2x2x1xf32> to vector<2x2x2xf32>
    %51 = arith.subf %47, %50 : vector<2x2x2xf32>
    %52 = math.exp %51 : vector<2x2x2xf32>
    %cst_23 = arith.constant dense<0.000000e+00> : vector<2x2xf32>
    %53 = vector.multi_reduction <add>, %52, %cst_23 [2] : vector<2x2x2xf32> to vector<2x2xf32>
    %54 = vector.shape_cast %53 : vector<2x2xf32> to vector<2x2x1xf32>
    "tpu.trace_start"() <{level = 10 : i32, message = "bqk,bkd->bqd"}> : () -> ()
    %cst_24 = arith.constant dense<0.000000e+00> : vector<2x2x8xf32>
    %55 = tpu.matmul %52, %46, %cst_24 {dimension_numbers = #tpu.dot_dimension_numbers<[2], [1], [1], [2], [0, 0, 0, 1, 1, 2], [0], [0]>} : vector<2x2x2xf32>, vector<2x2x8xf32>, vector<2x2x8xf32> -> vector<2x2x8xf32>
    "tpu.trace_stop"() : () -> ()
    %56 = tpu.reciprocal %54 {approx = true} : vector<2x2x1xf32> -> vector<2x2x1xf32>
    %57 = vector.broadcast %56 : vector<2x2x1xf32> to vector<2x2x8xf32>
    %58 = arith.mulf %55, %57 : vector<2x2x8xf32>
    %59 = vector.extract_strided_slice %39 {offsets = [0, 0, 8], sizes = [2, 2, 8], strides = [1, 1, 1]} : vector<2x2x32xf32> to vector<2x2x8xf32>
    %60 = vector.extract_strided_slice %41 {offsets = [0, 0, 8], sizes = [2, 2, 8], strides = [1, 1, 1]} : vector<2x2x32xf32> to vector<2x2x8xf32>
    %61 = vector.extract_strided_slice %43 {offsets = [0, 0, 8], sizes = [2, 2, 8], strides = [1, 1, 1]} : vector<2x2x32xf32> to vector<2x2x8xf32>
    "tpu.trace_start"() <{level = 10 : i32, message = "bqd,bkd->bqk"}> : () -> ()
    %cst_25 = arith.constant dense<0.000000e+00> : vector<2x2x2xf32>
    %62 = tpu.matmul %59, %60, %cst_25 {dimension_numbers = #tpu.dot_dimension_numbers<[2], [2], [1], [1], [0, 0, 0, 1, 1, 1], [0], [0]>} : vector<2x2x8xf32>, vector<2x2x8xf32>, vector<2x2x2xf32> -> vector<2x2x2xf32>
    "tpu.trace_stop"() : () -> ()
    %cst_26 = arith.constant dense<0xFF800000> : vector<2x2xf32>
    %63 = vector.multi_reduction <maximumf>, %62, %cst_26 [2] : vector<2x2x2xf32> to vector<2x2xf32>
    %64 = vector.shape_cast %63 : vector<2x2xf32> to vector<2x2x1xf32>
    %65 = vector.broadcast %64 : vector<2x2x1xf32> to vector<2x2x2xf32>
    %66 = arith.subf %62, %65 : vector<2x2x2xf32>
    %67 = math.exp %66 : vector<2x2x2xf32>
    %cst_27 = arith.constant dense<0.000000e+00> : vector<2x2xf32>
    %68 = vector.multi_reduction <add>, %67, %cst_27 [2] : vector<2x2x2xf32> to vector<2x2xf32>
    %69 = vector.shape_cast %68 : vector<2x2xf32> to vector<2x2x1xf32>
    "tpu.trace_start"() <{level = 10 : i32, message = "bqk,bkd->bqd"}> : () -> ()
    %cst_28 = arith.constant dense<0.000000e+00> : vector<2x2x8xf32>
    %70 = tpu.matmul %67, %61, %cst_28 {dimension_numbers = #tpu.dot_dimension_numbers<[2], [1], [1], [2], [0, 0, 0, 1, 1, 2], [0], [0]>} : vector<2x2x2xf32>, vector<2x2x8xf32>, vector<2x2x8xf32> -> vector<2x2x8xf32>
    "tpu.trace_stop"() : () -> ()
    %71 = tpu.reciprocal %69 {approx = true} : vector<2x2x1xf32> -> vector<2x2x1xf32>
    %72 = vector.broadcast %71 : vector<2x2x1xf32> to vector<2x2x8xf32>
    %73 = arith.mulf %70, %72 : vector<2x2x8xf32>
    %74 = vector.extract_strided_slice %39 {offsets = [0, 0, 16], sizes = [2, 2, 8], strides = [1, 1, 1]} : vector<2x2x32xf32> to vector<2x2x8xf32>
    %75 = vector.extract_strided_slice %41 {offsets = [0, 0, 16], sizes = [2, 2, 8], strides = [1, 1, 1]} : vector<2x2x32xf32> to vector<2x2x8xf32>
    %76 = vector.extract_strided_slice %43 {offsets = [0, 0, 16], sizes = [2, 2, 8], strides = [1, 1, 1]} : vector<2x2x32xf32> to vector<2x2x8xf32>
    "tpu.trace_start"() <{level = 10 : i32, message = "bqd,bkd->bqk"}> : () -> ()
    %cst_29 = arith.constant dense<0.000000e+00> : vector<2x2x2xf32>
    %77 = tpu.matmul %74, %75, %cst_29 {dimension_numbers = #tpu.dot_dimension_numbers<[2], [2], [1], [1], [0, 0, 0, 1, 1, 1], [0], [0]>} : vector<2x2x8xf32>, vector<2x2x8xf32>, vector<2x2x2xf32> -> vector<2x2x2xf32>
    "tpu.trace_stop"() : () -> ()
    %cst_30 = arith.constant dense<0xFF800000> : vector<2x2xf32>
    %78 = vector.multi_reduction <maximumf>, %77, %cst_30 [2] : vector<2x2x2xf32> to vector<2x2xf32>
    %79 = vector.shape_cast %78 : vector<2x2xf32> to vector<2x2x1xf32>
    %80 = vector.broadcast %79 : vector<2x2x1xf32> to vector<2x2x2xf32>
    %81 = arith.subf %77, %80 : vector<2x2x2xf32>
    %82 = math.exp %81 : vector<2x2x2xf32>
    %cst_31 = arith.constant dense<0.000000e+00> : vector<2x2xf32>
    %83 = vector.multi_reduction <add>, %82, %cst_31 [2] : vector<2x2x2xf32> to vector<2x2xf32>
    %84 = vector.shape_cast %83 : vector<2x2xf32> to vector<2x2x1xf32>
    "tpu.trace_start"() <{level = 10 : i32, message = "bqk,bkd->bqd"}> : () -> ()
    %cst_32 = arith.constant dense<0.000000e+00> : vector<2x2x8xf32>
    %85 = tpu.matmul %82, %76, %cst_32 {dimension_numbers = #tpu.dot_dimension_numbers<[2], [1], [1], [2], [0, 0, 0, 1, 1, 2], [0], [0]>} : vector<2x2x2xf32>, vector<2x2x8xf32>, vector<2x2x8xf32> -> vector<2x2x8xf32>
    "tpu.trace_stop"() : () -> ()
    %86 = tpu.reciprocal %84 {approx = true} : vector<2x2x1xf32> -> vector<2x2x1xf32>
    %87 = vector.broadcast %86 : vector<2x2x1xf32> to vector<2x2x8xf32>
    %88 = arith.mulf %85, %87 : vector<2x2x8xf32>
    %89 = vector.extract_strided_slice %39 {offsets = [0, 0, 24], sizes = [2, 2, 8], strides = [1, 1, 1]} : vector<2x2x32xf32> to vector<2x2x8xf32>
    %90 = vector.extract_strided_slice %41 {offsets = [0, 0, 24], sizes = [2, 2, 8], strides = [1, 1, 1]} : vector<2x2x32xf32> to vector<2x2x8xf32>
    %91 = vector.extract_strided_slice %43 {offsets = [0, 0, 24], sizes = [2, 2, 8], strides = [1, 1, 1]} : vector<2x2x32xf32> to vector<2x2x8xf32>
    "tpu.trace_start"() <{level = 10 : i32, message = "bqd,bkd->bqk"}> : () -> ()
    %cst_33 = arith.constant dense<0.000000e+00> : vector<2x2x2xf32>
    %92 = tpu.matmul %89, %90, %cst_33 {dimension_numbers = #tpu.dot_dimension_numbers<[2], [2], [1], [1], [0, 0, 0, 1, 1, 1], [0], [0]>} : vector<2x2x8xf32>, vector<2x2x8xf32>, vector<2x2x2xf32> -> vector<2x2x2xf32>
    "tpu.trace_stop"() : () -> ()
    %cst_34 = arith.constant dense<0xFF800000> : vector<2x2xf32>
    %93 = vector.multi_reduction <maximumf>, %92, %cst_34 [2] : vector<2x2x2xf32> to vector<2x2xf32>
    %94 = vector.shape_cast %93 : vector<2x2xf32> to vector<2x2x1xf32>
    %95 = vector.broadcast %94 : vector<2x2x1xf32> to vector<2x2x2xf32>
    %96 = arith.subf %92, %95 : vector<2x2x2xf32>
    %97 = math.exp %96 : vector<2x2x2xf32>
    %cst_35 = arith.constant dense<0.000000e+00> : vector<2x2xf32>
    %98 = vector.multi_reduction <add>, %97, %cst_35 [2] : vector<2x2x2xf32> to vector<2x2xf32>
    %99 = vector.shape_cast %98 : vector<2x2xf32> to vector<2x2x1xf32>
    "tpu.trace_start"() <{level = 10 : i32, message = "bqk,bkd->bqd"}> : () -> ()
    %cst_36 = arith.constant dense<0.000000e+00> : vector<2x2x8xf32>
    %100 = tpu.matmul %97, %91, %cst_36 {dimension_numbers = #tpu.dot_dimension_numbers<[2], [1], [1], [2], [0, 0, 0, 1, 1, 2], [0], [0]>} : vector<2x2x2xf32>, vector<2x2x8xf32>, vector<2x2x8xf32> -> vector<2x2x8xf32>
    "tpu.trace_stop"() : () -> ()
    %101 = tpu.reciprocal %99 {approx = true} : vector<2x2x1xf32> -> vector<2x2x1xf32>
    %102 = vector.broadcast %101 : vector<2x2x1xf32> to vector<2x2x8xf32>
    %103 = arith.mulf %100, %102 : vector<2x2x8xf32>
    %104 = tpu.concatenate %58, %73, %88, %103 in 2 : vector<2x2x8xf32>, vector<2x2x8xf32>, vector<2x2x8xf32>, vector<2x2x8xf32> -> vector<2x2x32xf32>
    %105 = vector.shape_cast %104 : vector<2x2x32xf32> to vector<4x32xf32>
    %c0_37 = arith.constant 0 : index
    %c0_38 = arith.constant 0 : index
    %106 = vector.load %arg8[%c0_37, %c0_38] : memref<32x32xf32, #tpu.memory_space<vmem>>, vector<32x32xf32>
    %cst_39 = arith.constant dense<0.000000e+00> : vector<4x32xf32>
    %107 = tpu.matmul %105, %106, %cst_39 {dimension_numbers = #tpu.dot_dimension_numbers<[1], [0], [0], [1], [0, 0, 1, 1], [], []>} : vector<4x32xf32>, vector<32x32xf32>, vector<4x32xf32> -> vector<4x32xf32>
    %c0_40 = arith.constant 0 : index
    %c0_41 = arith.constant 0 : index
    %108 = vector.load %arg9[%c0_40, %c0_41] : memref<1x32xf32, #tpu.memory_space<vmem>>, vector<1x32xf32>
    %109 = vector.broadcast %108 : vector<1x32xf32> to vector<4x32xf32>
    %110 = arith.addf %107, %109 : vector<4x32xf32>
    %111 = arith.addf %8, %110 : vector<4x32xf32>
    %112 = vector.shape_cast %111 : vector<4x32xf32> to vector<2x2x32xf32>
    %c0_42 = arith.constant 0 : index
    %c0_43 = arith.constant 0 : index
    %c0_44 = arith.constant 0 : index
    %113 = vector.load %arg10[%c0_42, %c0_43, %c0_44] : memref<2x2x32xf32, #tpu.memory_space<vmem>>, vector<2x2x32xf32>
    tpu.vector_store %arg10[%c0_42, %c0_43, %c0_44], %112 {strides = array<i32>} : memref<2x2x32xf32, #tpu.memory_space<vmem>>, vector<2x2x32xf32>,
    return
  }
  func.func @transform_0(%arg0: i32) -> (i32, i32, i32) {
    %c0_i32 = arith.constant 0 : i32
    %c0_i32_0 = arith.constant 0 : i32
    %c0_i32_1 = arith.constant 0 : i32
    return %arg0, %c0_i32, %c0_i32_0 : i32, i32, i32
  }
  func.func @transform_1(%arg0: i32) -> (i32, i32) {
    %c0_i32 = arith.constant 0 : i32
    %c0_i32_0 = arith.constant 0 : i32
    %c0_i32_1 = arith.constant 0 : i32
    return %c0_i32, %c0_i32_0 : i32, i32
  }
  func.func @transform_2(%arg0: i32) -> (i32, i32) {
    %c0_i32 = arith.constant 0 : i32
    %c0_i32_0 = arith.constant 0 : i32
    %c0_i32_1 = arith.constant 0 : i32
    return %c0_i32, %c0_i32_0 : i32, i32
  }
  func.func @transform_3(%arg0: i32) -> (i32, i32) {
    %c0_i32 = arith.constant 0 : i32
    %c0_i32_0 = arith.constant 0 : i32
    %c0_i32_1 = arith.constant 0 : i32
    return %c0_i32, %c0_i32_0 : i32, i32
  }
  func.func @transform_4(%arg0: i32) -> (i32, i32) {
    %c0_i32 = arith.constant 0 : i32
    %c0_i32_0 = arith.constant 0 : i32
    %c0_i32_1 = arith.constant 0 : i32
    return %c0_i32, %c0_i32_0 : i32, i32
  }
  func.func @transform_5(%arg0: i32) -> (i32, i32) {
    %c0_i32 = arith.constant 0 : i32
    %c0_i32_0 = arith.constant 0 : i32
    %c0_i32_1 = arith.constant 0 : i32
    return %c0_i32, %c0_i32_0 : i32, i32
  }
  func.func @transform_6(%arg0: i32) -> (i32, i32) {
    %c0_i32 = arith.constant 0 : i32
    %c0_i32_0 = arith.constant 0 : i32
    %c0_i32_1 = arith.constant 0 : i32
    return %c0_i32, %c0_i32_0 : i32, i32
  }
  func.func @transform_7(%arg0: i32) -> (i32, i32) {
    %c0_i32 = arith.constant 0 : i32
    %c0_i32_0 = arith.constant 0 : i32
    %c0_i32_1 = arith.constant 0 : i32
    return %c0_i32, %c0_i32_0 : i32, i32
  }
  func.func @transform_8(%arg0: i32) -> (i32, i32) {
    %c0_i32 = arith.constant 0 : i32
    %c0_i32_0 = arith.constant 0 : i32
    %c0_i32_1 = arith.constant 0 : i32
    return %c0_i32, %c0_i32_0 : i32, i32
  }
  func.func @transform_9(%arg0: i32) -> (i32, i32, i32) {
    %c0_i32 = arith.constant 0 : i32
    %c0_i32_0 = arith.constant 0 : i32
    %c0_i32_1 = arith.constant 0 : i32
    return %arg0, %c0_i32, %c0_i32_0 : i32, i32, i32
  }
}

module attributes {stable_mosaic.version = 11 : i64} {
  func.func @_fused_mlp_kernel(%arg0: i32, %arg1: memref<32x32xf32, #tpu.memory_space<vmem>>, %arg2: memref<1x32xf32, #tpu.memory_space<vmem>>, %arg3: memref<1x32xf32, #tpu.memory_space<vmem>>, %arg4: memref<32x128xf32, #tpu.memory_space<vmem>>, %arg5: memref<1x128xf32, #tpu.memory_space<vmem>>, %arg6: memref<128x32xf32, #tpu.memory_space<vmem>>, %arg7: memref<1x32xf32, #tpu.memory_space<vmem>>, %arg8: memref<32x32xf32, #tpu.memory_space<vmem>>) attributes {dimension_semantics = [#tpu.dimension_semantics<parallel>], iteration_bounds = array<i64: 1>, scalar_prefetch = 0 : i64, scratch_operands = 0 : i64, tpu.core_type = #tpu.core_type<tc>, window_params = [{transform_indices = @transform_0, window_bounds = array<i64: 32, 32>}, {pipeline_mode = #tpu.pipeline_mode<synchronous>, transform_indices = @transform_1, window_bounds = array<i64: 1, 32>}, {pipeline_mode = #tpu.pipeline_mode<synchronous>, transform_indices = @transform_2, window_bounds = array<i64: 1, 32>}, {pipeline_mode = #tpu.pipeline_mode<synchronous>, transform_indices = @transform_3, window_bounds = array<i64: 32, 128>}, {pipeline_mode = #tpu.pipeline_mode<synchronous>, transform_indices = @transform_4, window_bounds = array<i64: 1, 128>}, {pipeline_mode = #tpu.pipeline_mode<synchronous>, transform_indices = @transform_5, window_bounds = array<i64: 128, 32>}, {pipeline_mode = #tpu.pipeline_mode<synchronous>, transform_indices = @transform_6, window_bounds = array<i64: 1, 32>}, {transform_indices = @transform_7, window_bounds = array<i64: 32, 32>}]} {
    %c0 = arith.constant 0 : index
    %c0_0 = arith.constant 0 : index
    %0 = vector.load %arg1[%c0, %c0_0] : memref<32x32xf32, #tpu.memory_space<vmem>>, vector<32x32xf32>
    %cst = arith.constant dense<0.000000e+00> : vector<32xf32>
    %1 = vector.multi_reduction <add>, %0, %cst [1] : vector<32x32xf32> to vector<32xf32>
    %2 = vector.shape_cast %1 : vector<32xf32> to vector<32x1xf32>
    %cst_1 = arith.constant 3.200000e+01 : f32
    %3 = vector.broadcast %cst_1 : f32 to vector<32x1xf32>
    %4 = arith.divf %2, %3 : vector<32x1xf32>
    %5 = vector.broadcast %4 : vector<32x1xf32> to vector<32x32xf32>
    %6 = arith.subf %0, %5 : vector<32x32xf32>
    %7 = arith.mulf %6, %6 : vector<32x32xf32>
    %cst_2 = arith.constant dense<0.000000e+00> : vector<32xf32>
    %8 = vector.multi_reduction <add>, %7, %cst_2 [1] : vector<32x32xf32> to vector<32xf32>
    %9 = vector.shape_cast %8 : vector<32xf32> to vector<32x1xf32>
    %cst_3 = arith.constant 3.200000e+01 : f32
    %10 = vector.broadcast %cst_3 : f32 to vector<32x1xf32>
    %11 = arith.divf %9, %10 : vector<32x1xf32>
    %12 = vector.broadcast %4 : vector<32x1xf32> to vector<32x32xf32>
    %13 = arith.subf %0, %12 : vector<32x32xf32>
    %cst_4 = arith.constant 9.99999974E-6 : f32
    %14 = vector.broadcast %cst_4 : f32 to vector<32x1xf32>
    %15 = arith.addf %11, %14 : vector<32x1xf32>
    %16 = math.rsqrt %15 : vector<32x1xf32>
    %17 = vector.broadcast %16 : vector<32x1xf32> to vector<32x32xf32>
    %18 = arith.mulf %13, %17 : vector<32x32xf32>
    %c0_5 = arith.constant 0 : index
    %c0_6 = arith.constant 0 : index
    %19 = vector.load %arg2[%c0_5, %c0_6] : memref<1x32xf32, #tpu.memory_space<vmem>>, vector<1x32xf32>
    %20 = vector.broadcast %19 : vector<1x32xf32> to vector<32x32xf32>
    %21 = arith.mulf %18, %20 : vector<32x32xf32>
    %c0_7 = arith.constant 0 : index
    %c0_8 = arith.constant 0 : index
    %22 = vector.load %arg3[%c0_7, %c0_8] : memref<1x32xf32, #tpu.memory_space<vmem>>, vector<1x32xf32>
    %23 = vector.broadcast %22 : vector<1x32xf32> to vector<32x32xf32>
    %24 = arith.addf %21, %23 : vector<32x32xf32>
    %c0_9 = arith.constant 0 : index
    %c0_10 = arith.constant 0 : index
    %25 = vector.load %arg4[%c0_9, %c0_10] : memref<32x128xf32, #tpu.memory_space<vmem>>, vector<32x128xf32>
    %cst_11 = arith.constant dense<0.000000e+00> : vector<32x128xf32>
    %26 = tpu.matmul %24, %25, %cst_11 {dimension_numbers = #tpu.dot_dimension_numbers<[1], [0], [0], [1], [0, 0, 1, 1], [], []>} : vector<32x32xf32>, vector<32x128xf32>, vector<32x128xf32> -> vector<32x128xf32>
    %c0_12 = arith.constant 0 : index
    %c0_13 = arith.constant 0 : index
    %27 = vector.load %arg5[%c0_12, %c0_13] : memref<1x128xf32, #tpu.memory_space<vmem>>, vector<1x128xf32>
    %28 = vector.broadcast %27 : vector<1x128xf32> to vector<32x128xf32>
    %29 = arith.addf %26, %28 : vector<32x128xf32>
    %cst_14 = arith.constant 1.702000e+00 : f32
    %30 = vector.broadcast %cst_14 : f32 to vector<32x128xf32>
    %31 = arith.mulf %30, %29 : vector<32x128xf32>
    %32 = arith.negf %31 : vector<32x128xf32>
    %33 = math.exp %32 : vector<32x128xf32>
    %cst_15 = arith.constant 1.000000e+00 : f32
    %34 = vector.broadcast %cst_15 : f32 to vector<32x128xf32>
    %35 = arith.addf %34, %33 : vector<32x128xf32>
    %36 = arith.divf %34, %35 : vector<32x128xf32>
    %37 = arith.mulf %29, %36 : vector<32x128xf32>
    %c0_16 = arith.constant 0 : index
    %c0_17 = arith.constant 0 : index
    %38 = vector.load %arg6[%c0_16, %c0_17] : memref<128x32xf32, #tpu.memory_space<vmem>>, vector<128x32xf32>
    %cst_18 = arith.constant dense<0.000000e+00> : vector<32x32xf32>
    %39 = tpu.matmul %37, %38, %cst_18 {dimension_numbers = #tpu.dot_dimension_numbers<[1], [0], [0], [1], [0, 0, 1, 1], [], []>} : vector<32x128xf32>, vector<128x32xf32>, vector<32x32xf32> -> vector<32x32xf32>
    %c0_19 = arith.constant 0 : index
    %c0_20 = arith.constant 0 : index
    %40 = vector.load %arg7[%c0_19, %c0_20] : memref<1x32xf32, #tpu.memory_space<vmem>>, vector<1x32xf32>
    %41 = vector.broadcast %40 : vector<1x32xf32> to vector<32x32xf32>
    %42 = arith.addf %39, %41 : vector<32x32xf32>
    %43 = arith.addf %0, %42 : vector<32x32xf32>
    %c0_21 = arith.constant 0 : index
    %c0_22 = arith.constant 0 : index
    %44 = vector.load %arg8[%c0_21, %c0_22] : memref<32x32xf32, #tpu.memory_space<vmem>>, vector<32x32xf32>
    tpu.vector_store %arg8[%c0_21, %c0_22], %43 {strides = array<i32>} : memref<32x32xf32, #tpu.memory_space<vmem>>, vector<32x32xf32>,
    return
  }
  func.func @transform_0(%arg0: i32) -> (i32, i32) {
    %c0_i32 = arith.constant 0 : i32
    %c0_i32_0 = arith.constant 0 : i32
    return %arg0, %c0_i32 : i32, i32
  }
  func.func @transform_1(%arg0: i32) -> (i32, i32) {
    %c0_i32 = arith.constant 0 : i32
    %c0_i32_0 = arith.constant 0 : i32
    %c0_i32_1 = arith.constant 0 : i32
    return %c0_i32, %c0_i32_0 : i32, i32
  }
  func.func @transform_2(%arg0: i32) -> (i32, i32) {
    %c0_i32 = arith.constant 0 : i32
    %c0_i32_0 = arith.constant 0 : i32
    %c0_i32_1 = arith.constant 0 : i32
    return %c0_i32, %c0_i32_0 : i32, i32
  }
  func.func @transform_3(%arg0: i32) -> (i32, i32) {
    %c0_i32 = arith.constant 0 : i32
    %c0_i32_0 = arith.constant 0 : i32
    %c0_i32_1 = arith.constant 0 : i32
    return %c0_i32, %c0_i32_0 : i32, i32
  }
  func.func @transform_4(%arg0: i32) -> (i32, i32) {
    %c0_i32 = arith.constant 0 : i32
    %c0_i32_0 = arith.constant 0 : i32
    %c0_i32_1 = arith.constant 0 : i32
    return %c0_i32, %c0_i32_0 : i32, i32
  }
  func.func @transform_5(%arg0: i32) -> (i32, i32) {
    %c0_i32 = arith.constant 0 : i32
    %c0_i32_0 = arith.constant 0 : i32
    %c0_i32_1 = arith.constant 0 : i32
    return %c0_i32, %c0_i32_0 : i32, i32
  }
  func.func @transform_6(%arg0: i32) -> (i32, i32) {
    %c0_i32 = arith.constant 0 : i32
    %c0_i32_0 = arith.constant 0 : i32
    %c0_i32_1 = arith.constant 0 : i32
    return %c0_i32, %c0_i32_0 : i32, i32
  }
  func.func @transform_7(%arg0: i32) -> (i32, i32) {
    %c0_i32 = arith.constant 0 : i32
    %c0_i32_0 = arith.constant 0 : i32
    return %arg0, %c0_i32 : i32, i32
  }
}

</mosaic_0001>

<bundles_post_ra>
// kernel: cross_frame_attention_block.5
= control target key start
LH: loop header
LB: loop body
LE: loop exit
PB: predicated region body
PF: predicated region fallthrough
CT: control target
= control target key end

     0   :  { %vm30_vm0 = vcmask 261120   ;;  %s694_s0 = inlined_call_operand.vmem [shape: f32[32,32], index: 0, kind: input, shape index: {}, may-alias: {0,7}]   ;;  %s695_s3 = inlined_call_operand.vmem [shape: f32[32,128], index: 3, kind: input, shape index: {}]   ;;  %s696_s1 = inlined_call_operand.vmem [shape: f32[1,32], index: 1, kind: input, shape index: {}]   ;;  %s697_s2 = inlined_call_operand.vmem [shape: f32[1,32], index: 2, kind: input, shape index: {}]   ;;  %s698_s5 = inlined_call_operand.vmem [shape: f32[128,32], index: 5, kind: input, shape index: {}]   ;;  %s699_s4 = inlined_call_operand.vmem [shape: f32[1,128], index: 4, kind: input, shape index: {}]   ;;  %s700_s6 = inlined_call_operand.vmem [shape: f32[1,32], index: 6, kind: input, shape index: {}]   ;;  %s701_s7 = inlined_call_operand.vmem [shape: f32[32,32], index: 7, kind: output, shape index: {}, may-alias: {0,7}]  }
   0x1   :  { %v565_v0 = vld [vmem:[%s694_s0] sm:$0xff]  ;;  %v570_v1 = vld [vmem:[%s694_s0 + $0x10] sm:$0xff]  ;;  %v575_v2 = vld [vmem:[%s694_s0 + $0x8] sm:$0xff] }
   0x2   :  { %v31_v3 = vsel %vm30_vm0, %v565_v0, 0.0  ;;  %v37_v4 = vsel %vm30_vm0, %v570_v1, 0.0  ;;  %v584_v5 = vld [vmem:[%s694_s0 + $0x18] sm:$0xff]  ;;  %v34_v6 = vsel %vm30_vm0, %v575_v2, 0.0  ;;  %v106_v28 = vld [vmem:[%s695_s3] sm:$0xff]  ;;  %v107_v29 = vld [vmem:[%s695_s3 + $0x8] sm:$0xff] }
   0x3   :  { %32 = vadd.xlane.f32.xlu0 %v31_v3  ;;  %38 = vadd.xlane.f32.xlu1 %v37_v4  ;;  %v40_v7 = vsel %vm30_vm0, %v584_v5, 0.0  ;;  %v108_v30 = vld [vmem:[%s695_s3 + $0x10] sm:$0xff]  ;;  %v458_v31 = vpack.c.bf16 %v107_v29, %v106_v28  ;;  %v109_v32 = vld [vmem:[%s695_s3 + $0x18] sm:$0xff]  ;;  %v366_v47 = vld [vmem:[%s696_s1] ss:$0 sm:$0xff] }
   0x4   :  { %v462_v33 = vpack.c.bf16 %v109_v32, %v108_v30  ;;  %v367_v49 = vld [vmem:[%s697_s2] ss:$0 sm:$0xff]  ;;  %v247_v4 = vld [vmem:[%s698_s5 + $0x8] sm:$0xff] }
   0x5   :  { %459 = vmatprep.subr.bf16.mxu0 %v458_v31  ;;  %v246_v3 = vld [vmem:[%s698_s5] sm:$0xff] }
   0x6   :  { %461 = vmatpush3.bf16.msra.mxu0 %v458_v31  ;;  %v368_v28 = vld [vmem:[%s699_s4] ss:$0 sm:$0xff] }
   0x7   :  { %35 = vadd.xlane.f32.xlu0 %v34_v6  ;;  %41 = vadd.xlane.f32.xlu1 %v40_v7  ;;  %v466_v6 = vpack.c.bf16 %v247_v4, %v246_v3  ;;  %v248_v7 = vld [vmem:[%s698_s5 + $0x10] sm:$0xff] }
   0x8   :  { %463 = vmatprep.subr.bf16.mxu0 %v462_v33 }
   0x9   :  { %467 = vmatprep.subr.bf16.mxu1 %v466_v6 }
   0xa   :  { %465 = vmatpush3.bf16.msra.mxu0 %v462_v33  ;;  %469 = vmatpush3.bf16.msra.mxu1 %v466_v6 }
  0x90   :  { %v33_v8 = vpop.xlane.xlu0 %32  ;;  %v39_v9 = vpop.xlane.xlu1 %38 }
  0x91   :  { %v44_v10 = vmul.f32 0.03125, %v33_v8  ;;  %v46_v11 = vmul.f32 0.03125, %v39_v9  ;;  %v249_v8 = vld [vmem:[%s698_s5 + $0x18] sm:$0xff] }
  0x92   :  { %v470_v9 = vpack.c.bf16 %v249_v8, %v248_v7 }
  0x93   :  { %v48_v12 = vsub.f32 %v565_v0, %v44_v10  ;;  %v50_v13 = vsub.f32 %v570_v1, %v46_v11  ;;  %v250_v10 = vld [vmem:[%s698_s5 + $0x20] sm:$0xff]  ;;  %v251_v11 = vld [vmem:[%s698_s5 + $0x28] sm:$0xff] }
  0x94   :  { %v36_v14 = vpop.xlane.xlu0 %35  ;;  %v42_v15 = vpop.xlane.xlu1 %41  ;;  %471 = vmatprep.subr.bf16.mxu1 %v470_v9 }
  0x95   :  { %v45_v16 = vmul.f32 0.03125, %v36_v14  ;;  %v47_v17 = vmul.f32 0.03125, %v42_v15  ;;  %v52_v18 = vmul.f32 %v48_v12, %v48_v12  ;;  %v54_v19 = vmul.f32 %v50_v13, %v50_v13  ;;  %473 = vmatpush3.bf16.msra.mxu1 %v470_v9  ;;  %v253_v14 = vld [vmem:[%s698_s5 + $0x38] sm:$0xff] }
  0x97   :  { %v49_v20 = vsub.f32 %v575_v2, %v45_v16  ;;  %v51_v21 = vsub.f32 %v584_v5, %v47_v17  ;;  %v56_v22 = vsel %vm30_vm0, %v52_v18, 0.0  ;;  %v62_v23 = vsel %vm30_vm0, %v54_v19, 0.0  ;;  %v254_v16 = vld [vmem:[%s698_s5 + $0x40] sm:$0xff]  ;;  %v255_v17 = vld [vmem:[%s698_s5 + $0x48] sm:$0xff]  ;;  %v256_v19 = vld [vmem:[%s698_s5 + $0x50] sm:$0xff] }
  0x98   :  { %57 = vadd.xlane.f32.xlu0 %v56_v22  ;;  %v482_v18 = vpack.c.bf16 %v255_v17, %v254_v16  ;;  %v258_v22 = vld [vmem:[%s698_s5 + $0x60] sm:$0xff] }
  0x99   :  { %v53_v24 = vmul.f32 %v49_v20, %v49_v20  ;;  %v55_v25 = vmul.f32 %v51_v21, %v51_v21 }
  0x9b   :  { %v59_v26 = vsel %vm30_vm0, %v53_v24, 0.0  ;;  %v65_v27 = vsel %vm30_vm0, %v55_v25, 0.0  ;;  %v260_v25 = vld [vmem:[%s698_s5 + $0x70] sm:$0xff] }
  0x9c   :  { %63 = vadd.xlane.f32.xlu0 %v62_v23  ;;  %60 = vadd.xlane.f32.xlu1 %v59_v26  ;;  %v259_v23 = vld [vmem:[%s698_s5 + $0x68] sm:$0xff]  ;;  %v261_v26 = vld [vmem:[%s698_s5 + $0x78] sm:$0xff] }
  0x9d   :  { %v490_v24 = vpack.c.bf16 %v259_v23, %v258_v22 }
  0xa0   :  { %66 = vadd.xlane.f32.xlu1 %v65_v27  ;;  %v494_v27 = vpack.c.bf16 %v261_v26, %v260_v25 }
 0x125   :  { %v58_v34 = vpop.xlane.xlu0 %57 }
 0x126   :  { %v68_v35 = vmul.f32 0.03125, %v58_v34 }
 0x128   :  { %v72_v36 = vadd.f32 1e-05, %v68_v35 }
 0x129   :  { %v61_v37 = vpop.xlane.xlu1 %60  ;;  %v64_v38 = vpop.xlane.xlu0 %63 }
 0x12a   :  { %498 = vrsqrt.f32 %v72_v36  ;;  %v69_v39 = vmul.f32 0.03125, %v61_v37  ;;  %v70_v40 = vmul.f32 0.03125, %v64_v38 }
 0x12c   :  { %v73_v41 = vadd.f32 1e-05, %v69_v39  ;;  %v74_v42 = vadd.f32 1e-05, %v70_v40 }
 0x12d   :  { %v67_v43 = vpop.xlane.xlu1 %66 }
 0x12e   :  { %500 = vrsqrt.f32 %v73_v41  ;;  %v71_v44 = vmul.f32 0.03125, %v67_v43 }
 0x12f   :  { %502 = vrsqrt.f32 %v74_v42 }
 0x130   :  { %v75_v45 = vadd.f32 1e-05, %v71_v44 }
 0x132   :  { %504 = vrsqrt.f32 %v75_v45 }
 0x134   :  { %v499_v46 = vpop.eup %498 }
 0x135   :  { %v80_v48 = vmul.f32 %v499_v46, %v48_v12  ;;  %v474_v12 = vpack.c.bf16 %v251_v11, %v250_v10 }
 0x137   :  { %v91_v50 = vmul.f32 %v366_v47, %v80_v48  ;;  %475 = vmatprep.subr.bf16.mxu1 %v474_v12 }
 0x138   :  { %v501_v51 = vpop.eup %500  ;;  %477 = vmatpush3.bf16.msra.mxu1 %v474_v12 }
 0x139   :  { %v503_v52 = vpop.eup %502  ;;  %v102_v53 = vadd.f32 %v367_v49, %v91_v50  ;;  %v81_v54 = vmul.f32 %v501_v51, %v49_v20  ;;  %v257_v20 = vld [vmem:[%s698_s5 + $0x58] sm:$0xff] }
 0x13a   :  { %v82_v55 = vmul.f32 %v503_v52, %v50_v13  ;;  %v252_v13 = vld [vmem:[%s698_s5 + $0x30] sm:$0xff] }
 0x13b   :  { %414 = vmatprep.mubr.msk.f32.mxu0 %vm30_vm0, %v102_v53  ;;  %v92_v56 = vmul.f32 %v366_v47, %v81_v54  ;;  %v478_v15 = vpack.c.bf16 %v253_v14, %v252_v13 }
 0x13c   :  { %v505_v57 = vpop.eup %504  ;;  %v93_v58 = vmul.f32 %v366_v47, %v82_v55 }
 0x13d   :  { %v103_v59 = vadd.f32 %v367_v49, %v92_v56  ;;  %v83_v60 = vmul.f32 %v505_v57, %v51_v21  ;;  %479 = vmatprep.subr.bf16.mxu1 %v478_v15  ;;  %v486_v21 = vpack.c.bf16 %v257_v20, %v256_v19 }
 0x13e   :  { %v104_v61 = vadd.f32 %v367_v49, %v93_v58  ;;  %481 = vmatpush3.bf16.msra.mxu1 %v478_v15 }
 0x13f   :  { %415 = vmatmul.mubr.msk.f32.vlgmr.msra.gmra.mrb[0].mxu0 %vm30_vm0, %v103_v59  ;;  %v94_v62 = vmul.f32 %v366_v47, %v83_v60  ;;  %483 = vmatprep.subr.bf16.mxu1 %v482_v18 }
 0x140   :  { %417 = vmatprep.mubr.msk.f32.mxu0 %vm30_vm0, %v104_v61  ;;  %v377_v61 = vld [vmem:[%s700_s6] ss:$0 sm:$0xff] }
 0x141   :  { %v105_v63 = vadd.f32 %v367_v49, %v94_v62 }
 0x142   :  { %485 = vmatpush3.bf16.msra.mxu1 %v482_v18 }
 0x143   :  { %418 = vmatmul.mubr.msk.f32.gmra.mrb[2].mxu0 %vm30_vm0, %v105_v63  ;;  %487 = vmatprep.subr.bf16.mxu1 %v486_v21 }
 0x146   :  { %489 = vmatpush3.bf16.msra.mxu1 %v486_v21 }
 0x147   :  { %491 = vmatprep.subr.bf16.mxu1 %v490_v24 }
 0x14a   :  { %493 = vmatpush3.bf16.msra.mxu1 %v490_v24 }
 0x14b   :  { %495 = vmatprep.subr.bf16.mxu1 %v494_v27 }
 0x14e   :  { %497 = vmatpush3.bf16.msra.mxu1 %v494_v27 }
 0x212   :  { %v416_v29 = vpop.f32.mrb[0].mxu0 }
 0x213   :  { %v201_v30 = vadd.f32 %v416_v29, %v368_v28  ;;  %v195_v31 = vpop.f32.mrb[1].mxu0 }
 0x214   :  { %v196_v32 = vadd.f32 %v368_v28, %v195_v31 }
 0x215   :  { %v374_v33 = vmul.f32 -1.702, %v201_v30 }
 0x216   :  { %v373_v34 = vmul.f32 -1.702, %v196_v32  ;;  %v419_v35 = vpop.f32.mrb[2].mxu0 }
 0x217   :  { %v224_v36 = vmul.f32 1.442695, %v374_v33  ;;  %v211_v37 = vadd.f32 %v419_v35, %v368_v28  ;;  %v205_v38 = vpop.f32.mrb[3].mxu0 }
 0x218   :  { %v222_v39 = vmul.f32 1.442695, %v373_v34  ;;  %v206_v40 = vadd.f32 %v368_v28, %v205_v38 }
 0x219   :  { %506 = vpow2.f32 %v224_v36  ;;  %v376_v41 = vmul.f32 -1.702, %v211_v37 }
 0x21a   :  { %508 = vpow2.f32 %v222_v39  ;;  %v375_v42 = vmul.f32 -1.702, %v206_v40 }
 0x21b   :  { %v228_v43 = vmul.f32 1.442695, %v376_v41 }
 0x21c   :  { %v226_v44 = vmul.f32 1.442695, %v375_v42 }
 0x21d   :  { %510 = vpow2.f32 %v228_v43 }
 0x21e   :  { %512 = vpow2.f32 %v226_v44 }
 0x223   :  { %v507_v45 = vpop.eup %506 }
 0x224   :  { %v509_v46 = vpop.eup %508  ;;  %v231_v47 = vadd.f32 1.0, %v507_v45 }
 0x225   :  { %v230_v48 = vadd.f32 1.0, %v509_v46 }
 0x226   :  { %514 = vrcp.f32 %v231_v47 }
 0x227   :  { %v511_v49 = vpop.eup %510  ;;  %516 = vrcp.f32 %v230_v48 }
 0x228   :  { %v513_v50 = vpop.eup %512  ;;  %v233_v51 = vadd.f32 1.0, %v511_v49 }
 0x229   :  { %v232_v52 = vadd.f32 1.0, %v513_v50 }
 0x22a   :  { %518 = vrcp.f32 %v233_v51 }
 0x22b   :  { %520 = vrcp.f32 %v232_v52 }
 0x230   :  { %v515_v53 = vpop.eup %514 }
 0x231   :  { %v517_v54 = vpop.eup %516  ;;  %v243_v56 = vmul.f32 %v515_v53, %v201_v30 }
 0x232   :  { %v242_v55 = vmul.f32 %v517_v54, %v196_v32 }
 0x234   :  { %v519_v57 = vpop.eup %518  ;;  %452 = vmatprep.mubr.f32.mxu1 %v242_v55 }
 0x235   :  { %v521_v58 = vpop.eup %520  ;;  %453 = vmatmul.mubr.f32.vlgmr.msra.gmra.mrb[0].mxu1 %v243_v56  ;;  %v245_v60 = vmul.f32 %v519_v57, %v211_v37 }
 0x236   :  { %v244_v59 = vmul.f32 %v521_v58, %v206_v40 }
 0x238   :  { %455 = vmatprep.mubr.f32.mxu1 %v244_v59 }
 0x239   :  { %456 = vmatmul.mubr.f32.gmra.mrb[2].mxu1 %v245_v60 }
 0x308   :  { %v454_v62 = vpop.f32.mrb[0].mxu1 }
 0x309   :  { %v341_v63 = vadd.f32 %v454_v62, %v377_v61  ;;  %v335_v3 = vpop.f32.mrb[1].mxu1 }
 0x30a   :  { %v336_v4 = vadd.f32 %v377_v61, %v335_v3 }
 0x30b   :  { %v355_v6 = vadd.f32 %v341_v63, %v575_v2 }
 0x30c   :  { %v354_v7 = vadd.f32 %v336_v4, %v565_v0  ;;  %v457_v8 = vpop.f32.mrb[2].mxu1 }
 0x30d   :  { %359 = vst.msk [vmem:[%s701_s7 + $0x8] sm:$0xff] %vm30_vm0, %v355_v6  ;;  %v351_v9 = vadd.f32 %v457_v8, %v377_v61  ;;  %v345_v10 = vpop.f32.mrb[3].mxu1 }
 0x30e   :  { %358 = vst.msk [vmem:[%s701_s7] sm:$0xff] %vm30_vm0, %v354_v7  ;;  %v346_v11 = vadd.f32 %v377_v61, %v345_v10 }
 0x30f   :  { %v357_v12 = vadd.f32 %v351_v9, %v584_v5 }
 0x310   :  { %v356_v2 = vadd.f32 %v346_v11, %v570_v1 }
 0x311   :  { %361 = vst.msk [vmem:[%s701_s7 + $0x18] sm:$0xff] %vm30_vm0, %v357_v12 }
 0x312   :  { %360 = vst.msk [vmem:[%s701_s7 + $0x10] sm:$0xff] %vm30_vm0, %v356_v2 }

// kernel: cross_frame_attention_block.3
= control target key start
LH: loop header
LB: loop body
LE: loop exit
PB: predicated region body
PF: predicated region fallthrough
CT: control target
= control target key end

     0   :  { %14 = vsyncpa [#allocation3], 0  ;;  %s2548_s0 = inlined_call_operand.vmem [shape: f32[2,2,32], index: 0, kind: input, shape index: {}]   ;;  %s2549_s1 = inlined_call_operand.vmem [shape: f32[32,32], index: 1, kind: input, shape index: {}]   ;;  %s2550_s2 = inlined_call_operand.hbm [shape: f32[1,32], index: 2, kind: input, shape index: {}]   ;;  %s2551_s3 = inlined_call_operand.vmem [shape: f32[1,32], index: 3, kind: input, shape index: {}]   ;;  %s2552_s4 = inlined_call_operand.vmem [shape: f32[1,32], index: 4, kind: input, shape index: {}]   ;;  %s2553_s5 = inlined_call_operand.vmem [shape: f32[32,96], index: 5, kind: input, shape index: {}]   ;;  %s2554_s6 = inlined_call_operand.hbm [shape: f32[1,96], index: 6, kind: input, shape index: {}]   ;;  %s2555_s7 = inlined_call_operand.hbm [shape: f32[32,32], index: 7, kind: input, shape index: {}]   ;;  %s2556_s8 = inlined_call_operand.hbm [shape: f32[1,32], index: 8, kind: input, shape index: {}]   ;;  %s2557_s9 = inlined_call_operand.vmem [shape: f32[2,2,32], index: 9, kind: output, shape index: {}]  }
   0x1   :  { %15 = vsyncpa [#allocation5], 0 }
   0x2   :  { %16 = vsyncpa [#allocation8], 0  ;;  %s2183_s30 = smov [#allocation4]   ;;  %s2184_s11 = smov [#allocation2]  }
   0x3   :  { %s43_s10 = sshll.u32 %s2183_s30, 4  ;;  %s27_s12 = sshll.u32 %s2184_s11, 4  ;;  %s44_s10 = int_to_ptr.vmem [resolvable:$true] %s43_s10  ;;  %s28_s12 = int_to_ptr.vmem [resolvable:$true] %s27_s12 }
   0x4   :  { %s2089_s15 = scalar_lea.hbm %s2554_s6, 16 }
   0x5   :  { %p2090_p0 = scmp.ne.s32.totalorder %s2554_s6, %s2089_s15  ;;  %p2093_p1 = scmp.lt.u32.totalorder %s2089_s15, %s2554_s6 }
   0x7   :  { %p2095_p2 = pnand %p2093_p1, %p2090_p0 }
   0x9   :  { %2098 = shalt.err (!%p2095_p2)
}
   0xa   :  { %s2099_s20 = scalar_lea.vmem %s44_s10, 16  ;;  %s2103_s21 = scalar_lea.vmem %s44_s10, 32 }
   0xb   :  { %p2100_p3 = scmp.ne.s32.totalorder %s44_s10, %s2099_s20  ;;  %p2104_p4 = scmp.lt.s32.totalorder %s44_s10, %s44_s10 }
   0xc   :  { %p2105_p5 = scmp.lt.s32.totalorder %s2103_s21, %s2099_s20 }
   0xe   :  { %p2106_p6 = por %p2105_p5, %p2104_p4 }
  0x10   :  { %p2107_p7 = pnand %p2106_p6, %p2100_p3 }
  0x12   :  { %2110 = shalt.err (!%p2107_p7)
}
  0x13   :  { %46 = dma.hbm_to_vmem [thread:$0]  %s2554_s6, 16, %s44_s10, [#allocation5]  }
  0x14   :  { %s2111_s26 = scalar_lea.hbm %s2550_s2, 16 }
  0x15   :  { %p2112_p8 = scmp.ne.s32.totalorder %s2550_s2, %s2111_s26  ;;  %p2115_p9 = scmp.lt.u32.totalorder %s2111_s26, %s2550_s2 }
  0x17   :  { %p2117_p10 = pnand %p2115_p9, %p2112_p8 }
  0x19   :  { %2120 = shalt.err (!%p2117_p10)
}
  0x1a   :  { %s2121_s11 = scalar_lea.vmem %s28_s12, 16  ;;  %s2125_s13 = scalar_lea.vmem %s28_s12, 32 }
  0x1b   :  { %p2122_p11 = scmp.ne.s32.totalorder %s28_s12, %s2121_s11  ;;  %p2126_p12 = scmp.lt.s32.totalorder %s28_s12, %s28_s12 }
  0x1c   :  { %p2127_p13 = scmp.lt.s32.totalorder %s2125_s13, %s2121_s11 }
  0x1e   :  { %p2128_p0 = por %p2127_p13, %p2126_p12 }
  0x20   :  { %p2129_p1 = pnand %p2128_p0, %p2122_p11 }
  0x22   :  { %2132 = shalt.err (!%p2129_p1)
}
  0x23   :  { %30 = dma.hbm_to_vmem [thread:$0]  %s2550_s2, 16, %s28_s12, [#allocation3]  }
  0x24   :  { %s2185_s14 = smov [#allocation6]   ;;  %s2133_s18 = scalar_lea.hbm %s2555_s7, 512 }
  0x25   :  { %s52_s15 = sshll.u32 %s2185_s14, 4  ;;  %p2134_p2 = scmp.ne.s32.totalorder %s2555_s7, %s2133_s18  ;;  %s53_s15 = int_to_ptr.vmem [resolvable:$true] %s52_s15 }
  0x26   :  { %p2137_p3 = scmp.lt.u32.totalorder %s2133_s18, %s2555_s7 }
  0x28   :  { %p2139_p4 = pnand %p2137_p3, %p2134_p2 }
  0x2a   :  { %2142 = shalt.err (!%p2139_p4)
}
  0x2b   :  { %s2143_s23 = scalar_lea.vmem %s53_s15, 512  ;;  %p2148_p6 = scmp.lt.s32.totalorder %s53_s15, %s53_s15 }
  0x2c   :  { %p2144_p5 = scmp.ne.s32.totalorder %s53_s15, %s2143_s23  ;;  %p2149_p7 = scmp.lt.s32.totalorder %s2143_s23, %s2143_s23 }
  0x2e   :  { %p2150_p8 = por %p2149_p7, %p2148_p6 }
  0x30   :  { %p2151_p9 = pnand %p2150_p8, %p2144_p5 }
  0x32   :  { %2154 = shalt.err (!%p2151_p9)
}
  0x33   :  { %s2186_s2 = smov 128   ;;  %s2187_s12 = smov 8  }
  0x34   :  { %58 = dma.hbm_to_vmem [thread:$0]  %s2555_s7, 512, %s53_s15, [#allocation5], %s2186_s2, %s2186_s2, %s2187_s12  }
  0x35   :  { %s2188_s26 = smov [#allocation7]   ;;  %s2155_s30 = scalar_lea.hbm %s2556_s8, 16 }
  0x36   :  { %s65_s27 = sshll.u32 %s2188_s26, 4  ;;  %p2156_p10 = scmp.ne.s32.totalorder %s2556_s8, %s2155_s30  ;;  %s66_s27 = int_to_ptr.vmem [resolvable:$true] %s65_s27 }
  0x37   :  { %p2159_p11 = scmp.lt.u32.totalorder %s2155_s30, %s2556_s8 }
  0x39   :  { %p2161_p12 = pnand %p2159_p11, %p2156_p10 }
  0x3b   :  { %2164 = shalt.err (!%p2161_p12)
}
  0x3c   :  { %s2165_s14 = scalar_lea.vmem %s66_s27, 16  ;;  %s2169_s7 = scalar_lea.vmem %s66_s27, 32 }
  0x3d   :  { %p2166_p13 = scmp.ne.s32.totalorder %s66_s27, %s2165_s14  ;;  %p2170_p0 = scmp.lt.s32.totalorder %s66_s27, %s66_s27 }
  0x3e   :  { %p2171_p1 = scmp.lt.s32.totalorder %s2169_s7, %s2165_s14 }
  0x40   :  { %p2172_p2 = por %p2171_p1, %p2170_p0 }
  0x42   :  { %p2173_p3 = pnand %p2172_p2, %p2166_p13 }
  0x44   :  { %2176 = shalt.err (!%p2173_p3)
}
  0x45   :  { %68 = dma.hbm_to_vmem [thread:$0]  %s2556_s8, 16, %s66_s27, [#allocation8]  }
  0x46   :  { %2177 = dma.done.wait [#allocation3], 16  }
  0x47   :  { %2178 = vsyncadd [#allocation3], 4294967280 }
  0x48   :  { %2179 = dma.done.wait [#allocation5], 528  }
  0x49   :  { %2180 = vsyncadd [#allocation5], 4294966768 }
  0x4a   :  { %2181 = dma.done.wait [#allocation8], 16  }
  0x4b   :  { %2182 = vsyncadd [#allocation8], 4294967280  ;;  %v2189_v0 = vmov 0.0|0.0   ;;  %vm2190_vm0 = vmmov 0   ;;  %v2191_v1 = vmov 0.0   ;;  %v102_v2 = vlaneseq  ;;  %v85_v7 = vld [vmem:[%s2549_s1] sm:$0xff] }
  0x4c   :  { %2014 = vmatprep.subr.bf16.mxu0 %v2189_v0  ;;  %1909 = vmatprep.mubr.msk.f32.mxu0 %vm2190_vm0, %v2191_v1  ;;  %v2192_v3 = vmov 1983009808   ;;  %v86_v8 = vld [vmem:[%s2549_s1 + $0x8] sm:$0xff]  ;;  %v87_v9 = vld [vmem:[%s2549_s1 + $0x10] sm:$0xff]  ;;  %v88_v11 = vld [vmem:[%s2549_s1 + $0x18] sm:$0xff]  ;;  %vm106_vm1 = vcmask 261120  }
  0x4d   :  { %v100_v4 = vunpack.c.l.s4 %v2192_v3  ;;  %2020 = vmatprep.subr.bf16.mxu1 %v2189_v0  ;;  %1920 = vmatprep.mubr.msk.f32.mxu1 %vm2190_vm0, %v2191_v1  ;;  %v103_v6 = vshrl.u32 %v102_v2, 7  ;;  %v2015_v10 = vpack.c.bf16 %v86_v8, %v85_v7  ;;  %v83_v12 = vld [vmem:[%s2548_s0] sm:$0x3]  ;;  %v84_v13 = vld [vmem:[%s2548_s0 + $0x2] sm:$0x3]  ;;  %v2018_v16 = vpack.c.bf16 %v88_v11, %v87_v9  ;;  %v210_v29 = vld [vmem:[%s2553_s5 + $0x8] sm:$0xff] }
  0x4e   :  { %v98_v14 = vcombine.low %v83_v12, %v84_v13  ;;  %v1814_v18 = vld [vmem:[#allocation2] ss:$0 sm:$0xff]  ;;  %vm179_vm2 = vcmask 257024   ;;  %v211_v30 = vld [vmem:[%s2553_s5 + $0x10] sm:$0xff]  ;;  %v212_v32 = vld [vmem:[%s2553_s5 + $0x18] sm:$0xff]  ;;  %vm320_vm3 = vcmask 64512  }
  0x4f   :  { %v101_v5 = vunpack.c.0.s8 %v100_v4  ;;  %2016 = vmatpush3.bf16.msra.mxu0 %v2015_v10  ;;  %v209_v28 = vld [vmem:[%s2553_s5] sm:$0xff]  ;;  %v2024_v33 = vpack.c.bf16 %v212_v32, %v211_v30  ;;  %s2195_s5 = smov 88   ;;  %vm503_vm4 = vcmask 1041408   ;;  %vm478_vm5 = vcmask 9216   ;;  %s2196_s15 = smov 120  }
  0x50   :  { %2017 = vmatprep.subr.bf16.mxu0 %v2189_v0  ;;  %v2021_v31 = vpack.c.bf16 %v210_v29, %v209_v28  ;;  %v1816_v38 = vld [vmem:[%s2551_s3] ss:$0 sm:$0xff]  ;;  %v1818_v43 = vld [vmem:[#allocation4] ss:$0 sm:$0xff]  ;;  %s2193_s3 = smov 64   ;;  %s2197_s16 = smov 56  }
  0x51   :  { %v2329_v15 = vsub.s32 %v101_v5, %v103_v6  ;;  %v1817_v40 = vld [vmem:[%s2552_s4] ss:$0 sm:$0xff]  ;;  %s2194_s4 = smov 96   ;;  %s2198_s8 = smov 80   ;;  %vm499_vm6 = vcmask 15360   ;;  %vm1693_vm7 = vcmask 130048  }
  0x52   :  { %2022 = vmatpush3.bf16.msra.mxu1 %v2021_v31  ;;  %s2199_s17 = smov 112   ;;  %s2200_s18 = smov 48   ;;  %vm1696_vm8 = vcmask 195584   ;;  %vm1804_vm9 = vcmask 254976  }
  0x53   :  { %v105_v17 = vrot.slane %v98_v14, %v2329_v15  ;;  %2019 = vmatpush3.bf16.msra.mxu0 %v2018_v16  ;;  %2023 = vmatprep.subr.bf16.mxu1 %v2189_v0  ;;  %s2201_s19 = smov 72   ;;  %s2202_s20 = smov 104  }
  0x54   :  { %1933 = vmatprep.subr.mxu0 %v2191_v1  ;;  %s2203_s21 = smov 40   ;;  %s2204_s22 = smov 16  }
  0x56   :  { %1910 = vmatmul.mubr.msk.f32.vlgmr.msra.gmra.mrb[0].mxu0 %vm106_vm1, %v105_v17  ;;  %2025 = vmatpush3.bf16.msra.mxu1 %v2024_v33 }
  0x57   :  { %1935 = vmatprep.mubr.msk.f32.mxu0 %vm2190_vm0, %v2191_v1  ;;  %1923 = vmatprep.subr.mxu1 %v2191_v1 }
 0x129   :  { %v175_v19 = vpop.f32.mrb[0].mxu0 }
 0x12a   :  { %v2337_v20 = vadd.f32 %v1814_v18, %v175_v19  ;;  %v1911_v21 = vpop.f32.mrb[1].mxu0 }
 0x12c   :  { %v180_v22 = vsel %vm179_vm2, %v2337_v20, 0.0 }
 0x12d   :  { %181 = vadd.xlane.f32.xlu0 %v180_v22 }
 0x1ba   :  { %v182_v23 = vpop.xlane.xlu0 %181 }
 0x1bb   :  { %v184_v24 = vmul.f32 0.03125, %v182_v23 }
 0x1bd   :  { %v185_v25 = vsub.f32 %v2337_v20, %v184_v24 }
 0x1bf   :  { %v186_v26 = vmul.f32 %v185_v25, %v185_v25 }
 0x1c1   :  { %v187_v27 = vsel %vm179_vm2, %v186_v26, 0.0 }
 0x1c2   :  { %188 = vadd.xlane.f32.xlu0 %v187_v27 }
 0x24f   :  { %v189_v34 = vpop.xlane.xlu0 %188 }
 0x250   :  { %v190_v35 = vmul.f32 0.03125, %v189_v34 }
 0x252   :  { %v191_v36 = vadd.f32 1e-05, %v190_v35 }
 0x254   :  { %2055 = vrsqrt.f32 %v191_v36 }
 0x25e   :  { %v2056_v37 = vpop.eup %2055 }
 0x25f   :  { %v193_v39 = vmul.f32 %v2056_v37, %v185_v25 }
 0x261   :  { %v200_v41 = vmul.f32 %v1816_v38, %v193_v39 }
 0x263   :  { %v207_v42 = vadd.f32 %v1817_v40, %v200_v41 }
 0x265   :  { %1921 = vmatmul.mubr.msk.f32.vlgmr.msra.gmra.mrb[0].mxu1 %vm106_vm1, %v207_v42 }
 0x266   :  { %1925 = vmatprep.mubr.msk.f32.mxu1 %vm2190_vm0, %v2191_v1 }
 0x338   :  { %v288_v44 = vpop.f32.mrb[0].mxu1 }
 0x339   :  { %v289_v45 = vadd.f32 %v1818_v43, %v288_v44  ;;  %v1922_v46 = vpop.f32.mrb[1].mxu1 }
 0x33b   :  { %v309_v47 = vrot.slane %v289_v45, %v2329_v15  ;;  %v292_v51 = vmul.f32 0.35355338, %v289_v45 }
 0x33d   :  { %v310_v48 = vcombine.high %v309_v47, %v309_v47  ;;  %v2366_v49 = vrot.slane %v309_v47, %v2329_v15  ;;  %v300_v54 = vrot.slane %v292_v51, %v2329_v15 }
 0x33f   :  { %497 = vrot.lane.b32.xlu0 %v2366_v49, %s2193_s3  ;;  %318 = vrot.lane.b32.xlu1 %v2366_v49, %s2194_s4  ;;  %v2371_v50 = vrot.slane %v310_v48, %v2329_v15  ;;  %v301_v57 = vcombine.high %v300_v54, %v300_v54  ;;  %v2395_v3 = vrot.slane %v300_v54, %v2329_v15 }
 0x341   :  { %v2401_v4 = vrot.slane %v301_v57, %v2329_v15 }
 0x343   :  { %666 = vrot.lane.b32.xlu0 %v2366_v49, %s2195_s5  ;;  %402 = vrot.lane.b32.xlu1 %v2371_v50, %s2194_s4 }
 0x347   :  { %576 = vrot.lane.b32.xlu0 %v2371_v50, %s2193_s3 }
 0x3b1   :  { %v498_v52 = vpop.permute.xlu0 %497  ;;  %v319_v53 = vpop.permute.xlu1 %318 }
 0x3b2   :  { %1924 = vmatpush3.xpose.msk.msra.mxu1 %vm320_vm3, %v319_v53  ;;  %1934 = vmatpush3.msk.msra.mxu0 %vm503_vm4, %v498_v52 }
 0x3b3   :  { %1928 = vmatprep.subr.mxu1 %v2191_v1  ;;  %1943 = vmatprep.subr.mxu0 %v2191_v1 }
 0x3b5   :  { %v667_v55 = vpop.permute.xlu0 %666  ;;  %v403_v56 = vpop.permute.xlu1 %402  ;;  %1926 = vmatmul.mubr.msk.f32.vlgmr.msra.gmra.mrb[2].mxu1 %vm320_vm3, %v300_v54 }
 0x3b6   :  { %1929 = vmatpush3.xpose.msk.msra.mxu1 %vm320_vm3, %v403_v56  ;;  %1930 = vmatprep.mubr.msk.f32.mxu1 %vm2190_vm0, %v2191_v1 }
 0x3b7   :  { %1938 = vmatprep.subr.mxu1 %v2191_v1 }
 0x3b9   :  { %v577_v58 = vpop.permute.xlu0 %576  ;;  %1931 = vmatmul.mubr.msk.f32.vlgmr.msra.gmra.mrb[4].mxu1 %vm320_vm3, %v301_v57 }
 0x3ba   :  { %1939 = vmatpush3.msk.msra.mxu1 %vm503_vm4, %v577_v58  ;;  %1940 = vmatprep.mubr.msk.f32.mxu1 %vm2190_vm0, %v2191_v1 }
 0x3bb   :  { %1948 = vmatprep.subr.mxu1 %v2191_v1 }
 0x488   :  { %v391_v59 = vpop.f32.mrb[2].mxu1 }
 0x489   :  { %v1927_v60 = vpop.f32.mrb[3].mxu1  ;;  %v479_v61 = vsel %vm478_vm5, %v391_v59, -inf }
 0x48a   :  { %480 = vmax.xlane.f32.xlu0 %v479_v61 }
 0x48c   :  { %v474_v62 = vpop.f32.mrb[4].mxu1 }
 0x48d   :  { %v1932_v63 = vpop.f32.mrb[5].mxu1  ;;  %v482_v2 = vsel %vm478_vm5, %v474_v62, -inf }
 0x48e   :  { %483 = vmax.xlane.f32.xlu1 %v482_v2 }
 0x49f   :  { %664 = vrot.lane.b32.xlu1 %v2395_v3, %s2196_s15 }
 0x4a0   :  { %751 = vrot.lane.b32.xlu0 %v2371_v50, %s2195_s5 }
 0x4a3   :  { %922 = vrot.lane.b32.xlu1 %v2371_v50, %s2197_s16 }
 0x4a4   :  { %749 = vrot.lane.b32.xlu0 %v2401_v4, %s2196_s15 }
 0x4a8   :  { %845 = vrot.lane.b32.xlu0 %v2366_v49, %s2197_s16 }
 0x4ac   :  { %1005 = vrot.lane.b32.xlu0 %v2366_v49, %s2198_s8 }
 0x517   :  { %v481_v5 = vpop.xlane.xlu0 %480 }
 0x518   :  { %v485_v6 = vsub.f32 %v391_v59, %v481_v5 }
 0x51a   :  { %v487_v7 = vmul.f32 1.442695, %v485_v6 }
 0x51b   :  { %v484_v8 = vpop.xlane.xlu1 %483  ;;  %v752_v11 = vpop.permute.xlu0 %751 }
 0x51c   :  { %2057 = vpow2.f32 %v487_v7  ;;  %v486_v9 = vsub.f32 %v474_v62, %v484_v8 }
 0x51e   :  { %v489_v10 = vmul.f32 1.442695, %v486_v9 }
 0x51f   :  { %v750_v12 = vpop.permute.xlu0 %749  ;;  %v665_v14 = vpop.permute.xlu1 %664 }
 0x520   :  { %2059 = vpow2.f32 %v489_v10 }
 0x523   :  { %v846_v17 = vpop.permute.xlu0 %845  ;;  %v923_v18 = vpop.permute.xlu1 %922 }
 0x526   :  { %v2408_v13 = vpop.eup %2057 }
 0x527   :  { %1936 = vmatmul.mubr.msk.f32.vlgmr.msra.gmra.mrb[2].mxu0 %vm499_vm6, %v2408_v13  ;;  %v1006_v30 = vpop.permute.xlu0 %1005 }
 0x528   :  { %1944 = vmatpush3.xpose.msk.msra.mxu0 %vm320_vm3, %v667_v55  ;;  %1945 = vmatprep.mubr.msk.f32.mxu0 %vm2190_vm0, %v2191_v1 }
 0x529   :  { %1953 = vmatprep.subr.mxu0 %v2191_v1 }
 0x52a   :  { %v2416_v16 = vpop.eup %2059 }
 0x52b   :  { %1941 = vmatmul.mubr.msk.f32.vlgmr.msra.gmra.mrb[6].mxu1 %vm499_vm6, %v2416_v16  ;;  %1946 = vmatmul.mubr.msk.f32.vlgmr.msra.gmra.mrb[4].mxu0 %vm320_vm3, %v665_v14 }
 0x52c   :  { %1949 = vmatpush3.xpose.msk.msra.mxu1 %vm320_vm3, %v752_v11  ;;  %1954 = vmatpush3.msk.msra.mxu0 %vm503_vm4, %v846_v17 }
 0x52d   :  { %1950 = vmatprep.mubr.msk.f32.mxu1 %vm2190_vm0, %v2191_v1  ;;  %1958 = vmatprep.subr.mxu1 %v2191_v1 }
 0x52e   :  { %1955 = vmatprep.mubr.msk.f32.mxu0 %vm2190_vm0, %v2191_v1  ;;  %1963 = vmatprep.subr.mxu0 %v2191_v1 }
 0x52f   :  { %1951 = vmatmul.mubr.msk.f32.vlgmr.msra.gmra.mrb[8].mxu1 %vm320_vm3, %v750_v12 }
 0x530   :  { %1959 = vmatpush3.msk.msra.mxu1 %vm503_vm4, %v923_v18  ;;  %1960 = vmatprep.mubr.msk.f32.mxu1 %vm2190_vm0, %v2191_v1 }
 0x531   :  { %1968 = vmatprep.subr.mxu1 %v2191_v1 }
 0x5fa   :  { %v2434_v19 = vpop.f32.mrb[2].mxu0 }
 0x5fb   :  { %v1937_v21 = vpop.f32.mrb[3].mxu0 }
 0x5fe   :  { %v2436_v22 = vpop.f32.mrb[6].mxu1  ;;  %v738_v23 = vpop.f32.mrb[4].mxu0 }
 0x5ff   :  { %v1942_v24 = vpop.f32.mrb[7].mxu1  ;;  %v1947_v25 = vpop.f32.mrb[5].mxu0  ;;  %v827_v26 = vsel %vm478_vm5, %v738_v23, -inf }
 0x600   :  { %828 = vmax.xlane.f32.xlu0 %v827_v26 }
 0x602   :  { %v823_v27 = vpop.f32.mrb[8].mxu1 }
 0x603   :  { %v1952_v28 = vpop.f32.mrb[9].mxu1  ;;  %v830_v29 = vsel %vm478_vm5, %v823_v27, -inf }
 0x604   :  { %831 = vmax.xlane.f32.xlu1 %v830_v29 }
 0x615   :  { %1081 = vrot.lane.b32.xlu1 %v2401_v4, %s2199_s17 }
 0x616   :  { %1083 = vrot.lane.b32.xlu0 %v2371_v50, %s2198_s8 }
 0x619   :  { %1254 = vrot.lane.b32.xlu1 %v2371_v50, %s2200_s18 }
 0x61a   :  { %1003 = vrot.lane.b32.xlu0 %v2395_v3, %s2199_s17 }
 0x61d   :  { %1415 = vrot.lane.b32.xlu1 %v2371_v50, %s2201_s19 }
 0x61e   :  { %1177 = vrot.lane.b32.xlu0 %v2366_v49, %s2200_s18 }
 0x68d   :  { %v829_v31 = vpop.xlane.xlu0 %828 }
 0x68e   :  { %v833_v32 = vsub.f32 %v738_v23, %v829_v31 }
 0x690   :  { %v835_v33 = vmul.f32 1.442695, %v833_v32 }
 0x691   :  { %v832_v34 = vpop.xlane.xlu1 %831  ;;  %v1084_v37 = vpop.permute.xlu0 %1083 }
 0x692   :  { %2061 = vpow2.f32 %v835_v33  ;;  %v834_v35 = vsub.f32 %v823_v27, %v832_v34 }
 0x694   :  { %v837_v36 = vmul.f32 1.442695, %v834_v35  ;;  %v491_v35 = vsel %vm478_vm5, %v2408_v13, 0.0 }
 0x695   :  { %v1004_v38 = vpop.permute.xlu0 %1003  ;;  %v1082_v40 = vpop.permute.xlu1 %1081 }
 0x696   :  { %2063 = vpow2.f32 %v837_v36 }
 0x699   :  { %v1178_v42 = vpop.permute.xlu0 %1177  ;;  %v1255_v43 = vpop.permute.xlu1 %1254 }
 0x69c   :  { %v2448_v39 = vpop.eup %2061 }
 0x69d   :  { %1956 = vmatmul.mubr.msk.f32.vlgmr.msra.gmra.mrb[6].mxu0 %vm499_vm6, %v2448_v39  ;;  %v1416_v56 = vpop.permute.xlu1 %1415  ;;  %v839_v21 = vsel %vm478_vm5, %v2448_v39, 0.0 }
 0x69e   :  { %1964 = vmatpush3.xpose.msk.msra.mxu0 %vm320_vm3, %v1006_v30  ;;  %1965 = vmatprep.mubr.msk.f32.mxu0 %vm2190_vm0, %v2191_v1 }
 0x69f   :  { %1973 = vmatprep.subr.mxu0 %v2191_v1 }
 0x6a0   :  { %v2456_v41 = vpop.eup %2063 }
 0x6a1   :  { %1961 = vmatmul.mubr.msk.f32.vlgmr.msra.gmra.mrb[10].mxu1 %vm499_vm6, %v2456_v41  ;;  %1966 = vmatmul.mubr.msk.f32.vlgmr.msra.gmra.mrb[8].mxu0 %vm320_vm3, %v1004_v38  ;;  %v842_v24 = vsel %vm478_vm5, %v2456_v41, 0.0 }
 0x6a2   :  { %1969 = vmatpush3.xpose.msk.msra.mxu1 %vm320_vm3, %v1084_v37  ;;  %1974 = vmatpush3.msk.msra.mxu0 %vm503_vm4, %v1178_v42  ;;  %v494_v37 = vsel %vm478_vm5, %v2416_v16, 0.0 }
 0x6a3   :  { %1970 = vmatprep.mubr.msk.f32.mxu1 %vm2190_vm0, %v2191_v1  ;;  %1978 = vmatprep.subr.mxu1 %v2191_v1 }
 0x6a4   :  { %1975 = vmatprep.mubr.msk.f32.mxu0 %vm2190_vm0, %v2191_v1  ;;  %1983 = vmatprep.subr.mxu0 %v2191_v1 }
 0x6a5   :  { %1971 = vmatmul.mubr.msk.f32.vlgmr.msra.gmra.mrb[12].mxu1 %vm320_vm3, %v1082_v40 }
 0x6a6   :  { %1979 = vmatpush3.msk.msra.mxu1 %vm503_vm4, %v1255_v43  ;;  %1980 = vmatprep.mubr.msk.f32.mxu1 %vm2190_vm0, %v2191_v1 }
 0x6a7   :  { %1988 = vmatprep.subr.mxu1 %v2191_v1 }
 0x770   :  { %v2474_v44 = vpop.f32.mrb[6].mxu0 }
 0x771   :  { %v1957_v45 = vpop.f32.mrb[7].mxu0 }
 0x774   :  { %v2476_v46 = vpop.f32.mrb[10].mxu1  ;;  %v1077_v47 = vpop.f32.mrb[8].mxu0 }
 0x775   :  { %v1962_v48 = vpop.f32.mrb[11].mxu1  ;;  %v1967_v51 = vpop.f32.mrb[9].mxu0  ;;  %v1159_v52 = vsel %vm478_vm5, %v1077_v47, -inf }
 0x776   :  { %1160 = vmax.xlane.f32.xlu0 %v1159_v52  ;;  %v1699_v52 = vld [vmem:[#allocation6] sm:$0xff] }
 0x778   :  { %v1155_v53 = vpop.f32.mrb[12].mxu1 }
 0x779   :  { %v1972_v54 = vpop.f32.mrb[13].mxu1  ;;  %v1162_v55 = vsel %vm478_vm5, %v1155_v53, -inf }
 0x77a   :  { %1163 = vmax.xlane.f32.xlu1 %v1162_v55  ;;  %v1702_v55 = vld [vmem:[#allocation6 + $0x18] sm:$0xff] }
 0x78b   :  { %1413 = vrot.lane.b32.xlu1 %v2401_v4, %s2202_s20 }
 0x78c   :  { %1337 = vrot.lane.b32.xlu0 %v2366_v49, %s2201_s19 }
 0x790   :  { %1335 = vrot.lane.b32.xlu0 %v2395_v3, %s2202_s20 }
 0x803   :  { %v1161_v57 = vpop.xlane.xlu0 %1160 }
 0x804   :  { %v1165_v58 = vsub.f32 %v1077_v47, %v1161_v57 }
 0x806   :  { %v1167_v59 = vmul.f32 1.442695, %v1165_v58 }
 0x807   :  { %v1164_v60 = vpop.xlane.xlu1 %1163  ;;  %v1338_v63 = vpop.permute.xlu0 %1337 }
 0x808   :  { %2065 = vpow2.f32 %v1167_v59  ;;  %v1166_v61 = vsub.f32 %v1155_v53, %v1164_v60 }
 0x80a   :  { %v1169_v62 = vmul.f32 1.442695, %v1166_v61 }
 0x80b   :  { %v1336_v4 = vpop.permute.xlu0 %1335  ;;  %v1414_v5 = vpop.permute.xlu1 %1413 }
 0x80c   :  { %2067 = vpow2.f32 %v1169_v62 }
 0x812   :  { %v2066_v2 = vpop.eup %2065 }
 0x813   :  { %1976 = vmatmul.mubr.msk.f32.vlgmr.msra.gmra.mrb[10].mxu0 %vm499_vm6, %v2066_v2  ;;  %v1171_v23 = vsel %vm478_vm5, %v2066_v2, 0.0 }
 0x814   :  { %1984 = vmatpush3.xpose.msk.msra.mxu0 %vm320_vm3, %v1338_v63  ;;  %1985 = vmatprep.mubr.msk.f32.mxu0 %vm2190_vm0, %v2191_v1 }
 0x815   :  { %1993 = vmatprep.subr.mxu0 %v2191_v1 }
 0x816   :  { %v2068_v3 = vpop.eup %2067 }
 0x817   :  { %1981 = vmatmul.mubr.msk.f32.vlgmr.msra.gmra.mrb[14].mxu1 %vm499_vm6, %v2068_v3  ;;  %1986 = vmatmul.mubr.msk.f32.vlgmr.msra.gmra.mrb[12].mxu0 %vm320_vm3, %v1336_v4  ;;  %v1174_v25 = vsel %vm478_vm5, %v2068_v3, 0.0 }
 0x818   :  { %1989 = vmatpush3.xpose.msk.msra.mxu1 %vm320_vm3, %v1416_v56  ;;  %1990 = vmatprep.mubr.msk.f32.mxu1 %vm2190_vm0, %v2191_v1 }
 0x819   :  { %1998 = vmatprep.subr.mxu1 %v2191_v1  ;;  %1995 = vmatprep.mubr.msk.f32.mxu0 %vm2190_vm0, %v2191_v1 }
 0x81b   :  { %1991 = vmatmul.mubr.msk.f32.vlgmr.msra.gmra.mrb[16].mxu1 %vm320_vm3, %v1414_v5 }
 0x81c   :  { %2000 = vmatprep.mubr.msk.f32.mxu1 %vm2190_vm0, %v2191_v1 }
 0x8e6   :  { %v2500_v6 = vpop.f32.mrb[10].mxu0 }
 0x8e7   :  { %v1977_v7 = vpop.f32.mrb[11].mxu0 }
 0x8ea   :  { %v2502_v8 = vpop.f32.mrb[14].mxu1  ;;  %v1409_v9 = vpop.f32.mrb[12].mxu0 }
 0x8eb   :  { %v1982_v10 = vpop.f32.mrb[15].mxu1  ;;  %v1987_v11 = vpop.f32.mrb[13].mxu0  ;;  %v1491_v12 = vsel %vm478_vm5, %v1409_v9, -inf }
 0x8ec   :  { %1492 = vmax.xlane.f32.xlu0 %v1491_v12 }
 0x8ee   :  { %v1487_v14 = vpop.f32.mrb[16].mxu1 }
 0x8ef   :  { %v1992_v17 = vpop.f32.mrb[17].mxu1  ;;  %v1494_v18 = vsel %vm478_vm5, %v1487_v14, -inf }
 0x8f0   :  { %1495 = vmax.xlane.f32.xlu1 %v1494_v18 }
 0x901   :  { %1586 = vrot.lane.b32.xlu1 %v2371_v50, %s2203_s21 }
 0x902   :  { %1509 = vrot.lane.b32.xlu0 %v2366_v49, %s2203_s21 }
 0x921   :  { %840 = vadd.xlane.f32.xlu0 %v839_v21 }
 0x925   :  { %1172 = vadd.xlane.f32.xlu0 %v1171_v23  ;;  %843 = vadd.xlane.f32.xlu1 %v842_v24 }
 0x929   :  { %1175 = vadd.xlane.f32.xlu0 %v1174_v25 }
 0x979   :  { %v1493_v26 = vpop.xlane.xlu0 %1492 }
 0x97a   :  { %v1497_v27 = vsub.f32 %v1409_v9, %v1493_v26 }
 0x97c   :  { %v1499_v28 = vmul.f32 1.442695, %v1497_v27 }
 0x97d   :  { %v1510_v50 = vpop.permute.xlu0 %1509  ;;  %v1496_v29 = vpop.xlane.xlu1 %1495 }
 0x97e   :  { %2069 = vpow2.f32 %v1499_v28  ;;  %v1498_v49 = vsub.f32 %v1487_v14, %v1496_v29  ;;  %1994 = vmatpush3.msk.msra.mxu0 %vm503_vm4, %v1510_v50 }
 0x97f   :  { %2026 = vmatprep.subr.bf16.mxu0 %v2189_v0 }
 0x980   :  { %v1501_v30 = vmul.f32 1.442695, %v1498_v49 }
 0x981   :  { %v1587_v31 = vpop.permute.xlu1 %1586 }
 0x982   :  { %2071 = vpow2.f32 %v1501_v30  ;;  %1999 = vmatpush3.msk.msra.mxu1 %vm503_vm4, %v1587_v31 }
 0x988   :  { %v2070_v32 = vpop.eup %2069 }
 0x989   :  { %1996 = vmatmul.mubr.msk.f32.vlgmr.msra.gmra.mrb[14].mxu0 %vm499_vm6, %v2070_v32  ;;  %v1503_v33 = vsel %vm478_vm5, %v2070_v32, 0.0 }
 0x98a   :  { %1504 = vadd.xlane.f32.xlu0 %v1503_v33  ;;  %2011 = vmatprep.mubr.msk.f32.mxu0 %vm2190_vm0, %v2191_v1 }
 0x98c   :  { %v2072_v34 = vpop.eup %2071 }
 0x98d   :  { %2001 = vmatmul.mubr.msk.f32.vlgmr.msra.gmra.mrb[18].mxu1 %vm499_vm6, %v2072_v34  ;;  %v1506_v36 = vsel %vm478_vm5, %v2072_v34, 0.0 }
 0x98e   :  { %492 = vadd.xlane.f32.xlu0 %v491_v35  ;;  %1507 = vadd.xlane.f32.xlu1 %v1506_v36 }
 0x992   :  { %495 = vadd.xlane.f32.xlu1 %v494_v37 }
 0x9ae   :  { %v841_v38 = vpop.xlane.xlu0 %840 }
 0x9af   :  { %2073 = vrcp.f32 %v841_v38 }
 0x9b2   :  { %v1173_v39 = vpop.xlane.xlu0 %1172  ;;  %v844_v40 = vpop.xlane.xlu1 %843 }
 0x9b3   :  { %2075 = vrcp.f32 %v844_v40 }
 0x9b4   :  { %2077 = vrcp.f32 %v1173_v39 }
 0x9b6   :  { %v1176_v1 = vpop.xlane.xlu0 %1175 }
 0x9b7   :  { %2079 = vrcp.f32 %v1176_v1 }
 0x9b9   :  { %v2074_v41 = vpop.eup %2073 }
 0x9ba   :  { %v1001_v42 = vmul.f32 %v2074_v41, %v2474_v44  ;;  %v1700_v44 = vld [vmem:[#allocation6 + $0x8] sm:$0xff] }
 0x9bb   :  { %v2027_v54 = vpack.c.bf16 %v1700_v44, %v1699_v52 }
 0x9bc   :  { %1669 = vrot.lane.b32.xlu0 %v1001_v42, %s2187_s12 }
 0x9bd   :  { %v2076_v13 = vpop.eup %2075  ;;  %2028 = vmatpush3.bf16.msra.mxu0 %v2027_v54 }
 0x9be   :  { %v1002_v43 = vmul.f32 %v2076_v13, %v2476_v46  ;;  %v2078_v45 = vpop.eup %2077  ;;  %2029 = vmatprep.subr.bf16.mxu0 %v2189_v0  ;;  %v1701_v46 = vld [vmem:[#allocation6 + $0x10] sm:$0xff] }
 0x9bf   :  { %v1333_v16 = vmul.f32 %v2078_v45, %v2500_v6  ;;  %v2030_v56 = vpack.c.bf16 %v1702_v55, %v1701_v46 }
 0x9c0   :  { %1671 = vrot.lane.b32.xlu1 %v1002_v43, %s2187_s12  ;;  %s2205_s12 = smov 24  }
 0x9c1   :  { %v2080_v47 = vpop.eup %2079  ;;  %2031 = vmatpush3.bf16.msra.mxu0 %v2030_v56 }
 0x9c2   :  { %v1334_v48 = vmul.f32 %v2080_v47, %v2502_v8 }
 0x9c4   :  { %1677 = vrot.lane.b32.xlu1 %v1333_v16, %s2204_s22 }
 0x9c8   :  { %1679 = vrot.lane.b32.xlu1 %v1334_v48, %s2204_s22 }
 0xa17   :  { %v1505_v51 = vpop.xlane.xlu0 %1504 }
 0xa18   :  { %2081 = vrcp.f32 %v1505_v51 }
 0xa1b   :  { %v1508_v53 = vpop.xlane.xlu1 %1507  ;;  %v493_v3 = vpop.xlane.xlu0 %492 }
 0xa1c   :  { %2083 = vrcp.f32 %v1508_v53 }
 0xa1d   :  { %2085 = vrcp.f32 %v493_v3 }
 0xa1f   :  { %v496_v4 = vpop.xlane.xlu1 %495 }
 0xa20   :  { %2087 = vrcp.f32 %v496_v4 }
 0xa22   :  { %v2082_v57 = vpop.eup %2081 }
 0xa26   :  { %v2084_v61 = vpop.eup %2083 }
 0xa27   :  { %v2086_v6 = vpop.eup %2085 }
 0xa28   :  { %v655_v10 = vmul.f32 %v2086_v6, %v2434_v19  ;;  %v1852_v19 = vld [vmem:[#allocation7] ss:$0 sm:$0xff] }
 0xa2a   :  { %v2088_v7 = vpop.eup %2087 }
 0xa2b   :  { %v656_v11 = vmul.f32 %v2088_v7, %v2436_v22 }
 0xa2e   :  { %v1670_v8 = vpop.permute.xlu0 %1669 }
 0xa2f   :  { %v1691_v14 = vsel %vm320_vm3, %v655_v10, %v1670_v8 }
 0xa32   :  { %v1672_v0 = vpop.permute.xlu1 %1671 }
 0xa33   :  { %v1692_v17 = vsel %vm320_vm3, %v656_v11, %v1672_v0 }
 0xa36   :  { %v1678_v5 = vpop.permute.xlu1 %1677 }
 0xa37   :  { %v1694_v18 = vsel %vm1693_vm7, %v1691_v14, %v1678_v5 }
 0xa3a   :  { %v1680_v9 = vpop.permute.xlu1 %1679 }
 0xa3b   :  { %v1695_v21 = vsel %vm1693_vm7, %v1692_v17, %v1680_v9 }
 0xa5c   :  { %v1582_v58 = vpop.f32.mrb[14].mxu0 }
 0xa5d   :  { %v1665_v59 = vmul.f32 %v2082_v57, %v1582_v58  ;;  %v1997_v60 = vpop.f32.mrb[15].mxu0 }
 0xa5f   :  { %1685 = vrot.lane.b32.xlu0 %v1665_v59, %s2205_s12 }
 0xa60   :  { %v1659_v62 = vpop.f32.mrb[18].mxu1 }
 0xa61   :  { %v1666_v63 = vmul.f32 %v2084_v61, %v1659_v62  ;;  %v2002_v2 = vpop.f32.mrb[19].mxu1 }
 0xa63   :  { %1687 = vrot.lane.b32.xlu1 %v1666_v63, %s2205_s12 }
 0xad1   :  { %v1686_v12 = vpop.permute.xlu0 %1685 }
 0xad2   :  { %v1697_v24 = vsel %vm1696_vm8, %v1694_v18, %v1686_v12 }
 0xad5   :  { %v1688_v23 = vpop.permute.xlu1 %1687 }
 0xad6   :  { %v1698_v25 = vsel %vm1696_vm8, %v1695_v21, %v1688_v23 }
 0xad7   :  { %v1712_v26 = vcombine.low %v1697_v24, %v1698_v25 }
 0xad9   :  { %v1719_v27 = vrot.slane %v1712_v26, %v2329_v15 }
 0xadb   :  { %2012 = vmatmul.mubr.msk.f32.vlgmr.msra.gmra.mrb[16].mxu0 %vm106_vm1, %v1719_v27 }
 0xbae   :  { %v1788_v28 = vpop.f32.mrb[16].mxu0 }
 0xbaf   :  { %v1789_v22 = vadd.f32 %v1852_v19, %v1788_v28  ;;  %v2013_v50 = vpop.f32.mrb[17].mxu0 }
 0xbb1   :  { %v1792_v29 = vadd.f32 %v1789_v22, %v2337_v20 }
 0xbb3   :  { %v1800_v49 = vrot.slane %v1792_v29, %v2329_v15 }
 0xbb5   :  { %v1801_v30 = vcombine.high %v1800_v49, %v1800_v49  ;;  %1805 = vst.msk [vmem:[%s2557_s9] sm:$0x3] %vm1804_vm9, %v1800_v49 }
 0xbb7   :  { %1806 = vst.msk [vmem:[%s2557_s9 + $0x2] sm:$0x3] %vm1804_vm9, %v1801_v30 }
 0xbb8   :  { %1811 = vsyncpa [#allocation3], 1 }
 0xbb9   :  { %1812 = vsyncpa [#allocation5], 1 }
 0xbba   :  { %1813 = vsyncpa [#allocation8], 1 }

// kernel: cross_frame_attention_block.4
= control target key start
LH: loop header
LB: loop body
LE: loop exit
PB: predicated region body
PF: predicated region fallthrough
CT: control target
= control target key end

     0   :  { %s2749_s27 = smov 0   ;;  %s3143_s0 = inlined_call_operand.vmem [shape: f32[4,8,32], index: 0, kind: input, shape index: {}, may-alias: {0,8}]   ;;  %s3144_s1 = inlined_call_operand.vmem [shape: f32[4,1,32], index: 1, kind: input, shape index: {}]   ;;  %s3145_s2 = inlined_call_operand.vmem [shape: f32[1,32], index: 2, kind: input, shape index: {}]   ;;  %s3146_s3 = inlined_call_operand.vmem [shape: f32[1,32], index: 3, kind: input, shape index: {}]   ;;  %s3147_s4 = inlined_call_operand.vmem [shape: f32[32,96], index: 4, kind: input, shape index: {}]   ;;  %s3148_s5 = inlined_call_operand.vmem [shape: f32[1,96], index: 5, kind: input, shape index: {}]   ;;  %s3149_s6 = inlined_call_operand.vmem [shape: f32[32,32], index: 6, kind: input, shape index: {}]   ;;  %s3150_s7 = inlined_call_operand.vmem [shape: f32[1,32], index: 7, kind: input, shape index: {}]   ;;  %s3151_s8 = inlined_call_operand.vmem [shape: f32[4,8,32], index: 8, kind: output, shape index: {}, may-alias: {0,8}]  }
   0x1 LB: > { %s2367_s28 = sadd.s32 4294967295, %s2684_s27   ;;  %p2371_p0 = scmp.ge.s32.totalorder %s2684_s27, 1  ;;  %s2684_s27 = sphi %s2749_s27, %s18_s27  }
   0x2   : > { %p273_p1 = scmp.lt.s32.totalorder %s2684_s27, 3 }
   0x4   : > { %p274_p2 = pnand %p2371_p0, %p273_p1 }
   0x5   : > { %s2372_s29 = sshll.u32 (!%p274_p2), %s2367_s28, 1  ;;  %v478_v0 = vlaneseq (!%p274_p2)  ;;  %v2686_v1 = vmov (!%p274_p2), 1966171168   ;;  %vm332_vm0 = vcmask (!%p274_p2), 261120   ;;  %vm490_vm1 = vcmask (!%p274_p2), 254976   ;;  %v377_v40 = vld [vmem:[%s3147_s4] sm:$0xff] (!%p274_p2) }
   0x6   : > { %277 = sbr.rel (%p274_p2) target bundleno = 2721 (0xaa1), region = 52  ;;  %p312_p3 = scmp.lt.s32.totalorder (!%p274_p2), %s2372_s29, 3  ;;  %v476_v2 = vunpack.c.l.s4 (!%p274_p2), %v2686_v1  ;;  %v378_v41 = vld [vmem:[%s3147_s4 + $0x8] sm:$0xff] (!%p274_p2)  ;;  %v379_v43 = vld [vmem:[%s3147_s4 + $0x10] sm:$0xff] (!%p274_p2)  ;;  %v380_v44 = vld [vmem:[%s3147_s4 + $0x18] sm:$0xff] (!%p274_p2)  ;;  %v2687_v46 = vmov (!%p274_p2), 0.0|0.0  }
   0x7   : > { %v2757_v3 = vshrl.u32 (!%p274_p2), %v478_v0, 7  ;;  %v2574_v42 = vpack.c.bf16 (!%p274_p2), %v378_v41, %v377_v40  ;;  %v2578_v45 = vpack.c.bf16 (!%p274_p2), %v380_v44, %v379_v43  ;;  %2582 = vmatprep.subr.bf16.mxu1 (!%p274_p2), %v2687_v46  ;;  %vm2688_vm2 = vmmov (!%p274_p2), 0   ;;  %v2377_v55 = vld [vmem:[%s3145_s2] ss:$0 sm:$0xff] (!%p274_p2)  ;;  %s2690_s10 = smov (!%p274_p2), 96   ;;  %s2692_s12 = smov (!%p274_p2), 88  }
   0x8   : > { %v477_v4 = vunpack.c.0.s8 (!%p274_p2), %v476_v2  ;;  %v2689_v47 = vmov (!%p274_p2), 0.0   ;;  %v2378_v59 = vld [vmem:[%s3146_s3] ss:$0 sm:$0xff] (!%p274_p2)  ;;  %vm714_vm3 = vcmask (!%p274_p2), 64512   ;;  %s2693_s13 = smov (!%p274_p2), 120   ;;  %s2694_s15 = smov (!%p274_p2), 56  }
   0x9   : > { %v2785_v24 = vsub.s32 (!%p274_p2), 0, %v2757_v3  ;;  %v502_v25 = vsub.s32 (!%p274_p2), 1, %v2757_v3  ;;  %2575 = vmatprep.subr.bf16.mxu0 (!%p274_p2), %v2574_v42  ;;  %2584 = vmatpush3.bf16.msra.mxu1 (!%p274_p2), %v2574_v42  ;;  %s2695_s16 = smov (!%p274_p2), 80   ;;  %s2696_s17 = smov (!%p274_p2), 112   ;;  %vm2200_vm4 = vcmask (!%p274_p2), 130048   ;;  %vm2203_vm5 = vcmask (!%p274_p2), 195584  }
   0xa   : > { %v2767_v5 = vsub.s32 (!%p274_p2), %v477_v4, %v2757_v3  ;;  %2577 = vmatpush3.bf16.msra.mxu0 (!%p274_p2), %v2574_v42  ;;  %2480 = vmatprep.mubr.msk.f32.mxu1 (!%p274_p2), %vm2688_vm2, %v2689_v47  ;;  %s2697_s18 = smov (!%p274_p2), 48   ;;  %s2698_s19 = smov (!%p274_p2), 72  }
   0xb   : > { %2579 = vmatprep.subr.bf16.mxu0 (!%p274_p2), %v2578_v45  ;;  %2585 = vmatprep.subr.bf16.mxu1 (!%p274_p2), %v2687_v46  ;;  %s2699_s20 = smov (!%p274_p2), 104   ;;  %s2700_s21 = smov (!%p274_p2), 40  }
   0xc   : > { %v553_v4 = vrot.slane (!%p274_p2), %v2377_v55, %v2767_v5  ;;  %s2701_s22 = smov (!%p274_p2), 8   ;;  %s2702_s23 = smov (!%p274_p2), 16  }
   0xd   : > { %s3153_s29 = smov (!%p312_p3, %s2372_s29), 3  ;;  %2587 = vmatpush3.bf16.msra.mxu1 %v2578_v45 }
   0xe   : > { %s2373_s30 = sshll.u32 %s3153_s29, 3  ;;  %s320_s11 = scalar_lea.vmem %s3144_s1, %s3153_s29  ;;  %2581 = vmatpush3.bf16.msra.mxu0 %v2578_v45  ;;  %2483 = vmatprep.subr.mxu1 %v2689_v47 }
   0xf   : > { %s2774_s14 = scalar_lea.vmem %s3143_s0, %s2373_s30  ;;  %v470_v6 = vld [vmem:[%s320_s11] sm:$0x1]  ;;  %v471_v7 = vld [vmem:[%s320_s11 + $0x1] sm:$0x1]  ;;  %2493 = vmatprep.subr.mxu0 %v2689_v47  ;;  %s2691_s11 = smov 64  }
  0x10   : > { %v330_v8 = vld [vmem:[%s2774_s14] sm:$0xff]  ;;  %v331_v9 = vld [vmem:[%s2774_s14 + $0x8] sm:$0xff]  ;;  %v474_v10 = vcombine.low %v470_v6, %v471_v7 }
  0x11   : > { %v333_v11 = vsel %vm332_vm0, %v330_v8, 0.0  ;;  %v336_v13 = vsel %vm332_vm0, %v331_v9, 0.0 }
  0x12   : > { %334 = vadd.xlane.f32.xlu0 %v333_v11  ;;  %v481_v12 = vrot.slane %v474_v10, %v2767_v5 }
  0x14   : > { %v488_v14 = vrot.slane %v481_v12, %v2767_v5  ;;  %v561_v12 = vrot.slane %v553_v4, %v2767_v5 }
  0x16   : > { %337 = vadd.xlane.f32.xlu0 %v336_v13  ;;  %v491_v15 = vsel %vm490_vm1, %v488_v14, 0.0 }
  0x1a   : > { %492 = vadd.xlane.f32.xlu0 %v491_v15 }
  0x9f   : > { %v335_v16 = vpop.xlane.xlu0 %334 }
  0xa0   : > { %v340_v17 = vmul.f32 0.03125, %v335_v16 }
  0xa2   : > { %v342_v18 = vsub.f32 %v330_v8, %v340_v17 }
  0xa3   : > { %v338_v19 = vpop.xlane.xlu0 %337 }
  0xa4   : > { %v341_v20 = vmul.f32 0.03125, %v338_v19  ;;  %v344_v21 = vmul.f32 %v342_v18, %v342_v18 }
  0xa6   : > { %v343_v22 = vsub.f32 %v331_v9, %v341_v20  ;;  %v346_v23 = vsel %vm332_vm0, %v344_v21, 0.0 }
  0xa7   : > { %347 = vadd.xlane.f32.xlu1 %v346_v23  ;;  %v493_v26 = vpop.xlane.xlu0 %492 }
  0xa8   : > { %v494_v27 = vmul.f32 0.03125, %v493_v26  ;;  %v345_v28 = vmul.f32 %v343_v22, %v343_v22 }
  0xaa   : > { %v499_v29 = vrot.slane %v494_v27, %v2785_v24  ;;  %v503_v30 = vrot.slane %v494_v27, %v502_v25  ;;  %v349_v31 = vsel %vm332_vm0, %v345_v28, 0.0 }
  0xab   : > { %350 = vadd.xlane.f32.xlu1 %v349_v31 }
  0xac   : > { %v2792_v32 = vsub.f32 %v470_v6, %v499_v29  ;;  %v507_v33 = vsub.f32 %v471_v7, %v503_v30  ;;  %v579_v6 = vrot.slane %v2378_v59, %v2767_v5  ;;  %v554_v7 = vcombine.high %v553_v4, %v553_v4 }
  0xae   : > { %v508_v34 = vmul.f32 %v2792_v32, %v2792_v32  ;;  %v509_v35 = vmul.f32 %v507_v33, %v507_v33  ;;  %v580_v8 = vcombine.high %v579_v6, %v579_v6  ;;  %v568_v13 = vrot.slane %v554_v7, %v2767_v5 }
  0xaf   : > { %v587_v16 = vrot.slane %v579_v6, %v2767_v5 }
  0xb0   : > { %v512_v36 = vcombine.low %v508_v34, %v509_v35  ;;  %v594_v17 = vrot.slane %v580_v8, %v2767_v5 }
  0xb2   : > { %v519_v37 = vrot.slane %v512_v36, %v2767_v5 }
  0xb4   : > { %v526_v38 = vrot.slane %v519_v37, %v2767_v5 }
  0xb6   : > { %v528_v39 = vsel %vm490_vm1, %v526_v38, 0.0 }
  0xb7   : > { %529 = vadd.xlane.f32.xlu1 %v528_v39 }
 0x134   : > { %v348_v48 = vpop.xlane.xlu1 %347 }
 0x135   : > { %v352_v49 = vmul.f32 0.03125, %v348_v48 }
 0x137   : > { %v354_v50 = vadd.f32 1e-05, %v352_v49 }
 0x138   : > { %v351_v51 = vpop.xlane.xlu1 %350 }
 0x139   : > { %2622 = vrsqrt.f32 %v354_v50  ;;  %v353_v52 = vmul.f32 0.03125, %v351_v51 }
 0x13b   : > { %v355_v53 = vadd.f32 1e-05, %v353_v52 }
 0x13d   : > { %2624 = vrsqrt.f32 %v355_v53 }
 0x143   : > { %v2623_v54 = vpop.eup %2622 }
 0x144   : > { %v530_v56 = vpop.xlane.xlu1 %529  ;;  %v358_v57 = vmul.f32 %v2623_v54, %v342_v18 }
 0x145   : > { %v531_v58 = vmul.f32 0.03125, %v530_v56 }
 0x146   : > { %v366_v60 = vmul.f32 %v2377_v55, %v358_v57 }
 0x147   : > { %v2625_v61 = vpop.eup %2624  ;;  %v532_v62 = vadd.f32 1e-05, %v531_v58 }
 0x148   : > { %v359_v63 = vmul.f32 %v2625_v61, %v343_v22  ;;  %v374_v0 = vadd.f32 %v2378_v59, %v366_v60 }
 0x149   : > { %2626 = vrsqrt.f32 %v532_v62 }
 0x14a   : > { %v367_v1 = vmul.f32 %v2377_v55, %v359_v63  ;;  %2469 = vmatprep.mubr.msk.f32.mxu0 %vm332_vm0, %v374_v0 }
 0x14c   : > { %v375_v2 = vadd.f32 %v2378_v59, %v367_v1 }
 0x14e   : > { %2470 = vmatmul.mubr.msk.f32.vlgmr.msra.gmra.mrb[0].mxu0 %vm332_vm0, %v375_v2 }
 0x14f   : > { %2495 = vmatprep.mubr.msk.f32.mxu0 %vm2688_vm2, %v2689_v47 }
 0x153   : > { %v2627_v9 = vpop.eup %2626 }
 0x154   : > { %v538_v10 = vrot.slane %v2627_v9, %v2785_v24  ;;  %v542_v11 = vrot.slane %v2627_v9, %v502_v25  ;;  %v2379_v25 = vld [vmem:[%s3148_s5] ss:$0 sm:$0xff] }
 0x156   : > { %v546_v14 = vmul.f32 %v542_v11, %v507_v33  ;;  %v545_v15 = vmul.f32 %v538_v10, %v2792_v32 }
 0x158   : > { %v571_v18 = vmul.f32 %v561_v12, %v545_v15  ;;  %v572_v19 = vmul.f32 %v568_v13, %v546_v14 }
 0x15a   : > { %v597_v20 = vadd.f32 %v587_v16, %v571_v18  ;;  %v598_v21 = vadd.f32 %v594_v17, %v572_v19 }
 0x15c   : > { %v601_v22 = vcombine.low %v597_v20, %v598_v21 }
 0x15e   : > { %v608_v23 = vrot.slane %v601_v22, %v2767_v5 }
 0x160   : > { %v615_v3 = vrot.slane %v608_v23, %v2767_v5 }
 0x162   : > { %2481 = vmatmul.mubr.msk.f32.vlgmr.msra.gmra.mrb[0].mxu1 %vm332_vm0, %v615_v3 }
 0x163   : > { %2485 = vmatprep.mubr.msk.f32.mxu1 %vm2688_vm2, %v2689_v47 }
 0x221   : > { %v2471_v26 = vpop.f32.mrb[0].mxu0 }
 0x222   : > { %v2843_v27 = vadd.f32 %v2471_v26, %v2379_v25  ;;  %v459_v28 = vpop.f32.mrb[1].mxu0 }
 0x223   : > { %v2845_v29 = vadd.f32 %v2379_v25, %v459_v28 }
 0x224   : > { %791 = vrot.lane.b32.xlu1 %v2843_v27, %s2690_s10 }
 0x225   : > { %712 = vrot.lane.b32.xlu0 %v2845_v29, %s2690_s10  ;;  %v2862_v40 = vmul.f32 0.35355338, %v2845_v29 }
 0x235   : > { %v684_v30 = vpop.f32.mrb[0].mxu1 }
 0x236   : > { %v685_v31 = vadd.f32 %v2379_v25, %v684_v30  ;;  %v2482_v32 = vpop.f32.mrb[1].mxu1 }
 0x238   : > { %v695_v33 = vrot.slane %v685_v31, %v2767_v5 }
 0x23a   : > { %v696_v34 = vcombine.high %v695_v33, %v695_v33  ;;  %v703_v35 = vrot.slane %v695_v33, %v2767_v5 }
 0x23c   : > { %v710_v36 = vrot.slane %v696_v34, %v2767_v5  ;;  %v2853_v37 = vrot.slane %v703_v35, %v2785_v24 }
 0x23e   : > { %v2856_v38 = vrot.slane %v710_v36, %v2785_v24  ;;  %876 = vrot.lane.b32.xlu1 %v2853_v37, %s2690_s10  ;;  %v2871_v24 = vmul.f32 0.35355338, %v2843_v27 }
 0x242   : > { %878 = vrot.lane.b32.xlu1 %v2856_v38, %s2690_s10 }
 0x296   : > { %v792_v5 = vpop.permute.xlu1 %791 }
 0x297   : > { %v713_v39 = vpop.permute.xlu0 %712 }
 0x298   : > { %2484 = vmatpush3.xpose.msk.msra.mxu1 %vm714_vm3, %v713_v39 }
 0x299   : > { %2488 = vmatprep.subr.mxu1 %v2689_v47 }
 0x29b   : > { %2486 = vmatmul.mubr.msk.f32.vlgmr.msra.gmra.mrb[2].mxu1 %vm714_vm3, %v2862_v40 }
 0x29c   : > { %2489 = vmatpush3.xpose.msk.msra.mxu1 %vm714_vm3, %v792_v5  ;;  %2490 = vmatprep.mubr.msk.f32.mxu1 %vm2688_vm2, %v2689_v47 }
 0x29d   : > { %2498 = vmatprep.subr.mxu1 %v2689_v47 }
 0x29f   : > { %2491 = vmatmul.mubr.msk.f32.vlgmr.msra.gmra.mrb[4].mxu1 %vm714_vm3, %v2871_v24 }
 0x2a0   : > { %2500 = vmatprep.mubr.msk.f32.mxu1 %vm2688_vm2, %v2689_v47 }
 0x2b0   : > { %v877_v41 = vpop.permute.xlu1 %876 }
 0x2b1   : > { %v2879_v42 = vmul.f32 %v877_v41, %v2862_v40 }
 0x2b3   : > { %v884_v43 = vsel %vm714_vm3, %v2879_v42, 0.0 }
 0x2b4   : > { %885 = vadd.xlane.f32.xlu0 %v884_v43  ;;  %v879_v44 = vpop.permute.xlu1 %878 }
 0x2b5   : > { %v2884_v45 = vmul.f32 %v879_v44, %v2871_v24 }
 0x2b7   : > { %v887_v46 = vsel %vm714_vm3, %v2884_v45, 0.0 }
 0x2b8   : > { %888 = vadd.xlane.f32.xlu0 %v887_v46 }
 0x341   : > { %v2900_v54 = vpop.xlane.xlu0 %885 }
 0x345   : > { %v2902_v55 = vpop.xlane.xlu0 %888 }
 0x36e   : > { %v786_v48 = vpop.f32.mrb[2].mxu1 }
 0x36f   : > { %v2487_v49 = vpop.f32.mrb[3].mxu1  ;;  %v890_v50 = vsel %vm714_vm3, %v786_v48, -inf }
 0x370   : > { %891 = vmax.xlane.f32.xlu1 %v890_v50 }
 0x372   : > { %v864_v51 = vpop.f32.mrb[4].mxu1 }
 0x373   : > { %v2492_v52 = vpop.f32.mrb[5].mxu1  ;;  %v893_v53 = vsel %vm714_vm3, %v864_v51, -inf }
 0x374   : > { %894 = vmax.xlane.f32.xlu0 %v893_v53 }
 0x381   : > { %1002 = vrot.lane.b32.xlu1 %v2843_v27, %s2691_s11 }
 0x385   : > { %1088 = vrot.lane.b32.xlu1 %v2845_v29, %s2692_s12 }
 0x389   : > { %1166 = vrot.lane.b32.xlu1 %v2843_v27, %s2692_s12 }
 0x38a   : > { %922 = vrot.lane.b32.xlu0 %v2845_v29, %s2691_s11 }
 0x38d   : > { %1164 = vrot.lane.b32.xlu1 %v2871_v24, %s2693_s13 }
 0x38e   : > { %1086 = vrot.lane.b32.xlu0 %v2862_v40, %s2693_s13 }
 0x391   : > { %1246 = vrot.lane.b32.xlu1 %v2884_v45, %s2693_s13 }
 0x392   : > { %1244 = vrot.lane.b32.xlu0 %v2879_v42, %s2693_s13  ;;  %s2703_s13 = smov 24  }
 0x3fd   : > { %v892_v56 = vpop.xlane.xlu1 %891 }
 0x3fe   : > { %v2905_v57 = vmax.f32 %v892_v56, %v2900_v54 }
 0x400   : > { %v898_v58 = vsub.f32 %v786_v48, %v2905_v57 }
 0x401   : > { %v1003_v59 = vpop.permute.xlu1 %1002  ;;  %v895_v60 = vpop.xlane.xlu0 %894 }
 0x402   : > { %v900_v61 = vmul.f32 1.442695, %v898_v58  ;;  %v2909_v62 = vmax.f32 %v895_v60, %v2902_v55  ;;  %2499 = vmatpush3.msra.mxu1 %v1003_v59 }
 0x403   : > { %2508 = vmatprep.subr.mxu1 %v2689_v47 }
 0x404   : > { %2628 = vpow2.f32 %v900_v61  ;;  %v899_v63 = vsub.f32 %v864_v51, %v2909_v62  ;;  %v905_v0 = vsub.f32 %v2902_v55, %v2909_v62 }
 0x405   : > { %v1089_v1 = vpop.permute.xlu1 %1088  ;;  %v923_v2 = vpop.permute.xlu0 %922 }
 0x406   : > { %v902_v4 = vmul.f32 1.442695, %v899_v63  ;;  %2494 = vmatpush3.msra.mxu0 %v923_v2 }
 0x407   : > { %2503 = vmatprep.subr.mxu0 %v2689_v47 }
 0x408   : > { %2630 = vpow2.f32 %v902_v4 }
 0x409   : > { %v1167_v6 = vpop.permute.xlu1 %1166  ;;  %v1087_v7 = vpop.permute.xlu0 %1086 }
 0x40d   : > { %v1165_v8 = vpop.permute.xlu1 %1164  ;;  %v1245_v9 = vpop.permute.xlu0 %1244 }
 0x40e   : > { %v2916_v10 = vpop.eup %2628  ;;  %v1250_v11 = vsel %vm714_vm3, %v1245_v9, 0.0 }
 0x40f   : > { %2496 = vmatmul.mubr.msk.f32.vlgmr.msra.gmra.mrb[2].mxu0 %vm714_vm3, %v2916_v10  ;;  %1251 = vadd.xlane.f32.xlu0 %v1250_v11 }
 0x410   : > { %2504 = vmatpush3.xpose.msk.msra.mxu0 %vm714_vm3, %v1089_v1  ;;  %2505 = vmatprep.mubr.msk.f32.mxu0 %vm2688_vm2, %v2689_v47 }
 0x411   : > { %v1247_v12 = vpop.permute.xlu1 %1246  ;;  %2513 = vmatprep.subr.mxu0 %v2689_v47 }
 0x412   : > { %v2925_v13 = vpop.eup %2630  ;;  %v1253_v14 = vsel %vm714_vm3, %v1247_v12, 0.0 }
 0x413   : > { %2501 = vmatmul.mubr.msk.f32.vlgmr.msra.gmra.mrb[6].mxu1 %vm714_vm3, %v2925_v13  ;;  %2506 = vmatmul.mubr.msk.f32.vlgmr.msra.gmra.mrb[4].mxu0 %vm714_vm3, %v1087_v7 }
 0x414   : > { %2509 = vmatpush3.xpose.msk.msra.mxu1 %vm714_vm3, %v1167_v6  ;;  %1254 = vadd.xlane.f32.xlu0 %v1253_v14 }
 0x415   : > { %2510 = vmatprep.mubr.msk.f32.mxu1 %vm2688_vm2, %v2689_v47  ;;  %2518 = vmatprep.subr.mxu1 %v2689_v47 }
 0x416   : > { %2515 = vmatprep.mubr.msk.f32.mxu0 %vm2688_vm2, %v2689_v47 }
 0x417   : > { %2511 = vmatmul.mubr.msk.f32.vlgmr.msra.gmra.mrb[8].mxu1 %vm714_vm3, %v1165_v8 }
 0x418   : > { %2520 = vmatprep.mubr.msk.f32.mxu1 %vm2688_vm2, %v2689_v47 }
 0x49c   : > { %v2956_v25 = vpop.xlane.xlu0 %1251 }
 0x4a1   : > { %v2958_v26 = vpop.xlane.xlu0 %1254 }
 0x4e2   : > { %v2940_v15 = vpop.f32.mrb[2].mxu0 }
 0x4e3   : > { %v2497_v16 = vpop.f32.mrb[3].mxu0 }
 0x4e6   : > { %v2942_v17 = vpop.f32.mrb[6].mxu1  ;;  %v1160_v18 = vpop.f32.mrb[4].mxu0 }
 0x4e7   : > { %v2502_v19 = vpop.f32.mrb[7].mxu1  ;;  %v2507_v20 = vpop.f32.mrb[5].mxu0  ;;  %v1256_v21 = vsel %vm714_vm3, %v1160_v18, -inf }
 0x4e8   : > { %1257 = vmax.xlane.f32.xlu1 %v1256_v21 }
 0x4ea   : > { %v1238_v22 = vpop.f32.mrb[8].mxu1 }
 0x4eb   : > { %v2512_v23 = vpop.f32.mrb[9].mxu1  ;;  %v1259_v3 = vsel %vm714_vm3, %v1238_v22, -inf }
 0x4ec   : > { %1260 = vmax.xlane.f32.xlu0 %v1259_v3 }
 0x4f9   : > { %1366 = vrot.lane.b32.xlu1 %v2843_v27, %s2694_s15 }
 0x4fd   : > { %1452 = vrot.lane.b32.xlu1 %v2845_v29, %s2695_s16 }
 0x501   : > { %1530 = vrot.lane.b32.xlu1 %v2843_v27, %s2695_s16 }
 0x502   : > { %1286 = vrot.lane.b32.xlu0 %v2845_v29, %s2694_s15 }
 0x505   : > { %1528 = vrot.lane.b32.xlu1 %v2871_v24, %s2696_s17 }
 0x506   : > { %1450 = vrot.lane.b32.xlu0 %v2862_v40, %s2696_s17 }
 0x509   : > { %1608 = vrot.lane.b32.xlu1 %v2884_v45, %s2696_s17 }
 0x50a   : > { %1606 = vrot.lane.b32.xlu0 %v2879_v42, %s2696_s17 }
 0x575   : > { %v1258_v28 = vpop.xlane.xlu1 %1257 }
 0x576   : > { %v2961_v30 = vmax.f32 %v1258_v28, %v2956_v25 }
 0x578   : > { %v1264_v31 = vsub.f32 %v1160_v18, %v2961_v30 }
 0x579   : > { %v1367_v32 = vpop.permute.xlu1 %1366  ;;  %v1261_v33 = vpop.xlane.xlu0 %1260 }
 0x57a   : > { %v1266_v34 = vmul.f32 1.442695, %v1264_v31  ;;  %v2965_v35 = vmax.f32 %v1261_v33, %v2958_v26  ;;  %2519 = vmatpush3.msra.mxu1 %v1367_v32 }
 0x57b   : > { %2528 = vmatprep.subr.mxu1 %v2689_v47 }
 0x57c   : > { %2632 = vpow2.f32 %v1266_v34  ;;  %v1265_v36 = vsub.f32 %v1238_v22, %v2965_v35  ;;  %v1271_v39 = vsub.f32 %v2958_v26, %v2965_v35 }
 0x57d   : > { %v1453_v5 = vpop.permute.xlu1 %1452  ;;  %v1287_v41 = vpop.permute.xlu0 %1286 }
 0x57e   : > { %v1268_v43 = vmul.f32 1.442695, %v1265_v36  ;;  %2514 = vmatpush3.msra.mxu0 %v1287_v41 }
 0x57f   : > { %2523 = vmatprep.subr.mxu0 %v2689_v47 }
 0x580   : > { %2634 = vpow2.f32 %v1268_v43 }
 0x581   : > { %v1531_v44 = vpop.permute.xlu1 %1530  ;;  %v1451_v46 = vpop.permute.xlu0 %1450 }
 0x585   : > { %v1529_v48 = vpop.permute.xlu1 %1528  ;;  %v1607_v49 = vpop.permute.xlu0 %1606 }
 0x586   : > { %v2972_v50 = vpop.eup %2632  ;;  %v1612_v51 = vsel %vm714_vm3, %v1607_v49, 0.0 }
 0x587   : > { %2516 = vmatmul.mubr.msk.f32.vlgmr.msra.gmra.mrb[6].mxu0 %vm714_vm3, %v2972_v50  ;;  %1613 = vadd.xlane.f32.xlu0 %v1612_v51 }
 0x588   : > { %2524 = vmatpush3.xpose.msk.msra.mxu0 %vm714_vm3, %v1453_v5  ;;  %2525 = vmatprep.mubr.msk.f32.mxu0 %vm2688_vm2, %v2689_v47 }
 0x589   : > { %v1609_v52 = vpop.permute.xlu1 %1608  ;;  %2533 = vmatprep.subr.mxu0 %v2689_v47 }
 0x58a   : > { %v2981_v53 = vpop.eup %2634  ;;  %v1615_v56 = vsel %vm714_vm3, %v1609_v52, 0.0 }
 0x58b   : > { %2521 = vmatmul.mubr.msk.f32.vlgmr.msra.gmra.mrb[10].mxu1 %vm714_vm3, %v2981_v53  ;;  %2526 = vmatmul.mubr.msk.f32.vlgmr.msra.gmra.mrb[8].mxu0 %vm714_vm3, %v1451_v46 }
 0x58c   : > { %2529 = vmatpush3.xpose.msk.msra.mxu1 %vm714_vm3, %v1531_v44  ;;  %1616 = vadd.xlane.f32.xlu0 %v1615_v56 }
 0x58d   : > { %2530 = vmatprep.mubr.msk.f32.mxu1 %vm2688_vm2, %v2689_v47  ;;  %2538 = vmatprep.subr.mxu1 %v2689_v47 }
 0x58e   : > { %2535 = vmatprep.mubr.msk.f32.mxu0 %vm2688_vm2, %v2689_v47 }
 0x58f   : > { %2531 = vmatmul.mubr.msk.f32.vlgmr.msra.gmra.mrb[12].mxu1 %vm714_vm3, %v1529_v48 }
 0x590   : > { %2540 = vmatprep.mubr.msk.f32.mxu1 %vm2688_vm2, %v2689_v47 }
 0x614   : > { %v3012_v8 = vpop.xlane.xlu0 %1613 }
 0x619   : > { %v3014_v9 = vpop.xlane.xlu0 %1616 }
 0x65a   : > { %v2996_v58 = vpop.f32.mrb[6].mxu0 }
 0x65b   : > { %v2517_v59 = vpop.f32.mrb[7].mxu0 }
 0x65c   : > { %v1274_v59 = vmul.f32 1.442695, %v1271_v39 }
 0x65e   : > { %v2998_v60 = vpop.f32.mrb[10].mxu1  ;;  %v1524_v61 = vpop.f32.mrb[8].mxu0 }
 0x65f   : > { %v2522_v63 = vpop.f32.mrb[11].mxu1  ;;  %v2527_v1 = vpop.f32.mrb[9].mxu0  ;;  %v1618_v2 = vsel %vm714_vm3, %v1524_v61, -inf }
 0x660   : > { %1619 = vmax.xlane.f32.xlu1 %v1618_v2  ;;  %v1279_v1 = vsel %vm714_vm3, %v2981_v53, 0.0 }
 0x662   : > { %v1602_v4 = vpop.f32.mrb[12].mxu1 }
 0x663   : > { %v2532_v6 = vpop.f32.mrb[13].mxu1  ;;  %v1621_v7 = vsel %vm714_vm3, %v1602_v4, -inf }
 0x664   : > { %1622 = vmax.xlane.f32.xlu0 %v1621_v7 }
 0x671   : > { %1728 = vrot.lane.b32.xlu1 %v2843_v27, %s2697_s18 }
 0x675   : > { %1814 = vrot.lane.b32.xlu1 %v2845_v29, %s2698_s19 }
 0x679   : > { %1892 = vrot.lane.b32.xlu1 %v2843_v27, %s2698_s19  ;;  %s326_s19 = scalar_lea.vmem %s3151_s8, %s2373_s30 }
 0x67a   : > { %1648 = vrot.lane.b32.xlu0 %v2845_v29, %s2697_s18 }
 0x67d   : > { %1890 = vrot.lane.b32.xlu1 %v2871_v24, %s2699_s20 }
 0x67e   : > { %1812 = vrot.lane.b32.xlu0 %v2862_v40, %s2699_s20 }
 0x681   : > { %1970 = vrot.lane.b32.xlu1 %v2884_v45, %s2699_s20 }
 0x682   : > { %1968 = vrot.lane.b32.xlu0 %v2879_v42, %s2699_s20 }
 0x6ed   : > { %v1620_v11 = vpop.xlane.xlu1 %1619 }
 0x6ee   : > { %v3017_v12 = vmax.f32 %v1620_v11, %v3012_v8 }
 0x6f0   : > { %v1626_v14 = vsub.f32 %v1524_v61, %v3017_v12  ;;  %v1632_v61 = vsub.f32 %v3012_v8, %v3017_v12 }
 0x6f1   : > { %v1729_v16 = vpop.permute.xlu1 %1728  ;;  %v1623_v18 = vpop.xlane.xlu0 %1622 }
 0x6f2   : > { %v1628_v19 = vmul.f32 1.442695, %v1626_v14  ;;  %v3021_v24 = vmax.f32 %v1623_v18, %v3014_v9  ;;  %2539 = vmatpush3.msra.mxu1 %v1729_v16 }
 0x6f3   : > { %2548 = vmatprep.subr.mxu1 %v2689_v47 }
 0x6f4   : > { %2636 = vpow2.f32 %v1628_v19  ;;  %v1627_v40 = vsub.f32 %v1602_v4, %v3021_v24  ;;  %v1633_v42 = vsub.f32 %v3014_v9, %v3021_v24 }
 0x6f5   : > { %v1815_v45 = vpop.permute.xlu1 %1814  ;;  %v1649_v20 = vpop.permute.xlu0 %1648 }
 0x6f6   : > { %v1630_v21 = vmul.f32 1.442695, %v1627_v40  ;;  %2534 = vmatpush3.msra.mxu0 %v1649_v20  ;;  %v1636_v26 = vmul.f32 1.442695, %v1633_v42 }
 0x6f7   : > { %2543 = vmatprep.subr.mxu0 %v2689_v47 }
 0x6f8   : > { %2638 = vpow2.f32 %v1630_v21 }
 0x6f9   : > { %v1893_v22 = vpop.permute.xlu1 %1892  ;;  %v1813_v23 = vpop.permute.xlu0 %1812  ;;  %2640 = vpow2.f32 %v1274_v59 }
 0x6fd   : > { %v1891_v3 = vpop.permute.xlu1 %1890  ;;  %v1969_v28 = vpop.permute.xlu0 %1968 }
 0x6fe   : > { %v2637_v31 = vpop.eup %2636  ;;  %v1974_v32 = vsel %vm714_vm3, %v1969_v28, 0.0 }
 0x6ff   : > { %2536 = vmatmul.mubr.msk.f32.vlgmr.msra.gmra.mrb[10].mxu0 %vm714_vm3, %v2637_v31  ;;  %1975 = vadd.xlane.f32.xlu0 %v1974_v32 }
 0x700   : > { %2544 = vmatpush3.xpose.msk.msra.mxu0 %vm714_vm3, %v1815_v45  ;;  %2545 = vmatprep.mubr.msk.f32.mxu0 %vm2688_vm2, %v2689_v47 }
 0x701   : > { %v1971_v33 = vpop.permute.xlu1 %1970  ;;  %2553 = vmatprep.subr.mxu0 %v2689_v47 }
 0x702   : > { %v2639_v34 = vpop.eup %2638  ;;  %v1977_v36 = vsel %vm714_vm3, %v1971_v33, 0.0 }
 0x703   : > { %2541 = vmatmul.mubr.msk.f32.vlgmr.msra.gmra.mrb[14].mxu1 %vm714_vm3, %v2639_v34  ;;  %2546 = vmatmul.mubr.msk.f32.vlgmr.msra.gmra.mrb[12].mxu0 %vm714_vm3, %v1813_v23  ;;  %v1641_v63 = vsel %vm714_vm3, %v2639_v34, 0.0  ;;  %v2641_v39 = vpop.eup %2640 }
 0x704   : > { %2549 = vmatpush3.xpose.msk.msra.mxu1 %vm714_vm3, %v1893_v22  ;;  %1978 = vadd.xlane.f32.xlu0 %v1977_v36  ;;  %v1285_v2 = vmul.f32 %v2641_v39, %v2856_v38 }
 0x705   : > { %2550 = vmatprep.mubr.msk.f32.mxu1 %vm2688_vm2, %v2689_v47  ;;  %2558 = vmatprep.subr.mxu1 %v2689_v47 }
 0x706   : > { %2555 = vmatprep.mubr.msk.f32.mxu0 %vm2688_vm2, %v2689_v47 }
 0x707   : > { %2551 = vmatmul.mubr.msk.f32.vlgmr.msra.gmra.mrb[16].mxu1 %vm714_vm3, %v1891_v3 }
 0x708   : > { %2560 = vmatprep.mubr.msk.f32.mxu1 %vm2688_vm2, %v2689_v47  ;;  %v1276_v47 = vsel %vm714_vm3, %v2972_v50, 0.0  ;;  %v1638_v50 = vsel %vm714_vm3, %v2637_v31, 0.0 }
 0x78c   : > { %v1976_v8 = vpop.xlane.xlu0 %1975 }
 0x791   : > { %v1979_v9 = vpop.xlane.xlu0 %1978 }
 0x7d2   : > { %v3046_v5 = vpop.f32.mrb[10].mxu0 }
 0x7d3   : > { %v2537_v41 = vpop.f32.mrb[11].mxu0 }
 0x7d6   : > { %v3048_v43 = vpop.f32.mrb[14].mxu1  ;;  %v1886_v44 = vpop.f32.mrb[12].mxu0 }
 0x7d7   : > { %v2542_v46 = vpop.f32.mrb[15].mxu1  ;;  %v2547_v48 = vpop.f32.mrb[13].mxu0  ;;  %v1980_v49 = vsel %vm714_vm3, %v1886_v44, -inf }
 0x7d8   : > { %1981 = vmax.xlane.f32.xlu1 %v1980_v49  ;;  %v904_v46 = vsub.f32 %v2900_v54, %v2905_v57  ;;  %v910_v48 = vsel %vm714_vm3, %v2916_v10, 0.0  ;;  %v908_v49 = vmul.f32 1.442695, %v905_v0 }
 0x7da   : > { %v1964_v51 = vpop.f32.mrb[16].mxu1 }
 0x7db   : > { %v2552_v52 = vpop.f32.mrb[17].mxu1  ;;  %v1983_v56 = vsel %vm714_vm3, %v1964_v51, -inf }
 0x7dc   : > { %1984 = vmax.xlane.f32.xlu0 %v1983_v56  ;;  %v906_v56 = vmul.f32 1.442695, %v904_v46 }
 0x7e9   : > { %2090 = vrot.lane.b32.xlu1 %v2843_v27, %s2700_s21  ;;  %v1634_v27 = vmul.f32 1.442695, %v1632_v61 }
 0x7eb   : > { %2642 = vpow2.f32 %v1634_v27 }
 0x7ec   : > { %2644 = vpow2.f32 %v1636_v26 }
 0x7f2   : > { %2010 = vrot.lane.b32.xlu0 %v2845_v29, %s2700_s21  ;;  %v1270_v29 = vsub.f32 %v2956_v25, %v2961_v30 }
 0x7f4   : > { %v1272_v35 = vmul.f32 1.442695, %v1270_v29 }
 0x7f5   : > { %v3070_v4 = vpop.eup %2642 }
 0x7f6   : > { %2646 = vpow2.f32 %v1272_v35  ;;  %v1646_v53 = vmul.f32 %v3070_v4, %v2853_v37  ;;  %v2645_v6 = vpop.eup %2644 }
 0x7f7   : > { %v1647_v30 = vmul.f32 %v2645_v6, %v2856_v38 }
 0x800   : > { %v2647_v25 = vpop.eup %2646 }
 0x801   : > { %v1284_v7 = vmul.f32 %v2647_v25, %v2853_v37 }
 0x80d   : > { %1277 = vadd.xlane.f32.xlu1 %v1276_v47  ;;  %v913_v47 = vsel %vm714_vm3, %v2925_v13, 0.0 }
 0x811   : > { %1642 = vadd.xlane.f32.xlu1 %v1641_v63  ;;  %1280 = vadd.xlane.f32.xlu0 %v1279_v1 }
 0x815   : > { %1639 = vadd.xlane.f32.xlu0 %v1638_v50 }
 0x822   : > { %1370 = vrot.lane.b32.xlu1 %v1285_v2, %s2694_s15 }
 0x826   : > { %1652 = vrot.lane.b32.xlu1 %v1646_v53, %s2697_s18 }
 0x82a   : > { %1732 = vrot.lane.b32.xlu1 %v1647_v30, %s2697_s18 }
 0x82b   : > { %1290 = vrot.lane.b32.xlu0 %v1284_v7, %s2694_s15 }
 0x865   : > { %v1982_v11 = vpop.xlane.xlu1 %1981 }
 0x866   : > { %v1986_v12 = vmax.f32 %v1982_v11, %v1976_v8  ;;  %v2209_v11 = vld [vmem:[%s3149_s6 + $0x18] sm:$0xff] }
 0x868   : > { %v1988_v14 = vsub.f32 %v1886_v44, %v1986_v12  ;;  %v1994_v22 = vsub.f32 %v1976_v8, %v1986_v12 }
 0x869   : > { %v2091_v16 = vpop.permute.xlu1 %2090  ;;  %v1985_v18 = vpop.xlane.xlu0 %1984 }
 0x86a   : > { %v1990_v19 = vmul.f32 1.442695, %v1988_v14  ;;  %v1987_v24 = vmax.f32 %v1985_v18, %v1979_v9  ;;  %2559 = vmatpush3.msra.mxu1 %v2091_v16  ;;  %v1996_v31 = vmul.f32 1.442695, %v1994_v22 }
 0x86c   : > { %2648 = vpow2.f32 %v1990_v19  ;;  %v1989_v40 = vsub.f32 %v1964_v51, %v1987_v24  ;;  %v1995_v21 = vsub.f32 %v1979_v9, %v1987_v24  ;;  %v2208_v9 = vld [vmem:[%s3149_s6 + $0x10] sm:$0xff] }
 0x86d   : > { %v2011_v42 = vpop.permute.xlu0 %2010  ;;  %v2592_v14 = vpack.c.bf16 %v2209_v11, %v2208_v9 }
 0x86e   : > { %v1992_v45 = vmul.f32 1.442695, %v1989_v40  ;;  %2554 = vmatpush3.msra.mxu0 %v2011_v42  ;;  %v1998_v28 = vmul.f32 1.442695, %v1995_v21 }
 0x870   : > { %2650 = vpow2.f32 %v1992_v45 }
 0x871   : > { %2652 = vpow2.f32 %v1998_v28 }
 0x872   : > { %2654 = vpow2.f32 %v1996_v31 }
 0x873   : > { %2656 = vpow2.f32 %v908_v49 }
 0x874   : > { %2658 = vpow2.f32 %v906_v56 }
 0x876   : > { %v2649_v20 = vpop.eup %2648 }
 0x877   : > { %2556 = vmatmul.mubr.msk.f32.vlgmr.msra.gmra.mrb[14].mxu0 %vm714_vm3, %v2649_v20  ;;  %v2000_v23 = vsel %vm714_vm3, %v2649_v20, 0.0 }
 0x878   : > { %2001 = vadd.xlane.f32.xlu0 %v2000_v23 }
 0x87a   : > { %v2651_v3 = vpop.eup %2650 }
 0x87b   : > { %2561 = vmatmul.mubr.msk.f32.vlgmr.msra.gmra.mrb[18].mxu1 %vm714_vm3, %v2651_v3  ;;  %v2003_v32 = vsel %vm714_vm3, %v2651_v3, 0.0  ;;  %v3084_v33 = vpop.eup %2652 }
 0x87c   : > { %2004 = vadd.xlane.f32.xlu1 %v2003_v32  ;;  %v2655_v34 = vpop.eup %2654  ;;  %v2009_v36 = vmul.f32 %v3084_v33, %v2856_v38 }
 0x87d   : > { %v2008_v41 = vmul.f32 %v2655_v34, %v2853_v37  ;;  %v2657_v62 = vpop.eup %2656 }
 0x87e   : > { %v2659_v0 = vpop.eup %2658  ;;  %v921_v13 = vmul.f32 %v2657_v62, %v2856_v38 }
 0x87f   : > { %v920_v26 = vmul.f32 %v2659_v0, %v2853_v37 }
 0x88d   : > { %2094 = vrot.lane.b32.xlu1 %v2009_v36, %s2700_s21 }
 0x88e   : > { %2014 = vrot.lane.b32.xlu0 %v2008_v41, %s2700_s21 }
 0x89a   : > { %v1278_v44 = vpop.xlane.xlu1 %1277 }
 0x89b   : > { %v1282_v61 = vadd.f32 %v2647_v25, %v1278_v44 }
 0x89e   : > { %v1643_v51 = vpop.xlane.xlu1 %1642  ;;  %v1281_v52 = vpop.xlane.xlu0 %1280 }
 0x89f   : > { %v1283_v59 = vadd.f32 %v2641_v39, %v1281_v52  ;;  %v1645_v63 = vadd.f32 %v2645_v6, %v1643_v51 }
 0x8a1   : > { %2660 = vrcp.f32 %v1283_v59 }
 0x8a2   : > { %v1371_v54 = vpop.permute.xlu1 %1370  ;;  %v1640_v57 = vpop.xlane.xlu0 %1639  ;;  %2662 = vrcp.f32 %v1282_v61 }
 0x8a3   : > { %v1644_v10 = vadd.f32 %v3070_v4, %v1640_v57  ;;  %2664 = vrcp.f32 %v1645_v63  ;;  %v1443_v39 = vadd.f32 %v2998_v60, %v1371_v54  ;;  %v2206_v60 = vld [vmem:[%s3149_s6] sm:$0xff] }
 0x8a5   : > { %2666 = vrcp.f32 %v1644_v10 }
 0x8a6   : > { %v1653_v55 = vpop.permute.xlu1 %1652  ;;  %v1291_v1 = vpop.permute.xlu0 %1290 }
 0x8a7   : > { %v1363_v29 = vadd.f32 %v2996_v58, %v1291_v1  ;;  %v1725_v38 = vadd.f32 %v3046_v5, %v1653_v55 }
 0x8aa   : > { %v1733_v50 = vpop.permute.xlu1 %1732 }
 0x8ab   : > { %v2661_v27 = vpop.eup %2660  ;;  %v1805_v4 = vadd.f32 %v3048_v43, %v1733_v50  ;;  %v2207_v43 = vld [vmem:[%s3149_s6 + $0x8] sm:$0xff] }
 0x8ac   : > { %v2663_v35 = vpop.eup %2662  ;;  %v1449_v2 = vmul.f32 %v2661_v27, %v1443_v39  ;;  %v2588_v30 = vpack.c.bf16 %v2207_v43, %v2206_v60 }
 0x8ad   : > { %911 = vadd.xlane.f32.xlu0 %v910_v48  ;;  %v2665_v53 = vpop.eup %2664  ;;  %v1448_v6 = vmul.f32 %v2663_v35, %v1363_v29  ;;  %v2676_v29 = vld [vmem:[%s2774_s14] sm:$0xff] }
 0x8ae   : > { %v1811_v58 = vmul.f32 %v2665_v53, %v1805_v4  ;;  %2589 = vmatprep.subr.bf16.mxu0 %v2588_v30 }
 0x8af   : > { %v2667_v25 = vpop.eup %2666  ;;  %2591 = vmatpush3.bf16.msra.mxu0 %v2588_v30 }
 0x8b0   : > { %v1810_v37 = vmul.f32 %v2667_v25, %v1725_v38  ;;  %2593 = vmatprep.subr.bf16.mxu0 %v2592_v14 }
 0x8b1   : > { %914 = vadd.xlane.f32.xlu1 %v913_v47 }
 0x8b3   : > { %2595 = vmatpush3.bf16.msra.mxu0 %v2592_v14 }
 0x8c2   : > { %1006 = vrot.lane.b32.xlu1 %v921_v13, %s2691_s11 }
 0x8c3   : > { %926 = vrot.lane.b32.xlu0 %v920_v26, %s2691_s11  ;;  %v2677_v26 = vld [vmem:[%s2774_s14 + $0x8] sm:$0xff] }
 0x8c6   : > { %2178 = vrot.lane.b32.xlu1 %v1449_v2, %s2701_s22 }
 0x8c7   : > { %2176 = vrot.lane.b32.xlu0 %v1448_v6, %s2701_s22 }
 0x8ca   : > { %2186 = vrot.lane.b32.xlu1 %v1811_v58, %s2702_s23 }
 0x8cb   : > { %2184 = vrot.lane.b32.xlu0 %v1810_v37, %s2702_s23 }
 0x905   : > { %v2002_v7 = vpop.xlane.xlu0 %2001 }
 0x906   : > { %v2006_v8 = vadd.f32 %v2655_v34, %v2002_v7 }
 0x908   : > { %2668 = vrcp.f32 %v2006_v8 }
 0x909   : > { %v2005_v5 = vpop.xlane.xlu1 %2004  ;;  %v2015_v16 = vpop.permute.xlu0 %2014 }
 0x90a   : > { %v2007_v12 = vadd.f32 %v3084_v33, %v2005_v5 }
 0x90c   : > { %2670 = vrcp.f32 %v2007_v12 }
 0x90d   : > { %v2095_v45 = vpop.permute.xlu1 %2094 }
 0x912   : > { %v2669_v40 = vpop.eup %2668 }
 0x916   : > { %v2671_v23 = vpop.eup %2670 }
 0x93a   : > { %v912_v28 = vpop.xlane.xlu0 %911 }
 0x93b   : > { %v916_v31 = vadd.f32 %v2659_v0, %v912_v28 }
 0x93d   : > { %2672 = vrcp.f32 %v916_v31 }
 0x93e   : > { %v915_v32 = vpop.xlane.xlu1 %914  ;;  %v927_v34 = vpop.permute.xlu0 %926 }
 0x93f   : > { %v917_v33 = vadd.f32 %v2657_v62, %v915_v32  ;;  %v999_v46 = vadd.f32 %v2940_v15, %v927_v34  ;;  %v2407_v62 = vld [vmem:[%s3150_s7] ss:$0 sm:$0xff] }
 0x941   : > { %2674 = vrcp.f32 %v917_v33 }
 0x942   : > { %v1007_v36 = vpop.permute.xlu1 %1006  ;;  %v2177_v44 = vpop.permute.xlu0 %2176 }
 0x943   : > { %v1079_v52 = vadd.f32 %v2942_v17, %v1007_v36 }
 0x946   : > { %v2179_v51 = vpop.permute.xlu1 %2178  ;;  %v2185_v56 = vpop.permute.xlu0 %2184 }
 0x947   : > { %v2673_v41 = vpop.eup %2672 }
 0x948   : > { %v1084_v48 = vmul.f32 %v2673_v41, %v999_v46 }
 0x94a   : > { %v2086_v18 = vpop.f32.mrb[14].mxu0  ;;  %v2198_v59 = vsel %vm714_vm3, %v1084_v48, %v2177_v44  ;;  %v2187_v54 = vpop.permute.xlu1 %2186 }
 0x94b   : > { %v2087_v19 = vadd.f32 %v2086_v18, %v2015_v16  ;;  %v2557_v24 = vpop.f32.mrb[15].mxu0  ;;  %v2675_v49 = vpop.eup %2674  ;;  %v2201_v61 = vsel %vm2200_vm4, %v2198_v59, %v2185_v56 }
 0x94c   : > { %v1085_v47 = vmul.f32 %v2675_v49, %v1079_v52 }
 0x94d   : > { %v2172_v42 = vmul.f32 %v2669_v40, %v2087_v19 }
 0x94e   : > { %v2166_v20 = vpop.f32.mrb[18].mxu1  ;;  %v2199_v63 = vsel %vm714_vm3, %v1085_v47, %v2179_v51 }
 0x94f   : > { %v2167_v21 = vadd.f32 %v2166_v20, %v2095_v45  ;;  %v2562_v22 = vpop.f32.mrb[19].mxu1  ;;  %2192 = vrot.lane.b32.xlu0 %v2172_v42, %s2703_s13  ;;  %v2202_v10 = vsel %vm2200_vm4, %v2199_v63, %v2187_v54 }
 0x951   : > { %v2173_v3 = vmul.f32 %v2671_v23, %v2167_v21 }
 0x953   : > { %2194 = vrot.lane.b32.xlu1 %v2173_v3, %s2703_s13 }
 0x9c1   : > { %v2193_v57 = vpop.permute.xlu0 %2192 }
 0x9c2   : > { %v2204_v15 = vsel %vm2203_vm5, %v2201_v61, %v2193_v57 }
 0x9c3   : > { %2571 = vmatprep.mubr.msk.f32.mxu0 %vm332_vm0, %v2204_v15 }
 0x9c5   : > { %v2195_v55 = vpop.permute.xlu1 %2194 }
 0x9c6   : > { %v2205_v17 = vsel %vm2203_vm5, %v2202_v10, %v2195_v55 }
 0x9c7   : > { %2572 = vmatmul.mubr.msk.f32.vlgmr.msra.gmra.mrb[16].mxu0 %vm332_vm0, %v2205_v17 }
 0xa9a   : > { %v2573_v0 = vpop.f32.mrb[16].mxu0 }
 0xa9b   : > { %v2295_v1 = vadd.f32 %v2573_v0, %v2407_v62  ;;  %v2289_v13 = vpop.f32.mrb[17].mxu0 }
 0xa9c   : > { %v2290_v27 = vadd.f32 %v2407_v62, %v2289_v13 }
 0xa9d   : > { %v2299_v35 = vadd.f32 %v2677_v26, %v2295_v1 }
 0xa9e   : > { %v2298_v50 = vadd.f32 %v2676_v29, %v2290_v27 }
 0xa9f   : > { %2301 = vst.msk [vmem:[%s326_s19 + $0x8] sm:$0xff] %vm332_vm0, %v2299_v35 }
 0xaa0   : > { %2300 = vst.msk [vmem:[%s326_s19] sm:$0xff] %vm332_vm0, %v2298_v50 }
 0xaa1 PF: > { %s18_s27 = sadd.s32 1, %s2684_s27  }
 0xaa2   : > { %p15_p4 = scmp.ge.s32.totalorder %s18_s27, 4  }
 0xaa4   :  { %17 = sbr.rel (!%p15_p4) target bundleno = 1 (0x1), region = 85 }

</bundles_post_ra>
